<compile_context>
chip_gen: v7x
topology: tpu7x:2x2x1
jax: 0.10.0
libtpu: 0.0.40
codegen_flags: <defaults>
</compile_context>

<pallas_src>
import functools

import numpy as np
import jax
import jax.numpy as jnp
from jax import lax
from jax.experimental import pallas as pl
from jax.experimental.pallas import tpu as pltpu


_MIN_PALLAS_HW = 1024      # smaller levels run in plain XLA (launch/step overhead)
_K_MAX = 2048              # cap on the flat-pixel chunk width (multiple of 128)


# ---------------------------------------------------------------------------
# glue: separable bilinear-resize matrices (static shapes only)
# ---------------------------------------------------------------------------
def resize_matrix(out_size, in_size, align_corners):
    """R such that (R @ x) bilinearly resizes an axis of length in_size -> out_size."""
    R = np.zeros((out_size, in_size), np.float32)
    for d in range(out_size):
        if align_corners:
            src = d * (in_size - 1) / (out_size - 1) if out_size > 1 else 0.0
        else:
            src = (d + 0.5) * in_size / out_size - 0.5
            if src < 0.0:
                src = 0.0
        x0 = int(np.floor(src))
        x0 = min(max(x0, 0), in_size - 1)
        x1 = min(x0 + 1, in_size - 1)
        lam = src - x0
        R[d, x0] += 1.0 - lam
        R[d, x1] += lam
    return R


def _charb(x):
    # charbonnier(x, alpha=0.25, eps=1e-9) == (x^2 + eps^2) ** 0.25
    return jnp.sqrt(jnp.sqrt(x * x + 1e-18))


# ---------------------------------------------------------------------------
# Pallas kernel: one pyramid level, grid = (batch, core-split, pixel chunk)
# ---------------------------------------------------------------------------
def _level_kernel(flow_ref, flowf_ref, base_ref, f1_ref, f0_ref, p_ref, s_ref,
                  *, C, h, w):
    split = pl.program_id(1)
    k = pl.program_id(2)

    # ---- once per (batch, split): init accumulators + smoothness term --------
    @pl.when(k == 0)
    def _():
        p_ref[...] = jnp.zeros_like(p_ref)
        flow = flow_ref[0]                      # (2, h, w)
        # charbonnier(flow - v_translated) + charbonnier(flow - h_translated),
        # written as shifted-slice differences (no zero-padded concatenations).
        sv = (jnp.sum(_charb(flow[:, :h - 1, :] - flow[:, 1:, :]))
              + jnp.sum(_charb(flow[:, h - 1:, :])))
        sh = (jnp.sum(_charb(flow[:, :, :w - 1] - flow[:, :, 1:]))
              + jnp.sum(_charb(flow[:, :, w - 1:])))
        # count the smoothness term only once per batch element (split 0)
        s_val = jnp.where(split == 0, (sv + sh) * 0.5, 0.0)
        s_ref[...] = jnp.zeros_like(s_ref) + s_val

    # ---- photometric contribution of this chunk of K flat output pixels ------
    xx = base_ref[0:1, :]                       # (1, K) base x coordinate
    yy = base_ref[1:2, :]                       # (1, K) base y coordinate
    vmask = base_ref[2:3, :]                    # (1, K) 1.0 real / 0.0 padded

    fx = flowf_ref[0, 0:1, :]                   # (1, K)
    fy = flowf_ref[0, 1:2, :]

    # F.grid_sample(..., align_corners=True) source coords:
    #   grid = (flow + base) * (2/size) - 1  ->  unnormalized = (flow+base)*(size-1)/size
    ix = (fx + xx) * ((w - 1.0) / w)
    iy = (fy + yy) * ((h - 1.0) / h)
    x0f = jnp.floor(ix)
    y0f = jnp.floor(iy)
    wx1 = ix - x0f
    wx0 = 1.0 - wx1
    wy1 = iy - y0f
    wy0 = 1.0 - wy1
    x0 = x0f.astype(jnp.int32)
    y0 = y0f.astype(jnp.int32)
    x1 = x0 + 1
    y1 = y0 + 1

    K = xx.shape[-1]
    # Separable bilinear weight matrices (zeros padding: out-of-bounds corners
    # drop out; the x/y bound masks factor exactly like the 4-corner form).
    #   WX[x, j] = wx0(j)*[x == x0(j)] + wx1(j)*[x == x1(j)]      (w, K)
    #   WY[y, j] = wy0(j)*[y == y0(j)] + wy1(j)*[y == y1(j)]      (h, K)
    xi = lax.broadcasted_iota(jnp.int32, (w, K), 0)
    yi = lax.broadcasted_iota(jnp.int32, (h, K), 0)
    wx0m = jnp.where((x0 >= 0) & (x0 < w), wx0, 0.0)
    wx1m = jnp.where((x1 >= 0) & (x1 < w), wx1, 0.0)
    wy0m = jnp.where((y0 >= 0) & (y0 < h), wy0, 0.0)
    wy1m = jnp.where((y1 >= 0) & (y1 < h), wy1, 0.0)
    WX = (wx0m * (xi == x0).astype(jnp.float32)
          + wx1m * (xi == x1).astype(jnp.float32))
    WY = (wy0m * (yi == y0).astype(jnp.float32)
          + wy1m * (yi == y1).astype(jnp.float32))

    # x-contraction on the MXU: (C*h, w) @ (w, K), f32 accumulation.
    # (bf16 operands with f32 accumulate would be ~2-4x faster on v6e/v7x but is
    #  kept f32 per the correctness tolerance.)
    tmp = jnp.dot(f1_ref[0], WX, preferred_element_type=jnp.float32)   # (C*h, K)

    # y-contraction (VPU multiply + sublane reduce) per channel + charbonnier.
    f0 = f0_ref[0]                                                     # (C, K)
    psum = jnp.float32(0.0)
    for c in range(C):                                                 # C is small & static
        warped_c = jnp.sum(tmp[c * h:(c + 1) * h, :] * WY, axis=0, keepdims=True)
        psum = psum + jnp.sum(_charb(warped_c - f0[c:c + 1, :]) * vmask)
    # literal /3 divisor from the PyTorch source (`torch.sum(p_loss, dim=1) / 3`)
    p_ref[...] += psum * (1.0 / 3.0)


# ---------------------------------------------------------------------------
# chunk sizing (generation-aware) and level-call wrapper
# ---------------------------------------------------------------------------
def _physical_vmem_bytes():
    try:
        return int(pltpu.get_tpu_info().vmem_capacity_bytes)
    except Exception:
        return 64 * 1024 * 1024               # conservative (v7x per-TC VMEM)


def _round_up(x, m):
    return (x + m - 1) // m * m


def _chunk_col_bytes(C, h, w):
    # f32 words live per output-pixel column while processing one chunk (generous).
    rows = (C * h                 # MXU result tmp (C*h, K)
            + 4 * (h + w)         # WX / WY + iota / compare temporaries
            + 2 * h               # per-channel y-contraction temporaries
            + 2 * (C + 2 + 3)     # double-buffered f0 / flow / base chunk blocks
            + 16)                 # misc (1, K) temporaries (ix, iy, weights, ...)
    return 4 * rows


def _resident_bytes(C, h, w):
    return 4 * (2 * C * h * w     # resized frm1 (C*h, w), double-buffered over batch
                + 2 * 2 * h * w)  # flow (2, h, w), double-buffered over batch


def _pick_chunk(C, h, w):
    """Largest flat-pixel chunk K (multiple of 128) that fits the VMEM budget."""
    hw = h * w
    budget = int(0.40 * _physical_vmem_bytes())
    avail = budget - _resident_bytes(C, h, w)
    k_fit = max(128, (avail // _chunk_col_bytes(C, h, w)) // 128 * 128)
    return int(min(k_fit, _K_MAX, _round_up(hw, 128)))


def _vmem_limit_bytes(C, h, w, K):
    est = _resident_bytes(C, h, w) + K * _chunk_col_bytes(C, h, w)
    est = int(1.5 * est) + (4 << 20)
    return max(32 << 20, min(est, int(0.9 * _physical_vmem_bytes())))


def _level_call(flow, f0r, f1r):
    B, _, h, w = flow.shape
    C = f1r.shape[1]
    hw = h * w

    K = _pick_chunk(C, h, w)
    n_chunks = -(-hw // K)
    # split the chunk-reduction range across a second "parallel" axis so both
    # v7x TensorCores are busy even when B is small (harmless elsewhere).
    n_splits = 2 if n_chunks >= 2 else 1
    cps = -(-n_chunks // n_splits)            # chunks per split
    hw_pad = n_splits * cps * K
    pad = hw_pad - hw

    # flat, lane-padded views (glue; tiny vs the frames themselves)
    flowf = jnp.pad(flow.reshape(B, 2, hw), ((0, 0), (0, 0), (0, pad)))
    f0f = jnp.pad(f0r.reshape(B, C, hw), ((0, 0), (0, 0), (0, pad)))
    f1m = f1r.reshape(B, C * h, w)            # matmul operand layout (C*h, w)

    # base grid coords + validity mask (avoids in-kernel integer div/mod)
    xx = jnp.tile(jnp.arange(w, dtype=jnp.float32), h)
    yy = jnp.repeat(jnp.arange(h, dtype=jnp.float32), w)
    base = jnp.stack([xx, yy, jnp.ones((hw,), jnp.float32)], axis=0)
    base = jnp.pad(base, ((0, 0), (0, pad)))

    kernel = functools.partial(_level_kernel, C=C, h=h, w=w)
    out_spec = pl.BlockSpec((1, 1, 1, 1), lambda b, s, k: (b, s, 0, 0))

    p_part, s_part = pl.pallas_call(
        kernel,
        out_shape=(jax.ShapeDtypeStruct((B, n_splits, 1, 1), jnp.float32),
                   jax.ShapeDtypeStruct((B, n_splits, 1, 1), jnp.float32)),
        grid_spec=pltpu.PrefetchScalarGridSpec(
            num_scalar_prefetch=0,
            grid=(B, n_splits, cps),
            in_specs=[
                pl.BlockSpec((1, 2, h, w), lambda b, s, k: (b, 0, 0, 0)),      # flow 2D (resident)
                pl.BlockSpec((1, 2, K), lambda b, s, k: (b, 0, s * cps + k)),  # flow flat chunk
                pl.BlockSpec((3, K), lambda b, s, k: (0, s * cps + k)),        # base coords + mask
                pl.BlockSpec((1, C * h, w), lambda b, s, k: (b, 0, 0)),        # resized frm1 (resident)
                pl.BlockSpec((1, C, K), lambda b, s, k: (b, 0, s * cps + k)),  # resized frm0 chunk
            ],
            out_specs=[out_spec, out_spec]),
        compiler_params=pltpu.CompilerParams(
            dimension_semantics=("parallel", "parallel", "arbitrary"),
            vmem_limit_bytes=_vmem_limit_bytes(C, h, w, K)),
    )(flow, flowf, base, f1m, f0f)
    return jnp.sum(p_part), jnp.sum(s_part)


# ---------------------------------------------------------------------------
# tiny-level path (plain XLA; a pallas_call here is pure per-step overhead)
# ---------------------------------------------------------------------------
def _level_sums_xla(flow, f0r, f1r):
    B, C, h, w = f1r.shape
    hw = h * w
    xx = jnp.arange(w, dtype=jnp.float32)[None, None, :]
    yy = jnp.arange(h, dtype=jnp.float32)[None, :, None]
    ix = (flow[:, 0] + xx) * ((w - 1.0) / w)          # (B, h, w)
    iy = (flow[:, 1] + yy) * ((h - 1.0) / h)
    x0f = jnp.floor(ix)
    y0f = jnp.floor(iy)
    wx1 = ix - x0f
    wx0 = 1.0 - wx1
    wy1 = iy - y0f
    wy0 = 1.0 - wy1
    x0 = x0f.astype(jnp.int32)
    y0 = y0f.astype(jnp.int32)
    f1_flat = f1r.reshape(B, C, hw)

    def corner(xi, yi, wgt):
        inb = (xi >= 0) & (xi < w) & (yi >= 0) & (yi < h)
        xc = jnp.clip(xi, 0, w - 1)
        yc = jnp.clip(yi, 0, h - 1)
        idx = (yc * w + xc).reshape(B, 1, hw)
        vals = jnp.take_along_axis(f1_flat, jnp.broadcast_to(idx, (B, C, hw)), axis=2)
        return jnp.where(inb, wgt, 0.0).reshape(B, 1, hw) * vals

    warped = (corner(x0, y0, wx0 * wy0) + corner(x0 + 1, y0, wx1 * wy0)
              + corner(x0, y0 + 1, wx0 * wy1) + corner(x0 + 1, y0 + 1, wx1 * wy1))
    p_sum = jnp.sum(_charb(warped - f0r.reshape(B, C, hw))) / 3.0

    dv = flow[:, :, :-1, :] - flow[:, :, 1:, :]
    dh = flow[:, :, :, :-1] - flow[:, :, :, 1:]
    s_sum = (jnp.sum(_charb(dv)) + jnp.sum(_charb(flow[:, :, -1:, :]))
             + jnp.sum(_charb(dh)) + jnp.sum(_charb(flow[:, :, :, -1:]))) / 2.0
    return p_sum, s_sum


# ---------------------------------------------------------------------------
# UnsupLoss.forward equivalent
# ---------------------------------------------------------------------------
def unsup_loss_pallas(pred_flows, frms, gamma):
    frm0 = frms[:, 0].astype(jnp.float32)     # (B, C, H, W)
    frm1 = frms[:, 1].astype(jnp.float32)
    B, C, H, W = frm0.shape
    n = len(pred_flows)
    weights = [gamma ** (n - i - 1) for i in range(n)]

    loss = jnp.float32(0.0)
    for i, flow in enumerate(pred_flows):
        flow = flow.astype(jnp.float32)
        h, w = int(flow.shape[2]), int(flow.shape[3])

        # glue (hoisted per perf review): bilinear pre-resize of both frames to
        # the flow resolution, once per level, outside the per-batch kernel.
        # TODO(synk): cascade resizes from the previous (larger) level to cut
        # full-res HBM re-reads; kept direct to match the reference numerics.
        rht = jnp.asarray(resize_matrix(h, H, True))
        rwt = jnp.asarray(resize_matrix(w, W, True))
        rhf = jnp.asarray(resize_matrix(h, H, False))
        rwf = jnp.asarray(resize_matrix(w, W, False))
        f1r = jnp.einsum('hH,bcHW,wW->bchw', rht, frm1, rwt)  # warp source (ac=True)
        f0r = jnp.einsum('hH,bcHW,wW->bchw', rhf, frm0, rwf)  # photometric target (ac=False)

        if h * w >= _MIN_PALLAS_HW:
            p_sum, s_sum = _level_call(flow, f0r, f1r)
        else:
            p_sum, s_sum = _level_sums_xla(flow, f0r, f1r)

        loss = loss + weights[i] * ((p_sum + s_sum) / B)
    return loss


# ---------------------------------------------------------------------------
# numpy reference (same math, no Pallas) for a sanity check
# ---------------------------------------------------------------------------
def _charb_np(x):
    return np.sqrt(np.sqrt(x * x + 1e-18))


def unsup_loss_ref(pred_flows, frms, gamma):
    frms = np.asarray(frms)
    frm0, frm1 = frms[:, 0], frms[:, 1]
    B, C, H, W = frm0.shape
    n = len(pred_flows)
    weights = [gamma ** (n - i - 1) for i in range(n)]
    total = 0.0
    for i, fl in enumerate(pred_flows):
        fl = np.asarray(fl)
        _, _, h, w = fl.shape
        rht, rwt = resize_matrix(h, H, True), resize_matrix(w, W, True)
        rhf, rwf = resize_matrix(h, H, False), resize_matrix(w, W, False)
        p_tot, s_tot = 0.0, 0.0
        for b in range(B):
            f1 = np.einsum('hH,cHW,wW->chw', rht, frm1[b], rwt)
            f0 = np.einsum('hH,cHW,wW->chw', rhf, frm0[b], rwf)
            xx, yy = np.meshgrid(np.arange(w, dtype=np.float32),
                                 np.arange(h, dtype=np.float32))
            ix = (fl[b, 0] + xx) * (w - 1.0) / w
            iy = (fl[b, 1] + yy) * (h - 1.0) / h
            x0 = np.floor(ix).astype(np.int64)
            y0 = np.floor(iy).astype(np.int64)
            wx1, wy1 = ix - x0, iy - y0
            wx0, wy0 = 1.0 - wx1, 1.0 - wy1
            warped = np.zeros((C, h, w), np.float32)
            for xi, yi, wgt in [(x0, y0, wx0 * wy0), (x0 + 1, y0, wx1 * wy0),
                                (x0, y0 + 1, wx0 * wy1), (x0 + 1, y0 + 1, wx1 * wy1)]:
                inb = (xi >= 0) & (xi < w) & (yi >= 0) & (yi < h)
                xc, yc = np.clip(xi, 0, w - 1), np.clip(yi, 0, h - 1)
                warped += np.where(inb, wgt, 0.0)[None] * f1[:, yc, xc]
            p_tot += _charb_np(warped - f0).sum() / 3.0
            flb = fl[b]
            vtr = np.concatenate([flb[:, 1:, :], np.zeros((2, 1, w), np.float32)], axis=1)
            htr = np.concatenate([flb[:, :, 1:], np.zeros((2, h, 1), np.float32)], axis=2)
            s_tot += (_charb_np(flb - vtr) + _charb_np(flb - htr)).sum() / 2.0
        total += weights[i] * (p_tot / B + s_tot / B)
    return total


if __name__ == "__main__":
    key = jax.random.PRNGKey(0)
    k1, k2, k3, k4, k5 = jax.random.split(key, 5)

    B, C, H, W = 2, 3, 128, 128
    gamma = 0.8

    frms = jax.random.uniform(k1, (B, 2, C, H, W), jnp.float32)
    pred_flows = [
        jax.random.normal(k2, (B, 2, 16, 16), jnp.float32),     # XLA tiny-level path
        jax.random.normal(k3, (B, 2, 32, 32), jnp.float32),     # Pallas, single chunk
        jax.random.normal(k4, (B, 2, 64, 64), jnp.float32),     # Pallas, 2-way split
        jax.random.normal(k5, (B, 2, 128, 128), jnp.float32),   # Pallas, multi-chunk
    ]

    loss = unsup_loss_pallas(pred_flows, frms, gamma)
    loss = jax.block_until_ready(loss)

    ref = unsup_loss_ref(pred_flows, frms, gamma)
    if not np.allclose(float(loss), ref, rtol=1e-2, atol=1e-2):
        raise AssertionError(f"mismatch: pallas={float(loss)} ref={ref}")

    print("KERNEL_OK")
</pallas_src>

<mosaic_0001>
module attributes {stable_mosaic.version = 11 : i64} {
  func.func @_level_kernel(%arg0: i32, %arg1: i32, %arg2: i32, %arg3: memref<1x2x32x32xf32, #tpu.memory_space<vmem>>, %arg4: memref<1x2x1024xf32, #tpu.memory_space<vmem>>, %arg5: memref<3x1024xf32, #tpu.memory_space<vmem>>, %arg6: memref<1x96x32xf32, #tpu.memory_space<vmem>>, %arg7: memref<1x3x1024xf32, #tpu.memory_space<vmem>>, %arg8: memref<1x1x1x1xf32, #tpu.memory_space<vmem>>, %arg9: memref<1x1x1x1xf32, #tpu.memory_space<vmem>>) attributes {dimension_semantics = [#tpu.dimension_semantics<parallel>, #tpu.dimension_semantics<parallel>, #tpu.dimension_semantics<arbitrary>], iteration_bounds = array<i64: 2, 1, 1>, scalar_prefetch = 0 : i64, scratch_operands = 0 : i64, tpu.core_type = #tpu.core_type<tc>, window_params = [{transform_indices = @transform_0, window_bounds = array<i64: 1, 2, 32, 32>}, {transform_indices = @transform_1, window_bounds = array<i64: 1, 2, 1024>}, {transform_indices = @transform_2, window_bounds = array<i64: 3, 1024>}, {transform_indices = @transform_3, window_bounds = array<i64: 1, 96, 32>}, {transform_indices = @transform_4, window_bounds = array<i64: 1, 3, 1024>}, {transform_indices = @transform_5, window_bounds = array<i64: 1, 1, 1, 1>}, {transform_indices = @transform_6, window_bounds = array<i64: 1, 1, 1, 1>}]} {
    %c0_i32 = arith.constant 0 : i32
    %0 = arith.cmpi eq, %arg2, %c0_i32 : i32
    %1 = arith.extui %0 : i1 to i32
    %c0_i32_0 = arith.constant 0 : i32
    %2 = arith.cmpi ne, %1, %c0_i32_0 : i32
    scf.if %2 {
      %cst_51 = arith.constant 0.000000e+00 : f32
      %147 = vector.broadcast %cst_51 : f32 to vector<1x1x1x1xf32>
      %c0_52 = arith.constant 0 : index
      %c0_53 = arith.constant 0 : index
      %c0_54 = arith.constant 0 : index
      %c0_55 = arith.constant 0 : index
      %148 = vector.load %arg8[%c0_52, %c0_53, %c0_54, %c0_55] : memref<1x1x1x1xf32, #tpu.memory_space<vmem>>, vector<1x1x1x1xf32>
      tpu.vector_store %arg8[%c0_52, %c0_53, %c0_54, %c0_55], %147 {strides = array<i32>} : memref<1x1x1x1xf32, #tpu.memory_space<vmem>>, vector<1x1x1x1xf32>,
      %c0_56 = arith.constant 0 : index
      %c0_57 = arith.constant 0 : index
      %c0_58 = arith.constant 0 : index
      %c0_59 = arith.constant 0 : index
      %149 = vector.load %arg3[%c0_56, %c0_57, %c0_58, %c0_59] : memref<1x2x32x32xf32, #tpu.memory_space<vmem>>, vector<1x2x32x32xf32>
      %150 = vector.shape_cast %149 : vector<1x2x32x32xf32> to vector<2x32x32xf32>
      %151 = vector.extract_strided_slice %150 {offsets = [0, 0, 0], sizes = [2, 31, 32], strides = [1, 1, 1]} : vector<2x32x32xf32> to vector<2x31x32xf32>
      %152 = vector.extract_strided_slice %150 {offsets = [0, 1, 0], sizes = [2, 31, 32], strides = [1, 1, 1]} : vector<2x32x32xf32> to vector<2x31x32xf32>
      %153 = arith.subf %151, %152 : vector<2x31x32xf32>
      %154 = arith.mulf %153, %153 : vector<2x31x32xf32>
      %cst_60 = arith.constant 1.000000e-18 : f32
      %155 = vector.broadcast %cst_60 : f32 to vector<2x31x32xf32>
      %156 = arith.addf %154, %155 : vector<2x31x32xf32>
      %157 = math.sqrt %156 : vector<2x31x32xf32>
      %158 = math.sqrt %157 : vector<2x31x32xf32>
      %159 = vector.shape_cast %158 : vector<2x31x32xf32> to vector<1x2x31x32xf32>
      %cst_61 = arith.constant dense<0.000000e+00> : vector<1xf32>
      %160 = vector.multi_reduction <add>, %159, %cst_61 [1, 2, 3] : vector<1x2x31x32xf32> to vector<1xf32>
      %161 = vector.shape_cast %160 : vector<1xf32> to vector<1x1x1x1xf32>
      %162 = vector.extract %161[0, 0, 0, 0] : f32 from vector<1x1x1x1xf32>
      %163 = vector.extract_strided_slice %150 {offsets = [0, 31, 0], sizes = [2, 1, 32], strides = [1, 1, 1]} : vector<2x32x32xf32> to vector<2x1x32xf32>
      %164 = arith.mulf %163, %163 : vector<2x1x32xf32>
      %cst_62 = arith.constant 1.000000e-18 : f32
      %165 = vector.broadcast %cst_62 : f32 to vector<2x1x32xf32>
      %166 = arith.addf %164, %165 : vector<2x1x32xf32>
      %167 = math.sqrt %166 : vector<2x1x32xf32>
      %168 = math.sqrt %167 : vector<2x1x32xf32>
      %169 = vector.shape_cast %168 : vector<2x1x32xf32> to vector<1x2x1x32xf32>
      %cst_63 = arith.constant dense<0.000000e+00> : vector<1xf32>
      %170 = vector.multi_reduction <add>, %169, %cst_63 [1, 2, 3] : vector<1x2x1x32xf32> to vector<1xf32>
      %171 = vector.shape_cast %170 : vector<1xf32> to vector<1x1x1x1xf32>
      %172 = vector.extract %171[0, 0, 0, 0] : f32 from vector<1x1x1x1xf32>
      %173 = arith.addf %162, %172 : f32
      %174 = vector.extract_strided_slice %150 {offsets = [0, 0, 0], sizes = [2, 32, 31], strides = [1, 1, 1]} : vector<2x32x32xf32> to vector<2x32x31xf32>
      %175 = vector.extract_strided_slice %150 {offsets = [0, 0, 1], sizes = [2, 32, 31], strides = [1, 1, 1]} : vector<2x32x32xf32> to vector<2x32x31xf32>
      %176 = arith.subf %174, %175 : vector<2x32x31xf32>
      %177 = arith.mulf %176, %176 : vector<2x32x31xf32>
      %cst_64 = arith.constant 1.000000e-18 : f32
      %178 = vector.broadcast %cst_64 : f32 to vector<2x32x31xf32>
      %179 = arith.addf %177, %178 : vector<2x32x31xf32>
      %180 = math.sqrt %179 : vector<2x32x31xf32>
      %181 = math.sqrt %180 : vector<2x32x31xf32>
      %182 = vector.shape_cast %181 : vector<2x32x31xf32> to vector<1x2x32x31xf32>
      %cst_65 = arith.constant dense<0.000000e+00> : vector<1xf32>
      %183 = vector.multi_reduction <add>, %182, %cst_65 [1, 2, 3] : vector<1x2x32x31xf32> to vector<1xf32>
      %184 = vector.shape_cast %183 : vector<1xf32> to vector<1x1x1x1xf32>
      %185 = vector.extract %184[0, 0, 0, 0] : f32 from vector<1x1x1x1xf32>
      %186 = vector.extract_strided_slice %150 {offsets = [0, 0, 31], sizes = [2, 32, 1], strides = [1, 1, 1]} : vector<2x32x32xf32> to vector<2x32x1xf32>
      %187 = arith.mulf %186, %186 : vector<2x32x1xf32>
      %cst_66 = arith.constant 1.000000e-18 : f32
      %188 = vector.broadcast %cst_66 : f32 to vector<2x32x1xf32>
      %189 = arith.addf %187, %188 : vector<2x32x1xf32>
      %190 = math.sqrt %189 : vector<2x32x1xf32>
      %191 = math.sqrt %190 : vector<2x32x1xf32>
      %192 = vector.shape_cast %191 : vector<2x32x1xf32> to vector<1x2x32x1xf32>
      %cst_67 = arith.constant dense<0.000000e+00> : vector<1xf32>
      %193 = vector.multi_reduction <add>, %192, %cst_67 [1, 2, 3] : vector<1x2x32x1xf32> to vector<1xf32>
      %194 = vector.shape_cast %193 : vector<1xf32> to vector<1x1x1x1xf32>
      %195 = vector.extract %194[0, 0, 0, 0] : f32 from vector<1x1x1x1xf32>
      %196 = arith.addf %185, %195 : f32
      %c0_i32_68 = arith.constant 0 : i32
      %197 = arith.cmpi eq, %arg1, %c0_i32_68 : i32
      %198 = arith.addf %173, %196 : f32
      %cst_69 = arith.constant 5.000000e-01 : f32
      %199 = arith.mulf %198, %cst_69 : f32
      %cst_70 = arith.constant 0.000000e+00 : f32
      %200 = arith.select %197, %199, %cst_70 : f32
      %cst_71 = arith.constant 0.000000e+00 : f32
      %201 = vector.broadcast %cst_71 : f32 to vector<1x1x1x1xf32>
      %202 = vector.broadcast %200 : f32 to vector<1x1x1x1xf32>
      %203 = arith.addf %201, %202 : vector<1x1x1x1xf32>
      %c0_72 = arith.constant 0 : index
      %c0_73 = arith.constant 0 : index
      %c0_74 = arith.constant 0 : index
      %c0_75 = arith.constant 0 : index
      %204 = vector.load %arg9[%c0_72, %c0_73, %c0_74, %c0_75] : memref<1x1x1x1xf32, #tpu.memory_space<vmem>>, vector<1x1x1x1xf32>
      tpu.vector_store %arg9[%c0_72, %c0_73, %c0_74, %c0_75], %203 {strides = array<i32>} : memref<1x1x1x1xf32, #tpu.memory_space<vmem>>, vector<1x1x1x1xf32>,
    } else {
    }
    %c0 = arith.constant 0 : index
    %c0_1 = arith.constant 0 : index
    %3 = vector.load %arg5[%c0, %c0_1] : memref<3x1024xf32, #tpu.memory_space<vmem>>, vector<1x1024xf32>
    %c1 = arith.constant 1 : index
    %c0_2 = arith.constant 0 : index
    %4 = vector.load %arg5[%c1, %c0_2] : memref<3x1024xf32, #tpu.memory_space<vmem>>, vector<1x1024xf32>
    %c2 = arith.constant 2 : index
    %c0_3 = arith.constant 0 : index
    %5 = vector.load %arg5[%c2, %c0_3] : memref<3x1024xf32, #tpu.memory_space<vmem>>, vector<1x1024xf32>
    %c0_4 = arith.constant 0 : index
    %c0_5 = arith.constant 0 : index
    %c0_6 = arith.constant 0 : index
    %6 = vector.load %arg4[%c0_4, %c0_5, %c0_6] : memref<1x2x1024xf32, #tpu.memory_space<vmem>>, vector<1x1x1024xf32>
    %7 = vector.shape_cast %6 : vector<1x1x1024xf32> to vector<1x1024xf32>
    %c0_7 = arith.constant 0 : index
    %c1_8 = arith.constant 1 : index
    %c0_9 = arith.constant 0 : index
    %8 = vector.load %arg4[%c0_7, %c1_8, %c0_9] : memref<1x2x1024xf32, #tpu.memory_space<vmem>>, vector<1x1x1024xf32>
    %9 = vector.shape_cast %8 : vector<1x1x1024xf32> to vector<1x1024xf32>
    %10 = arith.addf %7, %3 : vector<1x1024xf32>
    %cst = arith.constant 9.687500e-01 : f32
    %11 = vector.broadcast %cst : f32 to vector<1x1024xf32>
    %12 = arith.mulf %10, %11 : vector<1x1024xf32>
    %13 = arith.addf %9, %4 : vector<1x1024xf32>
    %cst_10 = arith.constant 9.687500e-01 : f32
    %14 = vector.broadcast %cst_10 : f32 to vector<1x1024xf32>
    %15 = arith.mulf %13, %14 : vector<1x1024xf32>
    %16 = math.floor %12 : vector<1x1024xf32>
    %17 = math.floor %15 : vector<1x1024xf32>
    %18 = arith.subf %12, %16 : vector<1x1024xf32>
    %cst_11 = arith.constant 1.000000e+00 : f32
    %19 = vector.broadcast %cst_11 : f32 to vector<1x1024xf32>
    %20 = arith.subf %19, %18 : vector<1x1024xf32>
    %21 = arith.subf %15, %17 : vector<1x1024xf32>
    %cst_12 = arith.constant 1.000000e+00 : f32
    %22 = vector.broadcast %cst_12 : f32 to vector<1x1024xf32>
    %23 = arith.subf %22, %21 : vector<1x1024xf32>
    %24 = arith.fptosi %16 : vector<1x1024xf32> to vector<1x1024xi32>
    %25 = arith.fptosi %17 : vector<1x1024xf32> to vector<1x1024xi32>
    %c1_i32 = arith.constant 1 : i32
    %26 = vector.broadcast %c1_i32 : i32 to vector<1x1024xi32>
    %27 = arith.addi %24, %26 : vector<1x1024xi32>
    %c1_i32_13 = arith.constant 1 : i32
    %28 = vector.broadcast %c1_i32_13 : i32 to vector<1x1024xi32>
    %29 = arith.addi %25, %28 : vector<1x1024xi32>
    %30 = tpu.iota {dimensions = array<i32: 0>} : vector<32x1024xi32>
    %31 = tpu.iota {dimensions = array<i32: 0>} : vector<32x1024xi32>
    %c0_i32_14 = arith.constant 0 : i32
    %32 = vector.broadcast %c0_i32_14 : i32 to vector<1x1024xi32>
    %33 = arith.cmpi sge, %24, %32 : vector<1x1024xi32>
    %c32_i32 = arith.constant 32 : i32
    %34 = vector.broadcast %c32_i32 : i32 to vector<1x1024xi32>
    %35 = arith.cmpi slt, %24, %34 : vector<1x1024xi32>
    %36 = arith.andi %33, %35 : vector<1x1024xi1>
    %cst_15 = arith.constant 0.000000e+00 : f32
    %37 = vector.broadcast %cst_15 : f32 to vector<1x1024xf32>
    %38 = arith.select %36, %20, %37 : vector<1x1024xi1>, vector<1x1024xf32>
    %c0_i32_16 = arith.constant 0 : i32
    %39 = vector.broadcast %c0_i32_16 : i32 to vector<1x1024xi32>
    %40 = arith.cmpi sge, %27, %39 : vector<1x1024xi32>
    %c32_i32_17 = arith.constant 32 : i32
    %41 = vector.broadcast %c32_i32_17 : i32 to vector<1x1024xi32>
    %42 = arith.cmpi slt, %27, %41 : vector<1x1024xi32>
    %43 = arith.andi %40, %42 : vector<1x1024xi1>
    %cst_18 = arith.constant 0.000000e+00 : f32
    %44 = vector.broadcast %cst_18 : f32 to vector<1x1024xf32>
    %45 = arith.select %43, %18, %44 : vector<1x1024xi1>, vector<1x1024xf32>
    %c0_i32_19 = arith.constant 0 : i32
    %46 = vector.broadcast %c0_i32_19 : i32 to vector<1x1024xi32>
    %47 = arith.cmpi sge, %25, %46 : vector<1x1024xi32>
    %c32_i32_20 = arith.constant 32 : i32
    %48 = vector.broadcast %c32_i32_20 : i32 to vector<1x1024xi32>
    %49 = arith.cmpi slt, %25, %48 : vector<1x1024xi32>
    %50 = arith.andi %47, %49 : vector<1x1024xi1>
    %cst_21 = arith.constant 0.000000e+00 : f32
    %51 = vector.broadcast %cst_21 : f32 to vector<1x1024xf32>
    %52 = arith.select %50, %23, %51 : vector<1x1024xi1>, vector<1x1024xf32>
    %c0_i32_22 = arith.constant 0 : i32
    %53 = vector.broadcast %c0_i32_22 : i32 to vector<1x1024xi32>
    %54 = arith.cmpi sge, %29, %53 : vector<1x1024xi32>
    %c32_i32_23 = arith.constant 32 : i32
    %55 = vector.broadcast %c32_i32_23 : i32 to vector<1x1024xi32>
    %56 = arith.cmpi slt, %29, %55 : vector<1x1024xi32>
    %57 = arith.andi %54, %56 : vector<1x1024xi1>
    %cst_24 = arith.constant 0.000000e+00 : f32
    %58 = vector.broadcast %cst_24 : f32 to vector<1x1024xf32>
    %59 = arith.select %57, %21, %58 : vector<1x1024xi1>, vector<1x1024xf32>
    %60 = vector.broadcast %24 : vector<1x1024xi32> to vector<32x1024xi32>
    %61 = arith.cmpi eq, %30, %60 : vector<32x1024xi32>
    %62 = arith.extui %61 : vector<32x1024xi1> to vector<32x1024xi32>
    %63 = arith.sitofp %62 : vector<32x1024xi32> to vector<32x1024xf32>
    %64 = vector.broadcast %38 : vector<1x1024xf32> to vector<32x1024xf32>
    %65 = arith.mulf %64, %63 : vector<32x1024xf32>
    %66 = vector.broadcast %27 : vector<1x1024xi32> to vector<32x1024xi32>
    %67 = arith.cmpi eq, %30, %66 : vector<32x1024xi32>
    %68 = arith.extui %67 : vector<32x1024xi1> to vector<32x1024xi32>
    %69 = arith.sitofp %68 : vector<32x1024xi32> to vector<32x1024xf32>
    %70 = vector.broadcast %45 : vector<1x1024xf32> to vector<32x1024xf32>
    %71 = arith.mulf %70, %69 : vector<32x1024xf32>
    %72 = arith.addf %65, %71 : vector<32x1024xf32>
    %73 = vector.broadcast %25 : vector<1x1024xi32> to vector<32x1024xi32>
    %74 = arith.cmpi eq, %31, %73 : vector<32x1024xi32>
    %75 = arith.extui %74 : vector<32x1024xi1> to vector<32x1024xi32>
    %76 = arith.sitofp %75 : vector<32x1024xi32> to vector<32x1024xf32>
    %77 = vector.broadcast %52 : vector<1x1024xf32> to vector<32x1024xf32>
    %78 = arith.mulf %77, %76 : vector<32x1024xf32>
    %79 = vector.broadcast %29 : vector<1x1024xi32> to vector<32x1024xi32>
    %80 = arith.cmpi eq, %31, %79 : vector<32x1024xi32>
    %81 = arith.extui %80 : vector<32x1024xi1> to vector<32x1024xi32>
    %82 = arith.sitofp %81 : vector<32x1024xi32> to vector<32x1024xf32>
    %83 = vector.broadcast %59 : vector<1x1024xf32> to vector<32x1024xf32>
    %84 = arith.mulf %83, %82 : vector<32x1024xf32>
    %85 = arith.addf %78, %84 : vector<32x1024xf32>
    %c0_25 = arith.constant 0 : index
    %c0_26 = arith.constant 0 : index
    %c0_27 = arith.constant 0 : index
    %86 = vector.load %arg6[%c0_25, %c0_26, %c0_27] : memref<1x96x32xf32, #tpu.memory_space<vmem>>, vector<1x96x32xf32>
    %87 = vector.shape_cast %86 : vector<1x96x32xf32> to vector<96x32xf32>
    %cst_28 = arith.constant dense<0.000000e+00> : vector<96x1024xf32>
    %88 = tpu.matmul %87, %72, %cst_28 {dimension_numbers = #tpu.dot_dimension_numbers<[1], [0], [0], [1], [0, 0, 1, 1], [], []>} : vector<96x32xf32>, vector<32x1024xf32>, vector<96x1024xf32> -> vector<96x1024xf32>
    %c0_29 = arith.constant 0 : index
    %c0_30 = arith.constant 0 : index
    %c0_31 = arith.constant 0 : index
    %89 = vector.load %arg7[%c0_29, %c0_30, %c0_31] : memref<1x3x1024xf32, #tpu.memory_space<vmem>>, vector<1x3x1024xf32>
    %90 = vector.shape_cast %89 : vector<1x3x1024xf32> to vector<3x1024xf32>
    %91 = vector.extract_strided_slice %88 {offsets = [0, 0], sizes = [32, 1024], strides = [1, 1]} : vector<96x1024xf32> to vector<32x1024xf32>
    %92 = arith.mulf %91, %85 : vector<32x1024xf32>
    %cst_32 = arith.constant dense<0.000000e+00> : vector<1024xf32>
    %93 = vector.multi_reduction <add>, %92, %cst_32 [0] : vector<32x1024xf32> to vector<1024xf32>
    %94 = vector.shape_cast %93 : vector<1024xf32> to vector<1x1024xf32>
    %95 = vector.extract_strided_slice %90 {offsets = [0, 0], sizes = [1, 1024], strides = [1, 1]} : vector<3x1024xf32> to vector<1x1024xf32>
    %96 = arith.subf %94, %95 : vector<1x1024xf32>
    %97 = arith.mulf %96, %96 : vector<1x1024xf32>
    %cst_33 = arith.constant 1.000000e-18 : f32
    %98 = vector.broadcast %cst_33 : f32 to vector<1x1024xf32>
    %99 = arith.addf %97, %98 : vector<1x1024xf32>
    %100 = math.sqrt %99 : vector<1x1024xf32>
    %101 = math.sqrt %100 : vector<1x1024xf32>
    %102 = arith.mulf %101, %5 : vector<1x1024xf32>
    %103 = vector.shape_cast %102 : vector<1x1024xf32> to vector<1x1x1024xf32>
    %cst_34 = arith.constant dense<0.000000e+00> : vector<1xf32>
    %104 = vector.multi_reduction <add>, %103, %cst_34 [1, 2] : vector<1x1x1024xf32> to vector<1xf32>
    %105 = vector.shape_cast %104 : vector<1xf32> to vector<1x1x1xf32>
    %106 = vector.extract %105[0, 0, 0] : f32 from vector<1x1x1xf32>
    %cst_35 = arith.constant 0.000000e+00 : f32
    %107 = arith.addf %cst_35, %106 : f32
    %108 = vector.extract_strided_slice %88 {offsets = [32, 0], sizes = [32, 1024], strides = [1, 1]} : vector<96x1024xf32> to vector<32x1024xf32>
    %109 = arith.mulf %108, %85 : vector<32x1024xf32>
    %cst_36 = arith.constant dense<0.000000e+00> : vector<1024xf32>
    %110 = vector.multi_reduction <add>, %109, %cst_36 [0] : vector<32x1024xf32> to vector<1024xf32>
    %111 = vector.shape_cast %110 : vector<1024xf32> to vector<1x1024xf32>
    %112 = vector.extract_strided_slice %90 {offsets = [1, 0], sizes = [1, 1024], strides = [1, 1]} : vector<3x1024xf32> to vector<1x1024xf32>
    %113 = arith.subf %111, %112 : vector<1x1024xf32>
    %114 = arith.mulf %113, %113 : vector<1x1024xf32>
    %cst_37 = arith.constant 1.000000e-18 : f32
    %115 = vector.broadcast %cst_37 : f32 to vector<1x1024xf32>
    %116 = arith.addf %114, %115 : vector<1x1024xf32>
    %117 = math.sqrt %116 : vector<1x1024xf32>
    %118 = math.sqrt %117 : vector<1x1024xf32>
    %119 = arith.mulf %118, %5 : vector<1x1024xf32>
    %120 = vector.shape_cast %119 : vector<1x1024xf32> to vector<1x1x1024xf32>
    %cst_38 = arith.constant dense<0.000000e+00> : vector<1xf32>
    %121 = vector.multi_reduction <add>, %120, %cst_38 [1, 2] : vector<1x1x1024xf32> to vector<1xf32>
    %122 = vector.shape_cast %121 : vector<1xf32> to vector<1x1x1xf32>
    %123 = vector.extract %122[0, 0, 0] : f32 from vector<1x1x1xf32>
    %124 = arith.addf %107, %123 : f32
    %125 = vector.extract_strided_slice %88 {offsets = [64, 0], sizes = [32, 1024], strides = [1, 1]} : vector<96x1024xf32> to vector<32x1024xf32>
    %126 = arith.mulf %125, %85 : vector<32x1024xf32>
    %cst_39 = arith.constant dense<0.000000e+00> : vector<1024xf32>
    %127 = vector.multi_reduction <add>, %126, %cst_39 [0] : vector<32x1024xf32> to vector<1024xf32>
    %128 = vector.shape_cast %127 : vector<1024xf32> to vector<1x1024xf32>
    %129 = vector.extract_strided_slice %90 {offsets = [2, 0], sizes = [1, 1024], strides = [1, 1]} : vector<3x1024xf32> to vector<1x1024xf32>
    %130 = arith.subf %128, %129 : vector<1x1024xf32>
    %131 = arith.mulf %130, %130 : vector<1x1024xf32>
    %cst_40 = arith.constant 1.000000e-18 : f32
    %132 = vector.broadcast %cst_40 : f32 to vector<1x1024xf32>
    %133 = arith.addf %131, %132 : vector<1x1024xf32>
    %134 = math.sqrt %133 : vector<1x1024xf32>
    %135 = math.sqrt %134 : vector<1x1024xf32>
    %136 = arith.mulf %135, %5 : vector<1x1024xf32>
    %137 = vector.shape_cast %136 : vector<1x1024xf32> to vector<1x1x1024xf32>
    %cst_41 = arith.constant dense<0.000000e+00> : vector<1xf32>
    %138 = vector.multi_reduction <add>, %137, %cst_41 [1, 2] : vector<1x1x1024xf32> to vector<1xf32>
    %139 = vector.shape_cast %138 : vector<1xf32> to vector<1x1x1xf32>
    %140 = vector.extract %139[0, 0, 0] : f32 from vector<1x1x1xf32>
    %141 = arith.addf %124, %140 : f32
    %c0_42 = arith.constant 0 : index
    %c0_43 = arith.constant 0 : index
    %c0_44 = arith.constant 0 : index
    %c0_45 = arith.constant 0 : index
    %142 = vector.load %arg8[%c0_42, %c0_43, %c0_44, %c0_45] : memref<1x1x1x1xf32, #tpu.memory_space<vmem>>, vector<1x1x1x1xf32>
    %cst_46 = arith.constant 0.333333343 : f32
    %143 = arith.mulf %141, %cst_46 : f32
    %144 = vector.broadcast %143 : f32 to vector<1x1x1x1xf32>
    %145 = arith.addf %142, %144 : vector<1x1x1x1xf32>
    %c0_47 = arith.constant 0 : index
    %c0_48 = arith.constant 0 : index
    %c0_49 = arith.constant 0 : index
    %c0_50 = arith.constant 0 : index
    %146 = vector.load %arg8[%c0_47, %c0_48, %c0_49, %c0_50] : memref<1x1x1x1xf32, #tpu.memory_space<vmem>>, vector<1x1x1x1xf32>
    tpu.vector_store %arg8[%c0_47, %c0_48, %c0_49, %c0_50], %145 {strides = array<i32>} : memref<1x1x1x1xf32, #tpu.memory_space<vmem>>, vector<1x1x1x1xf32>,
    return
  }
  func.func @transform_0(%arg0: i32, %arg1: i32, %arg2: i32) -> (i32, i32, i32, i32) {
    %c0_i32 = arith.constant 0 : i32
    %c0_i32_0 = arith.constant 0 : i32
    %c0_i32_1 = arith.constant 0 : i32
    %c0_i32_2 = arith.constant 0 : i32
    return %arg0, %c0_i32, %c0_i32_0, %c0_i32_1 : i32, i32, i32, i32
  }
  func.func @transform_1(%arg0: i32, %arg1: i32, %arg2: i32) -> (i32, i32, i32) {
    %c1_i32 = arith.constant 1 : i32
    %0 = arith.muli %arg1, %c1_i32 : i32
    %1 = arith.addi %0, %arg2 : i32
    %c0_i32 = arith.constant 0 : i32
    %c0_i32_0 = arith.constant 0 : i32
    return %arg0, %c0_i32, %1 : i32, i32, i32
  }
  func.func @transform_2(%arg0: i32, %arg1: i32, %arg2: i32) -> (i32, i32) {
    %c1_i32 = arith.constant 1 : i32
    %0 = arith.muli %arg1, %c1_i32 : i32
    %1 = arith.addi %0, %arg2 : i32
    %c0_i32 = arith.constant 0 : i32
    %c0_i32_0 = arith.constant 0 : i32
    return %c0_i32, %1 : i32, i32
  }
  func.func @transform_3(%arg0: i32, %arg1: i32, %arg2: i32) -> (i32, i32, i32) {
    %c0_i32 = arith.constant 0 : i32
    %c0_i32_0 = arith.constant 0 : i32
    %c0_i32_1 = arith.constant 0 : i32
    return %arg0, %c0_i32, %c0_i32_0 : i32, i32, i32
  }
  func.func @transform_4(%arg0: i32, %arg1: i32, %arg2: i32) -> (i32, i32, i32) {
    %c1_i32 = arith.constant 1 : i32
    %0 = arith.muli %arg1, %c1_i32 : i32
    %1 = arith.addi %0, %arg2 : i32
    %c0_i32 = arith.constant 0 : i32
    %c0_i32_0 = arith.constant 0 : i32
    return %arg0, %c0_i32, %1 : i32, i32, i32
  }
  func.func @transform_5(%arg0: i32, %arg1: i32, %arg2: i32) -> (i32, i32, i32, i32) {
    %c0_i32 = arith.constant 0 : i32
    %c0_i32_0 = arith.constant 0 : i32
    %c0_i32_1 = arith.constant 0 : i32
    return %arg0, %arg1, %c0_i32, %c0_i32_0 : i32, i32, i32, i32
  }
  func.func @transform_6(%arg0: i32, %arg1: i32, %arg2: i32) -> (i32, i32, i32, i32) {
    %c0_i32 = arith.constant 0 : i32
    %c0_i32_0 = arith.constant 0 : i32
    %c0_i32_1 = arith.constant 0 : i32
    return %arg0, %arg1, %c0_i32, %c0_i32_0 : i32, i32, i32, i32
  }
}

</mosaic_0001>

<bundles_post_ra>
// kernel: tpu_custom_call.1
= control target key start
LH: loop header
LB: loop body
LE: loop exit
PB: predicated region body
PF: predicated region fallthrough
CT: control target
= control target key end

     0   :  { %s4237_s21 = smov 0   ;;  %s4239_s22 = smov 0   ;;  %s7123_s0 = inlined_call_operand.vmem [shape: f32[2,2,32,32], index: 0, kind: input, shape index: {}]   ;;  %s7124_s1 = inlined_call_operand.vmem [shape: f32[2,2,1024], index: 1, kind: input, shape index: {}]   ;;  %s7125_s2 = inlined_call_operand.vmem [shape: f32[3,1024], index: 2, kind: input, shape index: {}]   ;;  %s7126_s3 = inlined_call_operand.vmem [shape: f32[2,96,32], index: 3, kind: input, shape index: {}]   ;;  %s7127_s4 = inlined_call_operand.vmem [shape: f32[2,3,1024], index: 4, kind: input, shape index: {}]   ;;  %s7128_s5 = inlined_call_operand.vmem [shape: f32[2,1,1,1], index: 5, kind: output, shape index: {0}]   ;;  %s7129_s6 = inlined_call_operand.vmem [shape: f32[2,1,1,1], index: 6, kind: output, shape index: {1}]  }
   0x1   :  { %s4241_s23 = smov 0  }
   0x2 LB: > { %s36_s24 = sadd.s32 1, %s4193_s22  ;;  %p3705_p0 = scmp.ge.s32.totalorder %s4197_s23, 1  ;;  %s4197_s23 = sphi %s4241_s23, %s17_s23   ;;  %s4193_s22 = sphi %s4239_s22, %s7467_s22   ;;  %s4189_s21 = sphi %s4237_s21, %s7466_s21  }
   0x3   : > { %p38_p1 = scmp.ge.s32.totalorder %s36_s24, 2  ;;  %p305_p2 = scmp.lt.s32.totalorder %s4197_s23, 3 }
   0x5   : > { %s7469_s24 = smov (%p38_p1, %s36_s24), 0  ;;  %p306_p3 = pnand %p3705_p0, %p305_p2 }
   0x7   : > { %309 = sbr.rel (%p306_p3) target bundleno = 759 (0x2f7), region = 40 }
   0xe   : > { %p373_p4 = scmp.lt.s32.totalorder %s4189_s21, 1  ;;  %v7155_v0 = vmov 0.0   ;;  %v1030_v1 = vld [vmem:[%s7125_s2] ss:$4 sm:$0xff]  ;;  %v1052_v2 = vlaneseq  ;;  %s4200_s11 = smov 127  }
   0xf   : > { %2054 = vmatprep.mubr.f32.mxu0 %v7155_v0  ;;  %2191 = vmatprep.mubr.f32.mxu1 %v7155_v0  ;;  %s4201_s16 = smov 97  }
  0x10   : > { %s7471_s21 = smov (!%p373_p4, %s4189_s21), 1  ;;  %v4269_v6 = vshrl.u32 %v1052_v2, 7 }
  0x11   : > { %s3895_s25 = sshll.u32 %s7471_s21, 4  ;;  %s3894_s7 = sshll.u32 %s7471_s21, 6 }
  0x12   : > { %s4266_s30 = scalar_lea.vmem %s7124_s1, %s3895_s25  ;;  %v4272_v10 = vsub.s32 1, %v4269_v6  ;;  %v4275_v11 = vsub.s32 3, %v4269_v6  ;;  %v4278_v12 = vsub.s32 0, %v4269_v6  ;;  %v4281_v13 = vsub.s32 2, %v4269_v6  ;;  %s4399_s10 = scalar_lea.vmem %s7123_s0, %s3894_s7 }
  0x13   : > { %v1035_v3 = vld [vmem:[%s4266_s30] ss:$2 sm:$0xff]  ;;  %v4284_v14 = vsub.s32 5, %v4269_v6  ;;  %v4289_v17 = vadd.s32 8, %v4269_v6  ;;  %v4292_v18 = vadd.s32 16, %v4269_v6  ;;  %v4295_v19 = vadd.s32 24, %v4269_v6  ;;  %s7101_s7 = scalar_lea.vmem %s7128_s5, %s7471_s21  ;;  %s426_s17 = scalar_lea.vmem %s7129_s6, %s7471_s21 }
  0x14   : > { %v1038_v4 = vadd.f32 %v1035_v3, %v1030_v1  ;;  %7229 = vst [vmem:[#allocation2_spill] sm:$0xff] %v4272_v10  ;;  %7230 = vst [vmem:[#allocation3_spill] sm:$0xff] %v4275_v11  ;;  %v4298_v20 = vsub.s32 4, %v4269_v6  ;;  %v4301_v21 = vsub.s32 7, %v4269_v6  ;;  %v4304_v22 = vsub.s32 6, %v4269_v6  ;;  %v4406_v57 = vld [vmem:[%s4399_s10] sm:$0xff] }
  0x15   : > { %7231 = vst [vmem:[#allocation4_spill] sm:$0xff] %v4278_v12  ;;  %7232 = vst [vmem:[#allocation5_spill] sm:$0xff] %v4281_v13  ;;  %v4409_v58 = vld [vmem:[%s4399_s10 + $0x10] sm:$0xff]  ;;  %686 = vrot.lane.b32.xlu0 %v4406_v57, %s4200_s11  ;;  %s3929_s12 = smul.u32 96, %s7471_s21  ;;  %s3896_s19 = sshll.u32 %s7471_s21, 5 }
  0x16   : > { %v1039_v5 = vmul.f32 0.96875, %v1038_v4  ;;  %7233 = vst [vmem:[#allocation6_spill] sm:$0xff] %v4284_v14  ;;  %7234 = vst [vmem:[#allocation7_spill] sm:$0xff] %v4298_v20  ;;  %690 = vrot.lane.b32.xlu1 %v4409_v58, %s4200_s11  ;;  %s5371_s26 = scalar_lea.vmem %s7127_s4, %s3896_s19 }
  0x17   : > { %7235 = vst [vmem:[#allocation8_spill] sm:$0xff] %v4301_v21  ;;  %7236 = vst [vmem:[#allocation9_spill] sm:$0xff] %v4304_v22  ;;  %s4561_s15 = scalar_lea.vmem %s7126_s3, %s3929_s12 }
  0x18   : > { %v1042_v7 = vfloor.f32 %v1039_v5 }
  0x1a   : > { %v1044_v8 = vsub.f32 %v1039_v5, %v1042_v7  ;;  %v3938_v9 = vtrunc.f32 %v1042_v7 }
  0x1c   : > { %v1045_v15 = vsub.f32 1.0, %v1044_v8  ;;  %v4286_v16 = vcvt.f32.s32 %v3938_v9  ;;  %v4441_v9 = vld [vmem:[%s4399_s10 + $0x8] sm:$0xff] }
  0x1d   : > { %688 = vrot.lane.b32.xlu0 %v4441_v9, %s4200_s11 }
  0x1e   : > { %v4307_v23 = vadd.s32 1, %v4286_v16  ;;  %vm1057_vm0 = vcmp.ge.s32.totalorder %v4286_v16, 0  ;;  %vm1058_vm1 = vcmp.lt.s32.totalorder %v4286_v16, 32  ;;  %v4313_v24 = vrot.slane %v4286_v16, %v4272_v10 }
  0x1f   : > { %vm1059_vm2 = vmand %vm1057_vm0, %vm1058_vm1  ;;  %v4317_v25 = vrot.slane %v4286_v16, %v4275_v11  ;;  %v4321_v26 = vrot.slane %v4286_v16, %v4278_v12  ;;  %v4325_v27 = vrot.slane %v4286_v16, %v4281_v13  ;;  %v4329_v28 = vrot.slane %v4286_v16, %v4284_v14 }
  0x20   : > { %v4331_v29 = vsel %vm1059_vm2, %v1045_v15, 0.0  ;;  %vm1061_vm3 = vcmp.ge.s32.totalorder %v4307_v23, 0  ;;  %vm1062_vm4 = vcmp.lt.s32.totalorder %v4307_v23, 32  ;;  %vm1106_vm5 = vcmp.eq.s32.totalorder %v4269_v6, %v4313_v24 }
  0x21   : > { %vm1063_vm6 = vmand %vm1061_vm3, %vm1062_vm4  ;;  %vm1114_vm7 = vcmp.eq.s32.totalorder %v4289_v17, %v4313_v24  ;;  %v3717_v30 = vsel %vm1106_vm5, 1.0, %v7155_v0  ;;  %v4342_v31 = vrot.slane %v4331_v29, %v4272_v10  ;;  %v4346_v32 = vrot.slane %v4307_v23, %v4272_v10 }
  0x22   : > { %v4348_v33 = vsel %vm1063_vm6, %v1044_v8, 0.0  ;;  %v3725_v34 = vsel %vm1114_vm7, 1.0, %v7155_v0  ;;  %vm1108_vm8 = vcmp.eq.s32.totalorder %v4269_v6, %v4317_v25  ;;  %vm1116_vm9 = vcmp.eq.s32.totalorder %v4289_v17, %v4317_v25 }
  0x23   : > { %v1243_v35 = vmul.f32 %v3717_v30, %v4342_v31  ;;  %v1251_v36 = vmul.f32 %v3725_v34, %v4342_v31  ;;  %vm1307_vm10 = vcmp.eq.s32.totalorder %v4269_v6, %v4346_v32  ;;  %vm1315_vm11 = vcmp.eq.s32.totalorder %v4289_v17, %v4346_v32 }
  0x24   : > { %v3749_v37 = vsel %vm1307_vm10, 1.0, %v7155_v0  ;;  %v3757_v38 = vsel %vm1315_vm11, 1.0, %v7155_v0  ;;  %v4365_v39 = vrot.slane %v4348_v33, %v4272_v10  ;;  %v3719_v40 = vsel %vm1108_vm8, 1.0, %v7155_v0 }
  0x25   : > { %v3727_v41 = vsel %vm1116_vm9, 1.0, %v7155_v0  ;;  %v4371_v42 = vrot.slane %v4331_v29, %v4275_v11  ;;  %v4375_v43 = vrot.slane %v4307_v23, %v4275_v11  ;;  %v4379_v44 = vrot.slane %v4348_v33, %v4275_v11 }
  0x26   : > { %v1444_v45 = vmul.f32 %v3749_v37, %v4365_v39  ;;  %v1452_v46 = vmul.f32 %v3757_v38, %v4365_v39  ;;  %vm1105_vm12 = vcmp.eq.s32.totalorder %v4269_v6, %v4321_v26  ;;  %vm1113_vm13 = vcmp.eq.s32.totalorder %v4289_v17, %v4321_v26  ;;  %v4465_v38 = vld [vmem:[%s4399_s10 + $0x18] sm:$0xff] }
  0x27   : > { %v1245_v47 = vmul.f32 %v3719_v40, %v4371_v42  ;;  %v1253_v48 = vmul.f32 %v3727_v41, %v4371_v42  ;;  %vm1309_vm14 = vcmp.eq.s32.totalorder %v4269_v6, %v4375_v43  ;;  %vm1317_vm15 = vcmp.eq.s32.totalorder %v4289_v17, %v4375_v43  ;;  %692 = vrot.lane.b32.xlu1 %v4465_v38, %s4200_s11 }
  0x28   : > { %v1476_v49 = vadd.f32 %v1444_v45, %v1243_v35  ;;  %v1484_v50 = vadd.f32 %v1452_v46, %v1251_v36  ;;  %v3751_v51 = vsel %vm1309_vm14, 1.0, %v7155_v0  ;;  %v3759_v52 = vsel %vm1317_vm15, 1.0, %v7155_v0 }
  0x29   : > { %v1446_v53 = vmul.f32 %v3751_v51, %v4379_v44  ;;  %v1454_v54 = vmul.f32 %v3759_v52, %v4379_v44  ;;  %v3716_v55 = vsel %vm1105_vm12, 1.0, %v7155_v0  ;;  %v3724_v56 = vsel %vm1113_vm13, 1.0, %v7155_v0 }
  0x2a   : > { %v3897_v59 = vpack.c.bf16 %v1484_v50, %v1476_v49  ;;  %v4413_v60 = vrot.slane %v4331_v29, %v4278_v12  ;;  %v4417_v61 = vrot.slane %v4307_v23, %v4278_v12  ;;  %v4421_v62 = vrot.slane %v4348_v33, %v4278_v12 }
  0x2b   : > { %v1478_v63 = vadd.f32 %v1446_v53, %v1245_v47  ;;  %v1486_v1 = vadd.f32 %v1454_v54, %v1253_v48  ;;  %vm1107_vm0 = vcmp.eq.s32.totalorder %v4269_v6, %v4325_v27  ;;  %vm1115_vm1 = vcmp.eq.s32.totalorder %v4289_v17, %v4325_v27  ;;  %v4478_v48 = vld [vmem:[%s4399_s10 + $0x20] sm:$0xff] }
  0x2c   : > { %3898 = vmatprep.subr.bf16.mxu0 %v3897_v59  ;;  %v1242_v2 = vmul.f32 %v3716_v55, %v4413_v60  ;;  %v1250_v3 = vmul.f32 %v3724_v56, %v4413_v60  ;;  %vm1306_vm2 = vcmp.eq.s32.totalorder %v4269_v6, %v4417_v61  ;;  %vm1314_vm3 = vcmp.eq.s32.totalorder %v4289_v17, %v4417_v61  ;;  %v4491_v56 = vld [vmem:[%s4399_s10 + $0x28] sm:$0xff] }
  0x2d   : > { %v3905_v4 = vpack.c.bf16 %v1486_v1, %v1478_v63  ;;  %v3748_v5 = vsel %vm1306_vm2, 1.0, %v7155_v0  ;;  %v3756_v7 = vsel %vm1314_vm3, 1.0, %v7155_v0  ;;  %v3718_v8 = vsel %vm1107_vm0, 1.0, %v7155_v0  ;;  %694 = vrot.lane.b32.xlu0 %v4478_v48, %s4200_s11  ;;  %696 = vrot.lane.b32.xlu1 %v4491_v56, %s4200_s11 }
  0x2e   : > { %v1443_v15 = vmul.f32 %v3748_v5, %v4421_v62  ;;  %v1451_v30 = vmul.f32 %v3756_v7, %v4421_v62  ;;  %v3726_v34 = vsel %vm1115_vm1, 1.0, %v7155_v0  ;;  %v4448_v35 = vrot.slane %v4331_v29, %v4281_v13 }
  0x2f   : > { %3906 = vmatprep.subr.bf16.mxu1 %v3905_v4  ;;  %v4454_v36 = vrot.slane %v4307_v23, %v4281_v13  ;;  %v4458_v37 = vrot.slane %v4348_v33, %v4281_v13  ;;  %vm1122_vm4 = vcmp.eq.s32.totalorder %v4292_v18, %v4313_v24  ;;  %vm1130_vm5 = vcmp.eq.s32.totalorder %v4295_v19, %v4313_v24 }
  0x30   : > { %v1475_v40 = vadd.f32 %v1443_v15, %v1242_v2  ;;  %v1483_v41 = vadd.f32 %v1451_v30, %v1250_v3  ;;  %v1244_v45 = vmul.f32 %v3718_v8, %v4448_v35  ;;  %v1252_v46 = vmul.f32 %v3726_v34, %v4448_v35  ;;  %v4505_v3 = vld [vmem:[%s4399_s10 + $0x30] sm:$0xff]  ;;  %v4517_v30 = vld [vmem:[%s4399_s10 + $0x38] sm:$0xff] }
  0x31   : > { %vm1308_vm6 = vcmp.eq.s32.totalorder %v4269_v6, %v4454_v36  ;;  %vm1316_vm7 = vcmp.eq.s32.totalorder %v4289_v17, %v4454_v36  ;;  %v3733_v24 = vsel %vm1122_vm4, 1.0, %v7155_v0  ;;  %v3741_v47 = vsel %vm1130_vm5, 1.0, %v7155_v0  ;;  %698 = vrot.lane.b32.xlu0 %v4505_v3, %s4200_s11  ;;  %700 = vrot.lane.b32.xlu1 %v4517_v30, %s4200_s11 }
  0x32   : > { %v3899_v49 = vpack.c.bf16 %v1483_v41, %v1475_v40  ;;  %v3750_v50 = vsel %vm1308_vm6, 1.0, %v7155_v0  ;;  %v3758_v51 = vsel %vm1316_vm7, 1.0, %v7155_v0  ;;  %v1259_v52 = vmul.f32 %v3733_v24, %v4342_v31 }
  0x33   : > { %v1445_v53 = vmul.f32 %v3750_v50, %v4458_v37  ;;  %v1453_v54 = vmul.f32 %v3758_v51, %v4458_v37  ;;  %v1267_v55 = vmul.f32 %v3741_v47, %v4342_v31  ;;  %vm1323_vm8 = vcmp.eq.s32.totalorder %v4292_v18, %v4346_v32 }
  0x34   : > { %3900 = vmatpush1.bf16.msra.mxu0 %v3899_v49  ;;  %vm1331_vm9 = vcmp.eq.s32.totalorder %v4295_v19, %v4346_v32  ;;  %v3765_v59 = vsel %vm1323_vm8, 1.0, %v7155_v0  ;;  %vm1124_vm10 = vcmp.eq.s32.totalorder %v4292_v18, %v4317_v25  ;;  %vm1132_vm11 = vcmp.eq.s32.totalorder %v4295_v19, %v4317_v25 }
  0x35   : > { %v1477_v31 = vadd.f32 %v1445_v53, %v1244_v45  ;;  %v1485_v63 = vadd.f32 %v1453_v54, %v1252_v46  ;;  %v3773_v1 = vsel %vm1331_vm9, 1.0, %v7155_v0  ;;  %v1460_v2 = vmul.f32 %v3765_v59, %v4365_v39 }
  0x36   : > { %v1468_v32 = vmul.f32 %v3773_v1, %v4365_v39  ;;  %v3735_v4 = vsel %vm1124_vm10, 1.0, %v7155_v0  ;;  %v3743_v5 = vsel %vm1132_vm11, 1.0, %v7155_v0  ;;  %vm1325_vm12 = vcmp.eq.s32.totalorder %v4292_v18, %v4375_v43 }
  0x37   : > { %v3907_v25 = vpack.c.bf16 %v1485_v63, %v1477_v31  ;;  %v1492_v7 = vadd.f32 %v1460_v2, %v1259_v52  ;;  %v1261_v8 = vmul.f32 %v3735_v4, %v4371_v42  ;;  %v1269_v15 = vmul.f32 %v3743_v5, %v4371_v42 }
  0x38   : > { %v1500_v34 = vadd.f32 %v1468_v32, %v1267_v55  ;;  %vm1333_vm13 = vcmp.eq.s32.totalorder %v4295_v19, %v4375_v43  ;;  %v3767_v39 = vsel %vm1325_vm12, 1.0, %v7155_v0  ;;  %vm1121_vm14 = vcmp.eq.s32.totalorder %v4292_v18, %v4321_v26 }
  0x39   : > { %3908 = vmatpush1.bf16.msra.mxu1 %v3907_v25  ;;  %v3775_v40 = vsel %vm1333_vm13, 1.0, %v7155_v0  ;;  %v1462_v41 = vmul.f32 %v3767_v39, %v4379_v44  ;;  %vm1129_vm15 = vcmp.eq.s32.totalorder %v4295_v19, %v4321_v26  ;;  %v3732_v42 = vsel %vm1121_vm14, 1.0, %v7155_v0 }
  0x3a   : > { %v3901_v43 = vpack.c.bf16 %v1500_v34, %v1492_v7  ;;  %v1470_v45 = vmul.f32 %v3775_v40, %v4379_v44  ;;  %v3740_v46 = vsel %vm1129_vm15, 1.0, %v7155_v0  ;;  %v1258_v24 = vmul.f32 %v3732_v42, %v4413_v60 }
  0x3b   : > { %v1494_v47 = vadd.f32 %v1462_v41, %v1261_v8  ;;  %v1266_v49 = vmul.f32 %v3740_v46, %v4413_v60  ;;  %vm1322_vm0 = vcmp.eq.s32.totalorder %v4292_v18, %v4417_v61  ;;  %vm1330_vm1 = vcmp.eq.s32.totalorder %v4295_v19, %v4417_v61 }
  0x3c   : > { %vm608_vm2 = vcmask 261120   ;;  %3902 = vmatprep.subr.bf16.mxu0 %v3901_v43  ;;  %v1502_v26 = vadd.f32 %v1470_v45, %v1269_v15  ;;  %v3764_v50 = vsel %vm1322_vm0, 1.0, %v7155_v0  ;;  %v3772_v44 = vsel %vm1330_vm1, 1.0, %v7155_v0 }
  0x3d   : > { %vm1123_vm3 = vcmp.eq.s32.totalorder %v4292_v18, %v4325_v27  ;;  %v1459_v51 = vmul.f32 %v3764_v50, %v4421_v62  ;;  %v1467_v60 = vmul.f32 %v3772_v44, %v4421_v62  ;;  %vm1131_vm4 = vcmp.eq.s32.totalorder %v4295_v19, %v4325_v27  ;;  %v4623_v50 = vld [vmem:[%s4561_s15 + $0x8] sm:$0xff] }
  0x3e   : > { %v3734_v61 = vsel %vm1123_vm3, 1.0, %v7155_v0  ;;  %v3909_v52 = vpack.c.bf16 %v1502_v26, %v1494_v47  ;;  %v3742_v53 = vsel %vm1131_vm4, 1.0, %v7155_v0  ;;  %vm1324_vm5 = vcmp.eq.s32.totalorder %v4292_v18, %v4454_v36 }
  0x3f   : > { %v1260_v54 = vmul.f32 %v3734_v61, %v4448_v35  ;;  %v1491_v55 = vadd.f32 %v1459_v51, %v1258_v24  ;;  %v1499_v59 = vadd.f32 %v1467_v60, %v1266_v49  ;;  %v1268_v31 = vmul.f32 %v3742_v53, %v4448_v35 }
  0x40   : > { %vm1332_vm6 = vcmp.eq.s32.totalorder %v4295_v19, %v4454_v36  ;;  %3910 = vmatprep.subr.bf16.mxu1 %v3909_v52  ;;  %v3766_v27 = vsel %vm1324_vm5, 1.0, %v7155_v0  ;;  %vm1110_vm7 = vcmp.eq.s32.totalorder %v4269_v6, %v4329_v28  ;;  %vm1118_vm8 = vcmp.eq.s32.totalorder %v4289_v17, %v4329_v28 }
  0x41   : > { %v3774_v62 = vsel %vm1332_vm6, 1.0, %v7155_v0  ;;  %v3903_v35 = vpack.c.bf16 %v1499_v59, %v1491_v55  ;;  %v1461_v36 = vmul.f32 %v3766_v27, %v4458_v37  ;;  %v3721_v1 = vsel %vm1110_vm7, 1.0, %v7155_v0 }
  0x42   : > { %v1469_v63 = vmul.f32 %v3774_v62, %v4458_v37  ;;  %v3729_v2 = vsel %vm1118_vm8, 1.0, %v7155_v0  ;;  %v4573_v32 = vrot.slane %v4331_v29, %v4284_v14  ;;  %v4577_v4 = vrot.slane %v4307_v23, %v4284_v14  ;;  %v4584_v37 = vld [vmem:[%s4561_s15] sm:$0xff] }
  0x43   : > { %v4581_v5 = vrot.slane %v4348_v33, %v4284_v14  ;;  %3904 = vmatpush1.bf16.msra.mxu0 %v3903_v35  ;;  %v1493_v25 = vadd.f32 %v1461_v36, %v1260_v54  ;;  %v4588_v8 = vrot.slane %v4286_v16, %v4298_v20  ;;  %v4592_v15 = vrot.slane %v4331_v29, %v4298_v20  ;;  %v4658_v35 = vld [vmem:[%s4561_s15 + $0x10] sm:$0xff] }
  0x44   : > { %v1501_v7 = vadd.f32 %v1469_v63, %v1268_v31  ;;  %v1247_v34 = vmul.f32 %v3721_v1, %v4573_v32  ;;  %v1255_v39 = vmul.f32 %v3729_v2, %v4573_v32  ;;  %vm1311_vm9 = vcmp.eq.s32.totalorder %v4269_v6, %v4577_v4 }
  0x45   : > { %vm1319_vm10 = vcmp.eq.s32.totalorder %v4289_v17, %v4577_v4  ;;  %v3753_v41 = vsel %vm1311_vm9, 1.0, %v7155_v0  ;;  %vm1109_vm11 = vcmp.eq.s32.totalorder %v4269_v6, %v4588_v8  ;;  %vm1117_vm12 = vcmp.eq.s32.totalorder %v4289_v17, %v4588_v8 }
  0x46   : > { %v3911_v40 = vpack.c.bf16 %v1501_v7, %v1493_v25  ;;  %v3761_v42 = vsel %vm1319_vm10, 1.0, %v7155_v0  ;;  %3844 = vmatmul.mubr.msk.f32.vlgmr.msra.gmra.mrb[0].mxu0 %vm608_vm2, %v4584_v37  ;;  %v1448_v43 = vmul.f32 %v3753_v41, %v4581_v5  ;;  %v3720_v46 = vsel %vm1109_vm11, 1.0, %v7155_v0 }
  0x47   : > { %v1456_v45 = vmul.f32 %v3761_v42, %v4581_v5  ;;  %v3728_v24 = vsel %vm1117_vm12, 1.0, %v7155_v0  ;;  %v1246_v47 = vmul.f32 %v3720_v46, %v4592_v15  ;;  %v4615_v49 = vrot.slane %v4307_v23, %v4298_v20  ;;  %2060 = vmatprep.mubr.f32.mxu0 %v7155_v0 }
  0x48   : > { %3912 = vmatpush1.bf16.msra.mxu1 %v3911_v40  ;;  %v4619_v26 = vrot.slane %v4348_v33, %v4298_v20  ;;  %v1480_v44 = vadd.f32 %v1448_v43, %v1247_v34  ;;  %v1254_v60 = vmul.f32 %v3728_v24, %v4592_v15  ;;  %v4628_v61 = vrot.slane %v4286_v16, %v4301_v21 }
  0x49   : > { %v1488_v51 = vadd.f32 %v1456_v45, %v1255_v39  ;;  %vm1310_vm13 = vcmp.eq.s32.totalorder %v4269_v6, %v4615_v49  ;;  %vm1318_vm14 = vcmp.eq.s32.totalorder %v4289_v17, %v4615_v49  ;;  %v4636_v52 = vrot.slane %v4331_v29, %v4301_v21 }
  0x4a   : > { %v4640_v53 = vrot.slane %v4307_v23, %v4301_v21  ;;  %v3752_v55 = vsel %vm1310_vm13, 1.0, %v7155_v0  ;;  %v3760_v59 = vsel %vm1318_vm14, 1.0, %v7155_v0  ;;  %3845 = vmatmul.mubr.msk.f32.gmra.mrb[2].mxu0 %vm608_vm2, %v4623_v50  ;;  %vm1112_vm15 = vcmp.eq.s32.totalorder %v4269_v6, %v4628_v61 }
  0x4b   : > { %3856 = vmatmul.mubr.msk.f32.vlgmr.msra.gmra.mrb[0].mxu1 %vm608_vm2, %v4584_v37  ;;  %v3913_v54 = vpack.c.bf16 %v1488_v51, %v1480_v44  ;;  %v1447_v31 = vmul.f32 %v3752_v55, %v4619_v26  ;;  %v1455_v27 = vmul.f32 %v3760_v59, %v4619_v26  ;;  %vm1120_vm0 = vcmp.eq.s32.totalorder %v4289_v17, %v4628_v61 }
  0x4c   : > { %2197 = vmatprep.mubr.f32.mxu1 %v7155_v0  ;;  %v3723_v62 = vsel %vm1112_vm15, 1.0, %v7155_v0  ;;  %2066 = vmatprep.mubr.f32.mxu0 %v7155_v0  ;;  %v3731_v36 = vsel %vm1120_vm0, 1.0, %v7155_v0  ;;  %vm1313_vm1 = vcmp.eq.s32.totalorder %v4269_v6, %v4640_v53  ;;  %vm1321_vm3 = vcmp.eq.s32.totalorder %v4289_v17, %v4640_v53 }
  0x4d   : > { %3914 = vmatprep.subr.bf16.mxu0 %v3913_v54  ;;  %v1249_v63 = vmul.f32 %v3723_v62, %v4636_v52  ;;  %v1479_v1 = vadd.f32 %v1447_v31, %v1246_v47  ;;  %v1487_v2 = vadd.f32 %v1455_v27, %v1254_v60  ;;  %v1257_v25 = vmul.f32 %v3731_v36, %v4636_v52  ;;  %v4727_v27 = vld [vmem:[%s4561_s15 + $0x20] sm:$0xff] }
  0x4e   : > { %v3755_v7 = vsel %vm1313_vm1, 1.0, %v7155_v0  ;;  %v3763_v34 = vsel %vm1321_vm3, 1.0, %v7155_v0  ;;  %v4673_v39 = vrot.slane %v4348_v33, %v4301_v21  ;;  %v4677_v40 = vrot.slane %v4286_v16, %v4304_v22  ;;  %3846 = vmatmul.mubr.msk.f32.gmra.mrb[4].mxu0 %vm608_vm2, %v4658_v35 }
  0x4f   : > { %3857 = vmatmul.mubr.msk.f32.gmra.mrb[2].mxu1 %vm608_vm2, %v4623_v50  ;;  %v4681_v41 = vrot.slane %v4331_v29, %v4304_v22  ;;  %v3915_v42 = vpack.c.bf16 %v1487_v2, %v1479_v1  ;;  %v4687_v43 = vrot.slane %v4307_v23, %v4304_v22  ;;  %v4691_v45 = vrot.slane %v4348_v33, %v4304_v22  ;;  %v4702_v23 = vld [vmem:[%s4561_s15 + $0x18] sm:$0xff] }
  0x50   : > { %2203 = vmatprep.mubr.f32.mxu1 %v7155_v0  ;;  %2072 = vmatprep.mubr.f32.mxu0 %v7155_v0  ;;  %v1450_v16 = vmul.f32 %v3755_v7, %v4673_v39  ;;  %v1458_v29 = vmul.f32 %v3763_v34, %v4673_v39  ;;  %vm1111_vm4 = vcmp.eq.s32.totalorder %v4269_v6, %v4677_v40 }
  0x51   : > { %vm1119_vm5 = vcmp.eq.s32.totalorder %v4289_v17, %v4677_v40  ;;  %3916 = vmatpush1.bf16.msra.mxu0 %v3915_v42  ;;  %v3722_v33 = vsel %vm1111_vm4, 1.0, %v7155_v0  ;;  %vm1312_vm6 = vcmp.eq.s32.totalorder %v4269_v6, %v4687_v43  ;;  %vm1320_vm7 = vcmp.eq.s32.totalorder %v4289_v17, %v4687_v43 }
  0x52   : > { %v3730_v46 = vsel %vm1119_vm5, 1.0, %v7155_v0  ;;  %v1482_v24 = vadd.f32 %v1450_v16, %v1249_v63  ;;  %v1490_v47 = vadd.f32 %v1458_v29, %v1257_v25  ;;  %v1248_v44 = vmul.f32 %v3722_v33, %v4681_v41  ;;  %3847 = vmatmul.mubr.msk.f32.gmra.mrb[6].mxu0 %vm608_vm2, %v4702_v23 }
  0x53   : > { %v1256_v51 = vmul.f32 %v3730_v46, %v4681_v41  ;;  %3858 = vmatmul.mubr.msk.f32.gmra.mrb[4].mxu1 %vm608_vm2, %v4658_v35  ;;  %v3754_v60 = vsel %vm1312_vm6, 1.0, %v7155_v0  ;;  %v3762_v54 = vsel %vm1320_vm7, 1.0, %v7155_v0  ;;  %vm1126_vm8 = vcmp.eq.s32.totalorder %v4292_v18, %v4329_v28  ;;  %2078 = vmatprep.mubr.f32.mxu0 %v7155_v0 }
  0x54   : > { %2209 = vmatprep.mubr.f32.mxu1 %v7155_v0  ;;  %vm1134_vm9 = vcmp.eq.s32.totalorder %v4295_v19, %v4329_v28  ;;  %v3921_v55 = vpack.c.bf16 %v1490_v47, %v1482_v24  ;;  %v1449_v59 = vmul.f32 %v3754_v60, %v4691_v45  ;;  %v1457_v31 = vmul.f32 %v3762_v54, %v4691_v45 }
  0x55   : > { %v3737_v62 = vsel %vm1126_vm8, 1.0, %v7155_v0  ;;  %v3745_v36 = vsel %vm1134_vm9, 1.0, %v7155_v0  ;;  %vm1327_vm10 = vcmp.eq.s32.totalorder %v4292_v18, %v4577_v4  ;;  %vm1335_vm11 = vcmp.eq.s32.totalorder %v4295_v19, %v4577_v4 }
  0x56   : > { %v1263_v63 = vmul.f32 %v3737_v62, %v4573_v32  ;;  %3922 = vmatprep.subr.bf16.mxu1 %v3921_v55  ;;  %v1481_v28 = vadd.f32 %v1449_v59, %v1248_v44  ;;  %v1489_v1 = vadd.f32 %v1457_v31, %v1256_v51  ;;  %v1271_v2 = vmul.f32 %v3745_v36, %v4573_v32  ;;  %v4751_v32 = vld [vmem:[%s4561_s15 + $0x28] sm:$0xff]  ;;  %v4777_v44 = vld [vmem:[%s4561_s15 + $0x30] sm:$0xff] }
  0x57   : > { %3859 = vmatmul.mubr.msk.f32.gmra.mrb[6].mxu1 %vm608_vm2, %v4702_v23  ;;  %v3769_v25 = vsel %vm1327_vm10, 1.0, %v7155_v0  ;;  %3848 = vmatmul.mubr.msk.f32.gmra.mrb[8].mxu0 %vm608_vm2, %v4727_v27  ;;  %v3777_v7 = vsel %vm1335_vm11, 1.0, %v7155_v0  ;;  %vm1125_vm12 = vcmp.eq.s32.totalorder %v4292_v18, %v4588_v8  ;;  %vm1133_vm13 = vcmp.eq.s32.totalorder %v4295_v19, %v4588_v8 }
  0x58   : > { %2215 = vmatprep.mubr.f32.mxu1 %v7155_v0  ;;  %v1464_v34 = vmul.f32 %v3769_v25, %v4581_v5  ;;  %v3923_v4 = vpack.c.bf16 %v1489_v1, %v1481_v28  ;;  %2084 = vmatprep.mubr.f32.mxu0 %v7155_v0  ;;  %v1472_v42 = vmul.f32 %v3777_v7, %v4581_v5  ;;  %v3736_v16 = vsel %vm1125_vm12, 1.0, %v7155_v0  ;;  %v4803_v28 = vld [vmem:[%s4561_s15 + $0x38] sm:$0xff] }
  0x59   : > { %v3744_v29 = vsel %vm1133_vm13, 1.0, %v7155_v0  ;;  %v1262_v46 = vmul.f32 %v3736_v16, %v4592_v15  ;;  %vm1326_vm14 = vcmp.eq.s32.totalorder %v4292_v18, %v4615_v49  ;;  %vm1334_vm15 = vcmp.eq.s32.totalorder %v4295_v19, %v4615_v49 }
  0x5a   : > { %v1496_v33 = vadd.f32 %v1464_v34, %v1263_v63  ;;  %v1270_v24 = vmul.f32 %v3744_v29, %v4592_v15  ;;  %3924 = vmatpush1.bf16.msra.mxu1 %v3923_v4  ;;  %v1504_v8 = vadd.f32 %v1472_v42, %v1271_v2  ;;  %v3768_v5 = vsel %vm1326_vm14, 1.0, %v7155_v0 }
  0x5b   : > { %vm1128_vm0 = vcmp.eq.s32.totalorder %v4292_v18, %v4628_v61  ;;  %3860 = vmatmul.mubr.msk.f32.gmra.mrb[8].mxu1 %vm608_vm2, %v4727_v27  ;;  %3849 = vmatmul.mubr.msk.f32.gmra.mrb[10].mxu0 %vm608_vm2, %v4751_v32  ;;  %v3776_v15 = vsel %vm1334_vm15, 1.0, %v7155_v0  ;;  %v1463_v47 = vmul.f32 %v3768_v5, %v4619_v26  ;;  %vm1136_vm1 = vcmp.eq.s32.totalorder %v4295_v19, %v4628_v61 }
  0x5c   : > { %v3739_v49 = vsel %vm1128_vm0, 1.0, %v7155_v0  ;;  %2221 = vmatprep.mubr.f32.mxu1 %v7155_v0  ;;  %2090 = vmatprep.mubr.f32.mxu0 %v7155_v0  ;;  %v3917_v51 = vpack.c.bf16 %v1504_v8, %v1496_v33  ;;  %v1471_v60 = vmul.f32 %v3776_v15, %v4619_v26  ;;  %v3747_v54 = vsel %vm1136_vm1, 1.0, %v7155_v0  ;;  %v4844_v15 = vld [vmem:[%s4561_s15 + $0x48] sm:$0xff] }
  0x5d   : > { %v1265_v55 = vmul.f32 %v3739_v49, %v4636_v52  ;;  %v1495_v59 = vadd.f32 %v1463_v47, %v1262_v46  ;;  %v1273_v31 = vmul.f32 %v3747_v54, %v4636_v52  ;;  %vm1329_vm3 = vcmp.eq.s32.totalorder %v4292_v18, %v4640_v53 }
  0x5e   : > { %vm1337_vm4 = vcmp.eq.s32.totalorder %v4295_v19, %v4640_v53  ;;  %3918 = vmatprep.subr.bf16.mxu0 %v3917_v51  ;;  %v1503_v61 = vadd.f32 %v1471_v60, %v1270_v24  ;;  %v3771_v62 = vsel %vm1329_vm3, 1.0, %v7155_v0  ;;  %vm1127_vm5 = vcmp.eq.s32.totalorder %v4292_v18, %v4677_v40  ;;  %v4861_v60 = vld [vmem:[%s4561_s15 + $0x50] sm:$0xff] }
  0x5f   : > { %v3779_v26 = vsel %vm1337_vm4, 1.0, %v7155_v0  ;;  %3861 = vmatmul.mubr.msk.f32.gmra.mrb[10].mxu1 %vm608_vm2, %v4751_v32  ;;  %3850 = vmatmul.mubr.msk.f32.gmra.mrb[12].mxu0 %vm608_vm2, %v4777_v44  ;;  %v1466_v52 = vmul.f32 %v3771_v62, %v4673_v39  ;;  %vm1135_vm6 = vcmp.eq.s32.totalorder %v4295_v19, %v4677_v40  ;;  %v3738_v53 = vsel %vm1127_vm5, 1.0, %v7155_v0  ;;  %v4879_v62 = vld [vmem:[%s4561_s15 + $0x58] sm:$0xff] }
  0x60   : > { %v1474_v36 = vmul.f32 %v3779_v26, %v4673_v39  ;;  %2227 = vmatprep.mubr.f32.mxu1 %v7155_v0  ;;  %v3919_v63 = vpack.c.bf16 %v1503_v61, %v1495_v59  ;;  %2096 = vmatprep.mubr.f32.mxu0 %v7155_v0  ;;  %v3746_v1 = vsel %vm1135_vm6, 1.0, %v7155_v0  ;;  %v1264_v2 = vmul.f32 %v3738_v53, %v4681_v41 }
  0x61   : > { %vm1328_vm7 = vcmp.eq.s32.totalorder %v4292_v18, %v4687_v43  ;;  %v1498_v39 = vadd.f32 %v1466_v52, %v1265_v55  ;;  %v1272_v40 = vmul.f32 %v3746_v1, %v4681_v41  ;;  %vm1336_vm8 = vcmp.eq.s32.totalorder %v4295_v19, %v4687_v43  ;;  %v4825_v43 = vld [vmem:[%s4561_s15 + $0x40] sm:$0xff] }
  0x62   : > { %v1506_v25 = vadd.f32 %v1474_v36, %v1273_v31  ;;  %3920 = vmatpush1.bf16.msra.mxu0 %v3919_v63  ;;  %v3770_v7 = vsel %vm1328_vm7, 1.0, %v7155_v0  ;;  %v3778_v34 = vsel %vm1336_vm8, 1.0, %v7155_v0  ;;  %v871_v4 = vmul.f32 %v4406_v57, %v4406_v57 }
  0x63   : > { %3862 = vmatmul.mubr.msk.f32.gmra.mrb[12].mxu1 %vm608_vm2, %v4777_v44  ;;  %3851 = vmatmul.mubr.msk.f32.gmra.mrb[14].mxu0 %vm608_vm2, %v4803_v28  ;;  %v1465_v41 = vmul.f32 %v3770_v7, %v4691_v45  ;;  %v1473_v16 = vmul.f32 %v3778_v34, %v4691_v45  ;;  %v873_v57 = vmul.f32 %v4409_v58, %v4409_v58 }
  0x64   : > { %v3925_v42 = vpack.c.bf16 %v1506_v25, %v1498_v39  ;;  %2233 = vmatprep.mubr.f32.mxu1 %v7155_v0  ;;  %2102 = vmatprep.mubr.f32.mxu0 %v7155_v0  ;;  %v877_v29 = vadd.f32 1e-18, %v871_v4  ;;  %v872_v33 = vmul.f32 %v4441_v9, %v4441_v9  ;;  %v634_v45 = vmul.f32 %v4465_v38, %v4465_v38 }
  0x65   : > { %v1497_v46 = vadd.f32 %v1465_v41, %v1264_v2  ;;  %v1505_v24 = vadd.f32 %v1473_v16, %v1272_v40  ;;  %v4839_v58 = vadd.f32 1e-18, %v873_v57  ;;  %v874_v49 = vmul.f32 %v4478_v48, %v4478_v48 }
  0x66   : > { %3926 = vmatprep.subr.bf16.mxu1 %v3925_v42  ;;  %3975 = vrsqrt.f32 %v877_v29  ;;  %v4833_v8 = vadd.f32 1e-18, %v872_v33  ;;  %v4846_v47 = vadd.f32 1e-18, %v634_v45  ;;  %v875_v51 = vmul.f32 %v4491_v56, %v4491_v56 }
  0x67   : > { %3863 = vmatmul.mubr.msk.f32.gmra.mrb[14].mxu1 %vm608_vm2, %v4803_v28  ;;  %v3927_v5 = vpack.c.bf16 %v1505_v24, %v1497_v46  ;;  %3852 = vmatmul.mubr.msk.f32.gmra.mrb[16].mxu0 %vm608_vm2, %v4825_v43  ;;  %v876_v54 = vmul.f32 %v4505_v3, %v4505_v3  ;;  %v4866_v55 = vadd.f32 1e-18, %v874_v49  ;;  %v635_v31 = vmul.f32 %v4517_v30, %v4517_v30 }
  0x68   : > { %2239 = vmatprep.mubr.f32.mxu1 %v7155_v0  ;;  %2108 = vmatprep.mubr.f32.mxu0 %v7155_v0  ;;  %3977 = vrsqrt.f32 %v4833_v8  ;;  %v4872_v59 = vadd.f32 1e-18, %v875_v51  ;;  %vm885_vm9 = vcmp.eq.f32.partialorder %v877_v29, inf  ;;  %vm887_vm10 = vcmp.eq.f32.partialorder %v877_v29, 0.0 }
  0x69   : > { %3928 = vmatpush1.bf16.msra.mxu1 %v3927_v5  ;;  %3979 = vrsqrt.f32 %v4839_v58  ;;  %v4881_v26 = vadd.f32 1e-18, %v876_v54  ;;  %v4889_v36 = vadd.f32 1e-18, %v635_v31  ;;  %v888_v63 = vand.u32 2147483648, %v877_v29 }
  0x6a   : > { %3981 = vrsqrt.f32 %v4846_v47  ;;  %vm892_vm11 = vcmp.eq.f32.partialorder %v4833_v8, inf  ;;  %vm894_vm12 = vcmp.eq.f32.partialorder %v4833_v8, 0.0  ;;  %v895_v34 = vand.u32 2147483648, %v4833_v8 }
  0x6b   : > { %3864 = vmatmul.mubr.msk.f32.gmra.mrb[16].mxu1 %vm608_vm2, %v4825_v43  ;;  %3853 = vmatmul.mubr.msk.f32.gmra.mrb[18].mxu0 %vm608_vm2, %v4844_v15  ;;  %3983 = vrsqrt.f32 %v4866_v55  ;;  %vm899_vm13 = vcmp.eq.f32.partialorder %v4839_v58, inf  ;;  %vm901_vm14 = vcmp.eq.f32.partialorder %v4839_v58, 0.0  ;;  %v902_v42 = vand.u32 2147483648, %v4839_v58 }
  0x6c   : > { %2245 = vmatprep.mubr.f32.mxu1 %v7155_v0  ;;  %2114 = vmatprep.mubr.f32.mxu0 %v7155_v0  ;;  %3985 = vrsqrt.f32 %v4872_v59  ;;  %vm640_vm15 = vcmp.eq.f32.partialorder %v4846_v47, inf  ;;  %vm642_vm0 = vcmp.eq.f32.partialorder %v4846_v47, 0.0  ;;  %v643_v24 = vand.u32 2147483648, %v4846_v47 }
  0x6d   : > { %3987 = vrsqrt.f32 %v4881_v26  ;;  %vm906_vm1 = vcmp.eq.f32.partialorder %v4866_v55, inf  ;;  %vm908_vm3 = vcmp.eq.f32.partialorder %v4866_v55, 0.0  ;;  %vm913_vm4 = vcmp.eq.f32.partialorder %v4872_v59, inf }
  0x6e   : > { %3989 = vrsqrt.f32 %v4889_v36  ;;  %vm915_vm5 = vcmp.eq.f32.partialorder %v4872_v59, 0.0  ;;  %vm920_vm6 = vcmp.eq.f32.partialorder %v4881_v26, inf }
  0x6f   : > { %3865 = vmatmul.mubr.msk.f32.gmra.mrb[18].mxu1 %vm608_vm2, %v4844_v15  ;;  %3854 = vmatmul.mubr.msk.f32.gmra.mrb[20].mxu0 %vm608_vm2, %v4861_v60 }
  0x70   : > { %v3976_v61 = vpop.eup %3975  ;;  %2251 = vmatprep.mubr.f32.mxu1 %v7155_v0  ;;  %2120 = vmatprep.mubr.f32.mxu0 %v7155_v0 }
  0x71   : > { %v884_v53 = vmul.f32 %v3976_v61, %v877_v29 }
  0x72   : > { %v3978_v52 = vpop.eup %3977 }
  0x73   : > { %3866 = vmatmul.mubr.msk.f32.gmra.mrb[20].mxu1 %vm608_vm2, %v4861_v60  ;;  %3855 = vmatmul.mubr.msk.f32.gmra.mrb[22].mxu0 %vm608_vm2, %v4879_v62  ;;  %v891_v1 = vmul.f32 %v3978_v52, %v4833_v8  ;;  %v3980_v2 = vpop.eup %3979  ;;  %v886_v39 = vsel %vm885_vm9, %v877_v29, %v884_v53  ;;  %vm922_vm9 = vcmp.eq.f32.partialorder %v4881_v26, 0.0 }
  0x74   : > { %2257 = vmatprep.mubr.f32.mxu1 %v7155_v0  ;;  %2328 = vmatprep.mubr.f32.mxu0 %v7155_v0  ;;  %v3982_v25 = vpop.eup %3981  ;;  %v4895_v40 = vsel %vm887_vm10, %v888_v63, %v886_v39  ;;  %v898_v4 = vmul.f32 %v3980_v2, %v4839_v58 }
  0x75   : > { %3991 = vrsqrt.f32 %v4895_v40  ;;  %v893_v7 = vsel %vm892_vm11, %v4833_v8, %v891_v1  ;;  %v639_v41 = vmul.f32 %v3982_v25, %v4846_v47  ;;  %v3984_v57 = vpop.eup %3983  ;;  %vm927_vm7 = vcmp.eq.f32.partialorder %v4895_v40, inf }
  0x76   : > { %v4914_v16 = vsel %vm894_vm12, %v895_v34, %v893_v7  ;;  %v900_v29 = vsel %vm899_vm13, %v4839_v58, %v898_v4  ;;  %v905_v45 = vmul.f32 %v3984_v57, %v4866_v55  ;;  %v909_v58 = vand.u32 2147483648, %v4866_v55 }
  0x77   : > { %3867 = vmatmul.mubr.msk.f32.gmra.mrb[22].mxu1 %vm608_vm2, %v4879_v62  ;;  %3868 = vmatmul.mubr.msk.f32.vlgmr.msra.gmra.mrb[24].mxu0 %vm608_vm2, %v4584_v37  ;;  %3993 = vrsqrt.f32 %v4914_v16  ;;  %v4926_v33 = vsel %vm901_vm14, %v902_v42, %v900_v29  ;;  %v641_v46 = vsel %vm640_vm15, %v4846_v47, %v639_v41  ;;  %vm929_vm8 = vcmp.eq.f32.partialorder %v4895_v40, 0.0 }
  0x78   : > { %2465 = vmatprep.mubr.f32.mxu1 %v7155_v0  ;;  %2334 = vmatprep.mubr.f32.mxu0 %v7155_v0  ;;  %3995 = vrsqrt.f32 %v4926_v33  ;;  %v4932_v5 = vsel %vm642_vm0, %v643_v24, %v641_v46  ;;  %v907_v47 = vsel %vm906_vm1, %v4866_v55, %v905_v45  ;;  %v930_v55 = vand.u32 2147483648, %v4895_v40 }
  0x79   : > { %3997 = vrsqrt.f32 %v4932_v5  ;;  %v4948_v54 = vsel %vm908_vm3, %v909_v58, %v907_v47  ;;  %vm934_vm10 = vcmp.eq.f32.partialorder %v4914_v16, inf  ;;  %v923_v1 = vand.u32 2147483648, %v4881_v26 }
  0x7a   : > { %3999 = vrsqrt.f32 %v4948_v54  ;;  %v937_v7 = vand.u32 2147483648, %v4914_v16  ;;  %vm647_vm11 = vcmp.eq.f32.partialorder %v4889_v36, inf  ;;  %vm936_vm12 = vcmp.eq.f32.partialorder %v4914_v16, 0.0 }
  0x7b   : > { %3880 = vmatmul.mubr.msk.f32.vlgmr.msra.gmra.mrb[24].mxu1 %vm608_vm2, %v4584_v37  ;;  %3869 = vmatmul.mubr.msk.f32.gmra.mrb[26].mxu0 %vm608_vm2, %v4623_v50  ;;  %v3986_v37 = vpop.eup %3985  ;;  %vm941_vm13 = vcmp.eq.f32.partialorder %v4926_v33, inf  ;;  %vm943_vm14 = vcmp.eq.f32.partialorder %v4926_v33, 0.0  ;;  %vm649_vm15 = vcmp.eq.f32.partialorder %v4889_v36, 0.0  ;;  %vm654_vm0 = vcmp.eq.f32.partialorder %v4932_v5, inf }
  0x7c   : > { %2471 = vmatprep.mubr.f32.mxu1 %v7155_v0  ;;  %2340 = vmatprep.mubr.f32.mxu0 %v7155_v0  ;;  %v3988_v8 = vpop.eup %3987  ;;  %v912_v49 = vmul.f32 %v3986_v37, %v4872_v59  ;;  %v657_v46 = vand.u32 2147483648, %v4932_v5  ;;  %v650_v24 = vand.u32 2147483648, %v4889_v36  ;;  %vm656_vm1 = vcmp.eq.f32.partialorder %v4932_v5, 0.0 }
  0x7d   : > { %v3990_v51 = vpop.eup %3989  ;;  %v919_v31 = vmul.f32 %v3988_v8, %v4881_v26  ;;  %vm948_vm3 = vcmp.eq.f32.partialorder %v4948_v54, inf  ;;  %v951_v47 = vand.u32 2147483648, %v4948_v54 }
  0x7e   : > { %v914_v53 = vsel %vm913_vm4, %v4872_v59, %v912_v49  ;;  %v646_v2 = vmul.f32 %v3990_v51, %v4889_v36  ;;  %vm950_vm4 = vcmp.eq.f32.partialorder %v4948_v54, 0.0 }
  0x7f   : > { %3881 = vmatmul.mubr.msk.f32.gmra.mrb[26].mxu1 %vm608_vm2, %v4623_v50  ;;  %3870 = vmatmul.mubr.msk.f32.gmra.mrb[28].mxu0 %vm608_vm2, %v4658_v35  ;;  %v916_v50 = vand.u32 2147483648, %v4872_v59  ;;  %v3992_v61 = vpop.eup %3991  ;;  %v921_v63 = vsel %vm920_vm6, %v4881_v26, %v919_v31 }
  0x80   : > { %2477 = vmatprep.mubr.f32.mxu1 %v7155_v0  ;;  %2346 = vmatprep.mubr.f32.mxu0 %v7155_v0  ;;  %v926_v52 = vmul.f32 %v3992_v61, %v4895_v40  ;;  %v4984_v26 = vsel %vm922_vm9, %v923_v1, %v921_v63  ;;  %v648_v41 = vsel %vm647_vm11, %v4889_v36, %v646_v2  ;;  %vm449_vm11 = vcmask 1046528  }
  0x81   : > { %v3994_v39 = vpop.eup %3993  ;;  %v651_v36 = vsel %vm649_vm15, %v650_v24, %v648_v41  ;;  %v457_v41 = vrot.slane %v4478_v48, 1 }
  0x82   : > { %v928_v25 = vsel %vm927_vm7, %v4895_v40, %v926_v52  ;;  %v933_v34 = vmul.f32 %v3994_v39, %v4914_v16  ;;  %v3996_v4 = vpop.eup %3995  ;;  %v944_v40 = vand.u32 2147483648, %v4926_v33  ;;  %vm962_vm7 = vcmp.eq.f32.partialorder %v4984_v26, inf  ;;  %v3715_v39 = vld [vmem:[%s4266_s30 + $0x1] ss:$2 sm:$0xff] }
  0x83   : > { %3882 = vmatmul.mubr.msk.f32.gmra.mrb[28].mxu1 %vm608_vm2, %v4658_v35  ;;  %3871 = vmatmul.mubr.msk.f32.gmra.mrb[30].mxu0 %vm608_vm2, %v4702_v23  ;;  %v4970_v35 = vsel %vm915_vm5, %v916_v50, %v914_v53  ;;  %v931_v59 = vsel %vm929_vm8, %v930_v55, %v928_v25  ;;  %v3998_v29 = vpop.eup %3997  ;;  %vm964_vm8 = vcmp.eq.f32.partialorder %v4984_v26, 0.0  ;;  %vm661_vm9 = vcmp.eq.f32.partialorder %v651_v36, inf }
  0x84   : > { %2483 = vmatprep.mubr.f32.mxu1 %v7155_v0  ;;  %2352 = vmatprep.mubr.f32.mxu0 %v7155_v0  ;;  %4001 = vrsqrt.f32 %v4970_v35  ;;  %v935_v42 = vsel %vm934_vm10, %v4914_v16, %v933_v34  ;;  %v653_v37 = vmul.f32 %v3998_v29, %v4932_v5  ;;  %v4000_v8 = vpop.eup %3999  ;;  %vm955_vm5 = vcmp.eq.f32.partialorder %v4970_v35, inf  ;;  %v5096_v34 = vld [vmem:[%s4399_s10 + $0x10] sm:$0xff] }
  0x85   : > { %4003 = vrsqrt.f32 %v4984_v26  ;;  %973 = vrot.lane.b32.xlu0 %v931_v59, %s4201_s16  ;;  %v938_v57 = vsel %vm936_vm12, %v937_v7, %v935_v42  ;;  %v958_v51 = vand.u32 2147483648, %v4970_v35  ;;  %vm957_vm6 = vcmp.eq.f32.partialorder %v4970_v35, 0.0  ;;  %v3713_v7 = vld [vmem:[%s7125_s2 + $0x1] ss:$4 sm:$0xff] }
  0x86   : > { %975 = vrot.lane.b32.xlu1 %v938_v57, %s4201_s16  ;;  %v655_v58 = vsel %vm654_vm0, %v4932_v5, %v653_v37  ;;  %4005 = vrsqrt.f32 %v651_v36  ;;  %v664_v1 = vand.u32 2147483648, %v651_v36  ;;  %vm663_vm10 = vcmp.eq.f32.partialorder %v651_v36, 0.0  ;;  %v5092_v59 = vld [vmem:[%s4399_s10] sm:$0xff] }
  0x87   : > { %3883 = vmatmul.mubr.msk.f32.gmra.mrb[30].mxu1 %vm608_vm2, %v4702_v23  ;;  %3872 = vmatmul.mubr.msk.f32.gmra.mrb[32].mxu0 %vm608_vm2, %v4727_v27  ;;  %v940_v23 = vmul.f32 %v3996_v4, %v4926_v33  ;;  %v451_v4 = vrot.slane %v4441_v9, 1  ;;  %v458_v29 = vrot.slane %v4491_v56, 1 }
  0x88   : > { %2489 = vmatprep.mubr.f32.mxu1 %v7155_v0  ;;  %2358 = vmatprep.mubr.f32.mxu0 %v7155_v0 }
  0x89   : > { %v942_v45 = vsel %vm941_vm13, %v4926_v33, %v940_v23  ;;  %v947_v33 = vmul.f32 %v4000_v8, %v4948_v54  ;;  %v459_v37 = vsel %vm449_vm11, %v457_v41, %v458_v29  ;;  %v460_v8 = vrot.slane %v4505_v3, 1 }
  0x8a   : > { %v945_v16 = vsel %vm943_vm14, %v944_v40, %v942_v45 }
  0x8b   : > { %3884 = vmatmul.mubr.msk.f32.gmra.mrb[32].mxu1 %vm608_vm2, %v4727_v27  ;;  %3873 = vmatmul.mubr.msk.f32.gmra.mrb[34].mxu0 %vm608_vm2, %v4751_v32  ;;  %v5028_v27 = vsel %vm656_vm1, %v657_v46, %v655_v58  ;;  %v949_v5 = vsel %vm948_vm3, %v4948_v54, %v947_v33  ;;  %v5108_v46 = vld [vmem:[%s4399_s10 + $0x8] sm:$0xff] }
  0x8c   : > { %2495 = vmatprep.mubr.f32.mxu1 %v7155_v0  ;;  %2364 = vmatprep.mubr.f32.mxu0 %v7155_v0  ;;  %7237 = vst [vmem:[#allocation10_spill] sm:$0xff] %v5028_v27  ;;  %v952_v50 = vsel %vm950_vm4, %v951_v47, %v949_v5  ;;  %v462_v5 = vrot.slane %v4517_v30, 1 }
  0x8d   : > { %977 = vrot.lane.b32.xlu0 %v945_v16, %s4201_s16  ;;  %979 = vrot.lane.b32.xlu1 %v5028_v27, %s4201_s16 }
  0x8e   : > { %v4002_v49 = vpop.eup %4001 }
  0x8f   : > { %3885 = vmatmul.mubr.msk.f32.gmra.mrb[34].mxu1 %vm608_vm2, %v4751_v32  ;;  %3874 = vmatmul.mubr.msk.f32.gmra.mrb[36].mxu0 %vm608_vm2, %v4777_v44  ;;  %v954_v31 = vmul.f32 %v4002_v49, %v4970_v35  ;;  %v4004_v61 = vpop.eup %4003  ;;  %v965_v32 = vand.u32 2147483648, %v4984_v26  ;;  %v476_v49 = vsub.f32 %v4478_v48, %v459_v37 }
  0x90   : > { %2501 = vmatprep.mubr.f32.mxu1 %v7155_v0  ;;  %2370 = vmatprep.mubr.f32.mxu0 %v7155_v0  ;;  %v961_v55 = vmul.f32 %v4004_v61, %v4984_v26 }
  0x91   : > { %981 = vrot.lane.b32.xlu0 %v952_v50, %s4201_s16  ;;  %v956_v54 = vsel %vm955_vm5, %v4970_v35, %v954_v31  ;;  %v4006_v35 = vpop.eup %4005  ;;  %v484_v3 = vmul.f32 %v476_v49, %v476_v49 }
  0x92   : > { %v959_v52 = vsel %vm957_vm6, %v958_v51, %v956_v54  ;;  %v963_v53 = vsel %vm962_vm7, %v4984_v26, %v961_v55  ;;  %v453_v26 = vrot.slane %v5096_v34, 1  ;;  %v463_v55 = vsel %vm449_vm11, %v460_v8, %v462_v5 }
  0x93   : > { %3886 = vmatmul.mubr.msk.f32.gmra.mrb[36].mxu1 %vm608_vm2, %v4777_v44  ;;  %3875 = vmatmul.mubr.msk.f32.gmra.mrb[38].mxu0 %vm608_vm2, %v4803_v28  ;;  %v966_v63 = vsel %vm964_vm8, %v965_v32, %v963_v53  ;;  %v660_v44 = vmul.f32 %v4006_v35, %v651_v36  ;;  %v479_v53 = vsub.f32 %v4517_v30, %v462_v5 }
  0x94   : > { %2507 = vmatprep.mubr.f32.mxu1 %v7155_v0  ;;  %2376 = vmatprep.mubr.f32.mxu0 %v7155_v0  ;;  %v454_v42 = vsel %vm449_vm11, %v451_v4, %v453_v26 }
  0x95   : > { %983 = vrot.lane.b32.xlu1 %v959_v52, %s4201_s16  ;;  %985 = vrot.lane.b32.xlu0 %v966_v63, %s4201_s16  ;;  %v662_v2 = vsel %vm661_vm9, %v651_v36, %v660_v44  ;;  %v473_v9 = vsub.f32 %v5108_v46, %v454_v42 }
  0x96   : > { %v5067_v25 = vsel %vm663_vm10, %v664_v1, %v662_v2  ;;  %v5149_v1 = vld [vmem:[%s4399_s10 + $0x30] sm:$0xff] }
  0x97   : > { %3887 = vmatmul.mubr.msk.f32.gmra.mrb[38].mxu1 %vm608_vm2, %v4803_v28  ;;  %3876 = vmatmul.mubr.msk.f32.gmra.mrb[40].mxu0 %vm608_vm2, %v4825_v43  ;;  %7238 = vst [vmem:[#allocation11_spill] sm:$0xff] %v5067_v25  ;;  %v1040_v28 = vadd.f32 %v3715_v39, %v3713_v7  ;;  %v481_v58 = vmul.f32 %v473_v9, %v473_v9 }
  0x98   : > { %2513 = vmatprep.mubr.f32.mxu1 %v7155_v0  ;;  %2382 = vmatprep.mubr.f32.mxu0 %v7155_v0  ;;  %v478_v44 = vsub.f32 %v5149_v1, %v463_v55 }
  0x99   : > { %987 = vrot.lane.b32.xlu1 %v5067_v25, %s4201_s16  ;;  %v5125_v31 = vadd.f32 1e-18, %v481_v58 }
  0x9b   : > { %3888 = vmatmul.mubr.msk.f32.gmra.mrb[40].mxu1 %vm608_vm2, %v4825_v43  ;;  %3877 = vmatmul.mubr.msk.f32.gmra.mrb[42].mxu0 %vm608_vm2, %v4844_v15  ;;  %v1041_v43 = vmul.f32 0.96875, %v1040_v28  ;;  %7239 = vst [vmem:[#allocation12_spill] sm:$0xff] %v5125_v31  ;;  %4007 = vrsqrt.f32 %v5125_v31  ;;  %v487_v28 = vmul.f32 %v479_v53, %v479_v53 }
  0x9c   : > { %2519 = vmatprep.mubr.f32.mxu1 %v7155_v0  ;;  %2388 = vmatprep.mubr.f32.mxu0 %v7155_v0 }
  0x9d   : > { %v1043_v40 = vfloor.f32 %v1041_v43  ;;  %v5189_v42 = vadd.f32 1e-18, %v487_v28 }
  0x9f   : > { %3889 = vmatmul.mubr.msk.f32.gmra.mrb[42].mxu1 %vm608_vm2, %v4844_v15  ;;  %3878 = vmatmul.mubr.msk.f32.gmra.mrb[44].mxu0 %vm608_vm2, %v4861_v60  ;;  %v450_v15 = vrot.slane %v5092_v59, 1  ;;  %v3940_v57 = vtrunc.f32 %v1043_v40  ;;  %v1046_v32 = vsub.f32 %v1041_v43, %v1043_v40  ;;  %7244 = vst [vmem:[#allocation17_spill] sm:$0xff] %v5189_v42 }
  0xa0   : > { %2525 = vmatprep.mubr.f32.mxu1 %v7155_v0  ;;  %2394 = vmatprep.mubr.f32.mxu0 %v7155_v0 }
  0xa1   : > { %v452_v23 = vsel %vm449_vm11, %v450_v15, %v451_v4  ;;  %v5115_v16 = vcvt.f32.s32 %v3940_v57  ;;  %v1047_v63 = vsub.f32 1.0, %v1046_v32  ;;  %v486_v4 = vmul.f32 %v478_v44, %v478_v44 }
  0xa2   : > { %v472_v24 = vsub.f32 %v5092_v59, %v452_v23 }
  0xa3   : > { %3890 = vmatmul.mubr.msk.f32.gmra.mrb[44].mxu1 %vm608_vm2, %v4861_v60  ;;  %3879 = vmatmul.mubr.msk.f32.gmra.mrb[46].mxu0 %vm608_vm2, %v4879_v62  ;;  %v455_v60 = vrot.slane %v4465_v38, 1  ;;  %v5122_v51 = vadd.s32 1, %v5115_v16  ;;  %vm1065_vm12 = vcmp.ge.s32.totalorder %v5115_v16, 0  ;;  %vm1066_vm13 = vcmp.lt.s32.totalorder %v5115_v16, 32 }
  0xa4   : > { %2531 = vmatprep.mubr.f32.mxu1 %v7155_v0  ;;  %v480_v47 = vmul.f32 %v472_v24, %v472_v24  ;;  %vm1067_vm0 = vmand %vm1065_vm12, %vm1066_vm13  ;;  %v5143_v35 = vrot.slane %v5115_v16, %v4278_v12  ;;  %v5159_v39 = vrot.slane %v5115_v16, %v4272_v10  ;;  %v5215_v37 = vrot.slane %v5115_v16, %v4275_v11 }
  0xa5   : > { %v456_v45 = vsel %vm449_vm11, %v453_v26, %v455_v60  ;;  %vm1069_vm14 = vcmp.ge.s32.totalorder %v5122_v51, 0  ;;  %vm1070_vm15 = vcmp.lt.s32.totalorder %v5122_v51, 32  ;;  %v5154_v30 = vrot.slane %v5122_v51, %v4278_v12 }
  0xa6   : > { %v474_v36 = vsub.f32 %v5096_v34, %v456_v45  ;;  %v5127_v61 = vadd.f32 1e-18, %v480_v47  ;;  %vm1071_vm1 = vmand %vm1069_vm14, %vm1070_vm15  ;;  %v5163_v7 = vrot.slane %v5122_v51, %v4272_v10  ;;  %v5166_v43 = vsel %vm1067_vm0, %v1047_v63, 0.0 }
  0xa7   : > { %3891 = vmatmul.mubr.msk.f32.gmra.mrb[46].mxu1 %vm608_vm2, %v4879_v62  ;;  %v475_v62 = vsub.f32 %v4465_v38, %v455_v60  ;;  %v461_v38 = vsel %vm449_vm11, %v458_v29, %v460_v8  ;;  %v5168_v15 = vsel %vm1071_vm1, %v1046_v32, 0.0  ;;  %vm1539_vm3 = vcmp.eq.s32.totalorder %v4269_v6, %v5143_v35  ;;  %v5221_v8 = vpop.eup %4007 }
  0xa8   : > { %v482_v50 = vmul.f32 %v474_v36, %v474_v36  ;;  %v477_v48 = vsub.f32 %v4491_v56, %v461_v38  ;;  %4009 = vrsqrt.f32 %v5127_v61  ;;  %v5146_v56 = vadd.f32 1e-18, %v484_v3  ;;  %7245 = vst [vmem:[#allocation18_spill] sm:$0xff] %v5221_v8 }
  0xa9   : > { %v483_v33 = vmul.f32 %v475_v62, %v475_v62  ;;  %v5174_v26 = vrot.slane %v5115_v16, %v4281_v13  ;;  %vm1740_vm4 = vcmp.eq.s32.totalorder %v4269_v6, %v5154_v30  ;;  %vm1540_vm5 = vcmp.eq.s32.totalorder %v4269_v6, %v5159_v39 }
  0xaa   : > { %v5137_v52 = vadd.f32 1e-18, %v482_v50  ;;  %7242 = vst [vmem:[#allocation15_spill] sm:$0xff] %v5146_v56  ;;  %v485_v2 = vmul.f32 %v477_v48, %v477_v48  ;;  %vm1741_vm6 = vcmp.eq.s32.totalorder %v4269_v6, %v5163_v7  ;;  %v5187_v60 = vrot.slane %v5122_v51, %v4281_v13 }
  0xab   : > { %v5129_v54 = vadd.f32 1e-18, %v483_v33  ;;  %v3780_v23 = vsel %vm1539_vm3, 1.0, %v7155_v0  ;;  %v5194_v41 = vrot.slane %v5166_v43, %v4278_v12  ;;  %v5198_v29 = vrot.slane %v5168_v15, %v4278_v12 }
  0xac   : > { %7241 = vst [vmem:[#allocation14_spill] sm:$0xff] %v5137_v52  ;;  %v5179_v40 = vadd.f32 1e-18, %v485_v2  ;;  %v3812_v57 = vsel %vm1740_vm4, 1.0, %v7155_v0  ;;  %v5203_v9 = vrot.slane %v5166_v43, %v4272_v10  ;;  %v5207_v24 = vrot.slane %v5168_v15, %v4272_v10 }
  0xad   : > { %7240 = vst [vmem:[#allocation13_spill] sm:$0xff] %v5129_v54  ;;  %4011 = vrsqrt.f32 %v5129_v54  ;;  %vm1541_vm7 = vcmp.eq.s32.totalorder %v4269_v6, %v5174_v26  ;;  %v3781_v45 = vsel %vm1540_vm5, 1.0, %v7155_v0  ;;  %v3813_v62 = vsel %vm1741_vm6, 1.0, %v7155_v0 }
  0xae   : > { %4013 = vrsqrt.f32 %v5137_v52  ;;  %7243 = vst [vmem:[#allocation16_spill] sm:$0xff] %v5179_v40  ;;  %v5219_v36 = vrot.slane %v5122_v51, %v4275_v11  ;;  %v5223_v58 = vadd.f32 1e-18, %v486_v4  ;;  %v5227_v47 = vrot.slane %v5166_v43, %v4281_v13 }
  0xaf   : > { %4015 = vrsqrt.f32 %v5146_v56  ;;  %vm1742_vm8 = vcmp.eq.s32.totalorder %v4269_v6, %v5187_v60  ;;  %vm1547_vm9 = vcmp.eq.s32.totalorder %v4289_v17, %v5143_v35  ;;  %v1676_v49 = vmul.f32 %v3780_v23, %v5194_v41 }
  0xb0   : > { %7246 = vst [vmem:[#allocation19_spill] sm:$0xff] %v5223_v58  ;;  %4017 = vrsqrt.f32 %v5189_v42  ;;  %v1877_v5 = vmul.f32 %v3812_v57, %v5198_v29  ;;  %v3782_v50 = vsel %vm1541_vm7, 1.0, %v7155_v0  ;;  %v1677_v32 = vmul.f32 %v3781_v45, %v5203_v9 }
  0xb1   : > { %v1878_v3 = vmul.f32 %v3813_v62, %v5207_v24  ;;  %v5245_v48 = vrot.slane %v5168_v15, %v4281_v13  ;;  %vm1748_vm10 = vcmp.eq.s32.totalorder %v4289_v17, %v5154_v30  ;;  %v3814_v53 = vsel %vm1742_vm8, 1.0, %v7155_v0 }
  0xb2   : > { %v5233_v33 = vpop.eup %4009  ;;  %vm1542_vm11 = vcmp.eq.s32.totalorder %v4269_v6, %v5215_v37  ;;  %vm1743_vm12 = vcmp.eq.s32.totalorder %v4269_v6, %v5219_v36  ;;  %v3788_v63 = vsel %vm1547_vm9, 1.0, %v7155_v0  ;;  %v1678_v44 = vmul.f32 %v3782_v50, %v5227_v47 }
  0xb3   : > { %v5260_v2 = vrot.slane %v5166_v43, %v4275_v11  ;;  %vm1549_vm13 = vcmp.eq.s32.totalorder %v4289_v17, %v5174_v26  ;;  %vm1750_vm14 = vcmp.eq.s32.totalorder %v4289_v17, %v5187_v60  ;;  %v5270_v4 = vrot.slane %v5168_v15, %v4275_v11 }
  0xb4   : > { %v3820_v23 = vsel %vm1748_vm10, 1.0, %v7155_v0  ;;  %vm1548_vm15 = vcmp.eq.s32.totalorder %v4289_v17, %v5159_v39  ;;  %vm1749_vm0 = vcmp.eq.s32.totalorder %v4289_v17, %v5163_v7  ;;  %v1879_v57 = vmul.f32 %v3814_v53, %v5245_v48 }
  0xb5   : > { %v3783_v45 = vsel %vm1542_vm11, 1.0, %v7155_v0  ;;  %v3815_v62 = vsel %vm1743_vm12, 1.0, %v7155_v0  ;;  %v1684_v50 = vmul.f32 %v3788_v63, %v5194_v41  ;;  %v3790_v42 = vsel %vm1549_vm13, 1.0, %v7155_v0 }
  0xb6   : > { %v3822_v11 = vsel %vm1750_vm14, 1.0, %v7155_v0  ;;  %vm1550_vm1 = vcmp.eq.s32.totalorder %v4289_v17, %v5215_v37  ;;  %vm1751_vm3 = vcmp.eq.s32.totalorder %v4289_v17, %v5219_v36  ;;  %v1885_v58 = vmul.f32 %v3820_v23, %v5198_v29 }
  0xb7   : > { %v5239_v38 = vpop.eup %4011  ;;  %v3789_v53 = vsel %vm1548_vm15, 1.0, %v7155_v0  ;;  %vm1555_vm4 = vcmp.eq.s32.totalorder %v4292_v18, %v5143_v35  ;;  %v1679_v40 = vmul.f32 %v3783_v45, %v5260_v2  ;;  %v1686_v54 = vmul.f32 %v3790_v42, %v5227_v47 }
  0xb8   : > { %7247 = vst [vmem:[#allocation20_spill] sm:$0xff] %v5239_v38  ;;  %v5249_v55 = vpop.eup %4013  ;;  %v1880_v38 = vmul.f32 %v3815_v62, %v5270_v4  ;;  %v3791_v23 = vsel %vm1550_vm1, 1.0, %v7155_v0  ;;  %v3823_v52 = vsel %vm1751_vm3, 1.0, %v7155_v0  ;;  %v1685_v31 = vmul.f32 %v3789_v53, %v5203_v9 }
  0xb9   : > { %7248 = vst [vmem:[#allocation21_spill] sm:$0xff] %v5249_v55  ;;  %v5266_v28 = vpop.eup %4015  ;;  %v1887_v55 = vmul.f32 %v3822_v11, %v5245_v48  ;;  %v3796_v56 = vsel %vm1555_vm4, 1.0, %v7155_v0  ;;  %vm1756_vm5 = vcmp.eq.s32.totalorder %v4292_v18, %v5154_v30  ;;  %v5307_v45 = vadd.f32 %v1877_v5, %v1676_v49 }
  0xba   : > { %7249 = vst [vmem:[#allocation22_spill] sm:$0xff] %v5266_v28  ;;  %v3821_v28 = vsel %vm1749_vm0, 1.0, %v7155_v0  ;;  %v5300_v8 = vpop.eup %4017  ;;  %v5309_v42 = vadd.f32 %v1878_v3, %v1677_v32  ;;  %v5311_v11 = vadd.f32 %v1879_v57, %v1678_v44  ;;  %v5313_v62 = vadd.f32 %v1885_v58, %v1684_v50 }
  0xbb   : > { %v1886_v63 = vmul.f32 %v3821_v28, %v5207_v24  ;;  %v5315_v25 = vadd.f32 %v1880_v38, %v1679_v40  ;;  %v1687_v27 = vmul.f32 %v3791_v23, %v5260_v2  ;;  %v1888_v53 = vmul.f32 %v3823_v52, %v5270_v4 }
  0xbc   : > { %vm1557_vm6 = vcmp.eq.s32.totalorder %v4292_v18, %v5174_v26  ;;  %v5321_v28 = vadd.f32 %v1887_v55, %v1686_v54  ;;  %v1692_v49 = vmul.f32 %v3796_v56, %v5194_v41  ;;  %v3828_v5 = vsel %vm1756_vm5, 1.0, %v7155_v0 }
  0xbd   : > { %vm1758_vm7 = vcmp.eq.s32.totalorder %v4292_v18, %v5187_v60  ;;  %v5327_v58 = vadd.f32 %v1886_v63, %v1685_v31  ;;  %vm1556_vm8 = vcmp.eq.s32.totalorder %v4292_v18, %v5159_v39  ;;  %vm1757_vm9 = vcmp.eq.s32.totalorder %v4292_v18, %v5163_v7 }
  0xbe   : > { %vm1558_vm10 = vcmp.eq.s32.totalorder %v4292_v18, %v5215_v37  ;;  %v3798_v54 = vsel %vm1557_vm6, 1.0, %v7155_v0  ;;  %vm1759_vm11 = vcmp.eq.s32.totalorder %v4292_v18, %v5219_v36  ;;  %vm1563_vm12 = vcmp.eq.s32.totalorder %v4295_v19, %v5143_v35 }
  0xbf   : > { %vm1764_vm13 = vcmp.eq.s32.totalorder %v4295_v19, %v5154_v30  ;;  %v5342_v31 = vadd.f32 %v1888_v53, %v1687_v27  ;;  %v1893_v52 = vmul.f32 %v3828_v5, %v5198_v29  ;;  %vm1565_vm14 = vcmp.eq.s32.totalorder %v4295_v19, %v5174_v26 }
  0xc0   : > { %vm1766_vm15 = vcmp.eq.s32.totalorder %v4295_v19, %v5187_v60  ;;  %v3830_v56 = vsel %vm1758_vm7, 1.0, %v7155_v0  ;;  %v3797_v40 = vsel %vm1556_vm8, 1.0, %v7155_v0  ;;  %v3829_v38 = vsel %vm1757_vm9, 1.0, %v7155_v0 }
  0xc1   : > { %v3799_v35 = vsel %vm1558_vm10, 1.0, %v7155_v0  ;;  %v1694_v27 = vmul.f32 %v3798_v54, %v5227_v47  ;;  %v3831_v30 = vsel %vm1759_vm11, 1.0, %v7155_v0  ;;  %v3804_v32 = vsel %vm1563_vm12, 1.0, %v7155_v0 }
  0xc2   : > { %v3836_v26 = vsel %vm1764_vm13, 1.0, %v7155_v0  ;;  %v3806_v3 = vsel %vm1565_vm14, 1.0, %v7155_v0  ;;  %v3838_v60 = vsel %vm1766_vm15, 1.0, %v7155_v0  ;;  %vm1564_vm0 = vcmp.eq.s32.totalorder %v4295_v19, %v5159_v39 }
  0xc3   : > { %vm1765_vm1 = vcmp.eq.s32.totalorder %v4295_v19, %v5163_v7  ;;  %v1895_v55 = vmul.f32 %v3830_v56, %v5245_v48  ;;  %v1693_v44 = vmul.f32 %v3797_v40, %v5203_v9  ;;  %v1894_v57 = vmul.f32 %v3829_v38, %v5207_v24  ;;  %v5385_v40 = vld [vmem:[%s5371_s26] sm:$0x77] }
  0xc4   : > { %v1695_v50 = vmul.f32 %v3799_v35, %v5260_v2  ;;  %v1896_v63 = vmul.f32 %v3831_v30, %v5270_v4  ;;  %v1700_v39 = vmul.f32 %v3804_v32, %v5194_v41  ;;  %v1901_v7 = vmul.f32 %v3836_v26, %v5198_v29  ;;  %v5421_v26 = vld [vmem:[%s5371_s26 + $0x8] sm:$0x77] }
  0xc5   : > { %vm1566_vm3 = vcmp.eq.s32.totalorder %v4295_v19, %v5215_v37  ;;  %v1702_v23 = vmul.f32 %v3806_v3, %v5227_v47  ;;  %v1903_v53 = vmul.f32 %v3838_v60, %v5245_v48  ;;  %v3805_v5 = vsel %vm1564_vm0, 1.0, %v7155_v0 }
  0xc6   : > { %v3837_v54 = vsel %vm1765_vm1, 1.0, %v7155_v0  ;;  %v5382_v56 = vadd.f32 %v1893_v52, %v1692_v49  ;;  %vm1767_vm4 = vcmp.eq.s32.totalorder %v4295_v19, %v5219_v36  ;;  %v5391_v41 = vrot.slane %v5115_v16, %v4298_v20 }
  0xc7   : > { %v5395_v29 = vrot.slane %v5122_v51, %v4298_v20  ;;  %v5397_v37 = vadd.f32 %v1895_v55, %v1694_v27  ;;  %v5399_v47 = vadd.f32 %v1894_v57, %v1693_v44  ;;  %v3807_v48 = vsel %vm1566_vm3, 1.0, %v7155_v0 }
  0xc8   : > { %v5404_v49 = vrot.slane %v5115_v16, %v4284_v14  ;;  %v5406_v52 = vadd.f32 %v1896_v63, %v1695_v50  ;;  %v1701_v36 = vmul.f32 %v3805_v5, %v5203_v9  ;;  %v1902_v38 = vmul.f32 %v3837_v54, %v5207_v24 }
  0xc9   : > { %7250 = vst [vmem:[#allocation23_spill] sm:$0xff] %v5397_v37  ;;  %7251 = vst [vmem:[#allocation24_spill] sm:$0xff] %v5399_v47  ;;  %v5412_v35 = vrot.slane %v5122_v51, %v4284_v14  ;;  %v5414_v27 = vadd.f32 %v1901_v7, %v1700_v39  ;;  %v5418_v32 = vadd.f32 %v1903_v53, %v1702_v23  ;;  %v3839_v3 = vsel %vm1767_vm4, 1.0, %v7155_v0 }
  0xca   : > { %7252 = vst [vmem:[#allocation25_spill] sm:$0xff] %v5406_v52  ;;  %v1703_v60 = vmul.f32 %v3807_v48, %v5260_v2  ;;  %vm1543_vm5 = vcmp.eq.s32.totalorder %v4269_v6, %v5391_v41  ;;  %vm1744_vm6 = vcmp.eq.s32.totalorder %v4269_v6, %v5395_v29  ;;  %v5431_v9 = vrot.slane %v5115_v16, %v4304_v22 }
  0xcb   : > { %7253 = vst [vmem:[#allocation26_spill] sm:$0xff] %v5414_v27  ;;  %7254 = vst [vmem:[#allocation27_spill] sm:$0xff] %v5418_v32  ;;  %vm1544_vm7 = vcmp.eq.s32.totalorder %v4269_v6, %v5404_v49  ;;  %v5437_v24 = vrot.slane %v5122_v51, %v4304_v22  ;;  %v5441_v2 = vrot.slane %v5115_v16, %v4301_v21  ;;  %v3784_v16 = vsel %vm1543_vm5, 1.0, %v7155_v0 }
  0xcc   : > { %v5445_v55 = vrot.slane %v5122_v51, %v4301_v21  ;;  %v5449_v57 = vadd.f32 %v1902_v38, %v1701_v36  ;;  %v1904_v50 = vmul.f32 %v3839_v3, %v5270_v4  ;;  %vm1745_vm8 = vcmp.eq.s32.totalorder %v4269_v6, %v5412_v35 }
  0xcd   : > { %v5459_v39 = vrot.slane %v5166_v43, %v4298_v20  ;;  %v5463_v51 = vrot.slane %v5168_v15, %v4298_v20  ;;  %v3816_v7 = vsel %vm1744_vm6, 1.0, %v7155_v0  ;;  %v3785_v4 = vsel %vm1544_vm7, 1.0, %v7155_v0 }
  0xce   : > { %7255 = vst [vmem:[#allocation28_spill] sm:$0xff] %v5449_v57  ;;  %v5469_v23 = vrot.slane %v5166_v43, %v4284_v14  ;;  %vm1545_vm9 = vcmp.eq.s32.totalorder %v4269_v6, %v5431_v9  ;;  %v3817_v53 = vsel %vm1745_vm8, 1.0, %v7155_v0  ;;  %vm1746_vm10 = vcmp.eq.s32.totalorder %v4269_v6, %v5437_v24 }
  0xcf   : > { %vm1546_vm11 = vcmp.eq.s32.totalorder %v4269_v6, %v5441_v2  ;;  %vm1747_vm12 = vcmp.eq.s32.totalorder %v4269_v6, %v5445_v55  ;;  %v5482_v5 = vrot.slane %v5168_v15, %v4284_v14  ;;  %v5486_v54 = vrot.slane %v5166_v43, %v4304_v22 }
  0xd0   : > { %vm1551_vm13 = vcmp.eq.s32.totalorder %v4289_v17, %v5391_v41  ;;  %vm1752_vm14 = vcmp.eq.s32.totalorder %v4289_v17, %v5395_v29  ;;  %v3786_v48 = vsel %vm1545_vm9, 1.0, %v7155_v0  ;;  %v5495_v36 = vrot.slane %v5168_v15, %v4304_v22 }
  0xd1   : > { %v5499_v6 = vrot.slane %v5166_v43, %v4301_v21  ;;  %v5503_v38 = vrot.slane %v5168_v15, %v4301_v21  ;;  %v5505_v3 = vadd.f32 %v1904_v50, %v1703_v60  ;;  %v3818_v44 = vsel %vm1746_vm10, 1.0, %v7155_v0 }
  0xd2   : > { %v3787_v63 = vsel %vm1546_vm11, 1.0, %v7155_v0  ;;  %v3819_v30 = vsel %vm1747_vm12, 1.0, %v7155_v0  ;;  %v1680_v57 = vmul.f32 %v3784_v16, %v5459_v39  ;;  %v3792_v43 = vsel %vm1551_vm13, 1.0, %v7155_v0 }
  0xd3   : > { %7256 = vst [vmem:[#allocation29_spill] sm:$0xff] %v5505_v3  ;;  %v3824_v27 = vsel %vm1752_vm14, 1.0, %v7155_v0  ;;  %v1881_v15 = vmul.f32 %v3816_v7, %v5463_v51  ;;  %v1681_v60 = vmul.f32 %v3785_v4, %v5469_v23  ;;  %v1882_v50 = vmul.f32 %v3817_v53, %v5482_v5  ;;  %v687_v53 = vpop.permute.xlu0 %686 }
  0xd4   : > { %v1682_v21 = vmul.f32 %v3786_v48, %v5486_v54  ;;  %v1883_v3 = vmul.f32 %v3818_v44, %v5495_v36  ;;  %v1683_v52 = vmul.f32 %v3787_v63, %v5499_v6  ;;  %v1884_v32 = vmul.f32 %v3819_v30, %v5503_v38 }
  0xd5   : > { %vm1553_vm15 = vcmp.eq.s32.totalorder %v4289_v17, %v5431_v9  ;;  %v1688_v7 = vmul.f32 %v3792_v43, %v5459_v39  ;;  %v1889_v4 = vmul.f32 %v3824_v27, %v5463_v51  ;;  %vm1754_vm0 = vcmp.eq.s32.totalorder %v4289_v17, %v5437_v24 }
  0xd6   : > { %vm1552_vm1 = vcmp.eq.s32.totalorder %v4289_v17, %v5404_v49  ;;  %v710_v63 = vsub.f32 %v5092_v59, %v687_v53  ;;  %v5539_v43 = vadd.f32 %v1881_v15, %v1680_v57  ;;  %v5541_v27 = vadd.f32 %v1882_v50, %v1681_v60 }
  0xd7   : > { %v3794_v16 = vsel %vm1553_vm15, 1.0, %v7155_v0  ;;  %v5544_v37 = vadd.f32 %v1883_v3, %v1682_v21  ;;  %v5546_v44 = vadd.f32 %v1884_v32, %v1683_v52  ;;  %v3826_v30 = vsel %vm1754_vm0, 1.0, %v7155_v0  ;;  %v689_v48 = vpop.permute.xlu0 %688 }
  0xd8   : > { %7257 = vst [vmem:[#allocation30_spill] sm:$0xff] %v5539_v43  ;;  %7258 = vst [vmem:[#allocation31_spill] sm:$0xff] %v5541_v27  ;;  %vm1753_vm3 = vcmp.eq.s32.totalorder %v4289_v17, %v5412_v35  ;;  %v5551_v47 = vadd.f32 %v1889_v4, %v1688_v7  ;;  %v3793_v59 = vsel %vm1552_vm1, 1.0, %v7155_v0  ;;  %vm1554_vm4 = vcmp.eq.s32.totalorder %v4289_v17, %v5441_v2 }
  0xd9   : > { %7259 = vst [vmem:[#allocation32_spill] sm:$0xff] %v5544_v37  ;;  %7260 = vst [vmem:[#allocation33_spill] sm:$0xff] %v5546_v44  ;;  %vm1755_vm5 = vcmp.eq.s32.totalorder %v4289_v17, %v5445_v55  ;;  %v1690_v21 = vmul.f32 %v3794_v16, %v5486_v54  ;;  %vm1559_vm6 = vcmp.eq.s32.totalorder %v4292_v18, %v5391_v41  ;;  %v3825_v57 = vsel %vm1753_vm3, 1.0, %v7155_v0  ;;  %v691_v17 = vpop.permute.xlu1 %690 }
  0xda   : > { %7261 = vst [vmem:[#allocation34_spill] sm:$0xff] %v5551_v47  ;;  %vm1760_vm7 = vcmp.eq.s32.totalorder %v4292_v18, %v5395_v29  ;;  %v718_v52 = vmul.f32 %v710_v63, %v710_v63  ;;  %v1891_v32 = vmul.f32 %v3826_v30, %v5495_v36  ;;  %vm1561_vm8 = vcmp.eq.s32.totalorder %v4292_v18, %v5431_v9 }
  0xdb   : > { %vm1762_vm9 = vcmp.eq.s32.totalorder %v4292_v18, %v5437_v24  ;;  %v1689_v15 = vmul.f32 %v3793_v59, %v5469_v23  ;;  %v3795_v60 = vsel %vm1554_vm4, 1.0, %v7155_v0  ;;  %v3827_v50 = vsel %vm1755_vm5, 1.0, %v7155_v0 }
  0xdc   : > { %v3800_v4 = vsel %vm1559_vm6, 1.0, %v7155_v0  ;;  %v3832_v53 = vsel %vm1760_vm7, 1.0, %v7155_v0  ;;  %v1890_v30 = vmul.f32 %v3825_v57, %v5482_v5  ;;  %v3802_v63 = vsel %vm1561_vm8, 1.0, %v7155_v0 }
  0xdd   : > { %v3834_v59 = vsel %vm1762_vm9, 1.0, %v7155_v0  ;;  %v5583_v3 = vadd.f32 1e-18, %v718_v52  ;;  %v1691_v47 = vmul.f32 %v3795_v60, %v5499_v6  ;;  %v1892_v16 = vmul.f32 %v3827_v50, %v5503_v38  ;;  %v693_v27 = vpop.permute.xlu1 %692 }
  0xde   : > { %vm1560_vm10 = vcmp.eq.s32.totalorder %v4292_v18, %v5404_v49  ;;  %vm1761_vm11 = vcmp.eq.s32.totalorder %v4292_v18, %v5412_v35  ;;  %v5591_v7 = vadd.f32 %v1891_v32, %v1690_v21  ;;  %v1696_v57 = vmul.f32 %v3800_v4, %v5459_v39 }
  0xdf   : > { %v1897_v44 = vmul.f32 %v3832_v53, %v5463_v51  ;;  %v712_v52 = vsub.f32 %v5096_v34, %v691_v17  ;;  %v1698_v60 = vmul.f32 %v3802_v63, %v5486_v54  ;;  %v1899_v50 = vmul.f32 %v3834_v59, %v5495_v36  ;;  %v4171_v17 = vld [vmem:[%s4399_s10 + $0x18] sm:$0xff]  ;;  %v695_v53 = vpop.permute.xlu0 %694 }
  0xe0   : > { %v711_v37 = vsub.f32 %v5108_v46, %v689_v48  ;;  %v5601_v43 = vadd.f32 %v1890_v30, %v1689_v15  ;;  %v7263_v21 = vmov 0.0   ;;  %4019 = vrsqrt.f32 %v5583_v3 }
  0xe1   : > { %v3801_v32 = vsel %vm1560_vm10, 1.0, %v7263_v21  ;;  %v3833_v4 = vsel %vm1761_vm11, 1.0, %v7263_v21  ;;  %v5606_v34 = vadd.f32 %v1892_v16, %v1691_v47  ;;  %vm1562_vm12 = vcmp.eq.s32.totalorder %v4292_v18, %v5441_v2 }
  0xe2   : > { %7262 = vst [vmem:[#allocation35_spill] sm:$0xff] %v5601_v43  ;;  %vm1763_vm13 = vcmp.eq.s32.totalorder %v4292_v18, %v5445_v55  ;;  %vm1567_vm14 = vcmp.eq.s32.totalorder %v4295_v19, %v5391_v41  ;;  %v5614_v46 = vadd.f32 %v1897_v44, %v1696_v57  ;;  %vm1768_vm15 = vcmp.eq.s32.totalorder %v4295_v19, %v5395_v29  ;;  %v4172_v57 = vld [vmem:[%s4399_s10 + $0x20] sm:$0xff] }
  0xe3   : > { %7264 = vst [vmem:[#allocation36_spill] sm:$0xff] %v5606_v34  ;;  %v720_v48 = vmul.f32 %v712_v52, %v712_v52  ;;  %v713_v15 = vsub.f32 %v4171_v17, %v693_v27  ;;  %v5619_v47 = vadd.f32 %v1899_v50, %v1698_v60  ;;  %v1697_v16 = vmul.f32 %v3801_v32, %v5469_v23  ;;  %v4173_v17 = vld [vmem:[%s4399_s10 + $0x28] sm:$0xff] }
  0xe4   : > { %7265 = vst [vmem:[#allocation37_spill] sm:$0xff] %v5614_v46  ;;  %v1898_v30 = vmul.f32 %v3833_v4, %v5482_v5  ;;  %v719_v18 = vmul.f32 %v711_v37, %v711_v37  ;;  %v3803_v63 = vsel %vm1562_vm12, 1.0, %v7263_v21  ;;  %v3835_v41 = vsel %vm1763_vm13, 1.0, %v7263_v21  ;;  %v697_v37 = vpop.permute.xlu1 %696 }
  0xe5   : > { %7266 = vst [vmem:[#allocation38_spill] sm:$0xff] %v5619_v47  ;;  %v3808_v44 = vsel %vm1567_vm14, 1.0, %v7263_v21  ;;  %vm1569_vm0 = vcmp.eq.s32.totalorder %v4295_v19, %v5431_v9  ;;  %v3840_v29 = vsel %vm1768_vm15, 1.0, %v7263_v21  ;;  %vm1770_vm1 = vcmp.eq.s32.totalorder %v4295_v19, %v5437_v24 }
  0xe6   : > { %vm1568_vm3 = vcmp.eq.s32.totalorder %v4295_v19, %v5404_v49  ;;  %vm1769_vm4 = vcmp.eq.s32.totalorder %v4295_v19, %v5412_v35  ;;  %vm1570_vm5 = vcmp.eq.s32.totalorder %v4295_v19, %v5441_v2  ;;  %v5637_v27 = vadd.f32 1e-18, %v720_v48 }
  0xe7   : > { %v721_v59 = vmul.f32 %v713_v15, %v713_v15  ;;  %v714_v52 = vsub.f32 %v4172_v57, %v695_v53  ;;  %v1699_v60 = vmul.f32 %v3803_v63, %v5499_v6  ;;  %v1900_v24 = vmul.f32 %v3835_v41, %v5503_v38  ;;  %v699_v53 = vpop.permute.xlu0 %698 }
  0xe8   : > { %vm1771_vm6 = vcmp.eq.s32.totalorder %v4295_v19, %v5445_v55  ;;  %v5644_v50 = vadd.f32 1e-18, %v719_v18  ;;  %v1704_v32 = vmul.f32 %v3808_v44, %v5459_v39  ;;  %v3810_v4 = vsel %vm1569_vm0, 1.0, %v7263_v21  ;;  %v701_v2 = vpop.permute.xlu1 %700 }
  0xe9   : > { %v3842_v48 = vsel %vm1770_vm1, 1.0, %v7263_v21  ;;  %v715_v15 = vsub.f32 %v4173_v17, %v697_v37  ;;  %v1905_v63 = vmul.f32 %v3840_v29, %v5463_v51  ;;  %v3809_v55 = vsel %vm1568_vm3, 1.0, %v7263_v21  ;;  %v5681_v17 = vld [vmem:[%s5371_s26 + $0x10] sm:$0x77] }
  0xea   : > { %v3841_v39 = vsel %vm1769_vm4, 1.0, %v7263_v21  ;;  %v3811_v9 = vsel %vm1570_vm5, 1.0, %v7263_v21  ;;  %v4020_v18 = vpop.eup %4019  ;;  %v3843_v41 = vsel %vm1771_vm6, 1.0, %v7263_v21  ;;  %4021 = vrsqrt.f32 %v5637_v27  ;;  %7269 = vst [vmem:[#allocation41_spill] sm:$0xff] %v5681_v17 }
  0xeb   : > { %v5668_v51 = vadd.f32 1e-18, %v721_v59  ;;  %v722_v49 = vmul.f32 %v714_v52, %v714_v52  ;;  %v1706_v44 = vmul.f32 %v3810_v4, %v5486_v54  ;;  %v1907_v35 = vmul.f32 %v3842_v48, %v5495_v36 }
  0xec   : > { %4023 = vrsqrt.f32 %v5644_v50  ;;  %v716_v19 = vsub.f32 %v5149_v1, %v699_v53  ;;  %v5674_v29 = vadd.f32 %v1898_v30, %v1697_v16  ;;  %v5676_v37 = vadd.f32 %v1900_v24, %v1699_v60  ;;  %v5688_v1 = vld [vmem:[%s5371_s26 + $0x18] sm:$0x77] }
  0xed   : > { %v1705_v57 = vmul.f32 %v3809_v55, %v5469_v23  ;;  %v723_v59 = vmul.f32 %v715_v15, %v715_v15  ;;  %v735_v52 = vmul.f32 %v4020_v18, %v5583_v3  ;;  %v1906_v54 = vmul.f32 %v3841_v39, %v5482_v5  ;;  %7270 = vst [vmem:[#allocation42_spill] sm:$0xff] %v5688_v1  ;;  %v4174_v23 = vld [vmem:[%s4399_s10 + $0x38] sm:$0xff] }
  0xee   : > { %7267 = vst [vmem:[#allocation39_spill] sm:$0xff] %v5674_v29  ;;  %7268 = vst [vmem:[#allocation40_spill] sm:$0xff] %v5676_v37  ;;  %v1707_v36 = vmul.f32 %v3811_v9, %v5499_v6  ;;  %v1908_v4 = vmul.f32 %v3843_v41, %v5503_v38  ;;  %vm736_vm7 = vcmp.eq.f32.partialorder %v5583_v3, inf  ;;  %4025 = vrsqrt.f32 %v5668_v51  ;;  %v7283_v9 = vld [vmem:[#allocation21_spill] sm:$0xff] }
  0xef   : > { %v5691_v16 = vadd.f32 1e-18, %v722_v49  ;;  %v717_v30 = vsub.f32 %v4174_v23, %v701_v2  ;;  %v5694_v60 = vadd.f32 %v1905_v63, %v1704_v32  ;;  %v5696_v24 = vadd.f32 %v1907_v35, %v1706_v44  ;;  %v7281_v23 = vld [vmem:[#allocation18_spill] sm:$0xff] }
  0xf0   : > { %v724_v48 = vmul.f32 %v716_v19, %v716_v19  ;;  %v497_v5 = vmul.f32 %v5233_v33, %v5127_v61  ;;  %v739_v6 = vand.u32 2147483648, %v5583_v3  ;;  %v5703_v15 = vadd.f32 1e-18, %v723_v59 }
  0xf1   : > { %7271 = vst [vmem:[#allocation43_spill] sm:$0xff] %v5691_v16  ;;  %7272 = vst [vmem:[#allocation44_spill] sm:$0xff] %v5694_v60  ;;  %vm498_vm8 = vcmp.eq.f32.partialorder %v5127_v61, inf  ;;  %v737_v53 = vsel %vm736_vm7, %v5583_v3, %v735_v52  ;;  %vm738_vm9 = vcmp.eq.f32.partialorder %v5583_v3, 0.0  ;;  %v5710_v63 = vadd.f32 %v1906_v54, %v1705_v57 }
  0xf2   : > { %7273 = vst [vmem:[#allocation45_spill] sm:$0xff] %v5696_v24  ;;  %7274 = vst [vmem:[#allocation46_spill] sm:$0xff] %v5703_v15  ;;  %v5714_v55 = vadd.f32 %v1908_v4, %v1707_v36  ;;  %4027 = vrsqrt.f32 %v5691_v16  ;;  %v725_v39 = vmul.f32 %v717_v30, %v717_v30  ;;  %v5719_v18 = vadd.f32 1e-18, %v724_v48  ;;  %v7280_v4 = vld [vmem:[#allocation12_spill] sm:$0xff] }
  0xf3   : > { %7275 = vst [vmem:[#allocation47_spill] sm:$0xff] %v5710_v63  ;;  %v499_v3 = vsel %vm498_vm8, %v5127_v61, %v497_v5  ;;  %vm500_vm10 = vcmp.eq.f32.partialorder %v5127_v61, 0.0  ;;  %v5723_v49 = vsel %vm738_vm9, %v739_v6, %v737_v53  ;;  %vm743_vm11 = vcmp.eq.f32.partialorder %v5644_v50, inf }
  0xf4   : > { %7276 = vst [vmem:[#allocation48_spill] sm:$0xff] %v5714_v55  ;;  %7277 = vst [vmem:[#allocation49_spill] sm:$0xff] %v5719_v18  ;;  %v4022_v41 = vpop.eup %4021  ;;  %v746_v44 = vand.u32 2147483648, %v5644_v50  ;;  %4029 = vrsqrt.f32 %v5703_v15  ;;  %vm750_vm12 = vcmp.eq.f32.partialorder %v5637_v27, inf  ;;  %v753_v2 = vand.u32 2147483648, %v5637_v27 }
  0xf5   : > { %7278 = vst [vmem:[#allocation50_spill] sm:$0xff] %v5723_v49  ;;  %vm745_vm13 = vcmp.eq.f32.partialorder %v5644_v50, 0.0  ;;  %v501_v57 = vand.u32 2147483648, %v5127_v61  ;;  %vm752_vm14 = vcmp.eq.f32.partialorder %v5637_v27, 0.0  ;;  %vm757_vm15 = vcmp.eq.f32.partialorder %v5668_v51, inf }
  0xf6   : > { %v4024_v19 = vpop.eup %4023  ;;  %v5734_v59 = vadd.f32 1e-18, %v725_v39  ;;  %vm997_vm0 = vcmask 7168   ;;  %4031 = vrsqrt.f32 %v5723_v49  ;;  %v749_v54 = vmul.f32 %v4022_v41, %v5637_v27  ;;  %v7282_v41 = vld [vmem:[#allocation14_spill] sm:$0xff]  ;;  %v7286_v49 = vld [vmem:[#allocation20_spill] sm:$0xff] }
  0xf7   : > { %v974_v35 = vpop.permute.xlu0 %973  ;;  %vm759_vm1 = vcmp.eq.f32.partialorder %v5668_v51, 0.0  ;;  %v760_v36 = vand.u32 2147483648, %v5668_v51  ;;  %v504_v30 = vmul.f32 %v7281_v23, %v7280_v4  ;;  %v742_v5 = vmul.f32 %v4024_v19, %v5644_v50 }
  0xf8   : > { %7279 = vst [vmem:[#allocation51_spill] sm:$0xff] %v5734_v59  ;;  %v976_v52 = vpop.permute.xlu1 %975  ;;  %v4026_v48 = vpop.eup %4025  ;;  %vm764_vm3 = vcmp.eq.f32.partialorder %v5691_v16, inf  ;;  %vm505_vm4 = vcmp.eq.f32.partialorder %v7280_v4, inf  ;;  %4033 = vrsqrt.f32 %v5719_v18  ;;  %v998_v53 = vsel %vm997_vm0, %v974_v35, 0.0 }
  0xf9   : > { %v999_v39 = vsel %vm997_vm0, %v976_v52, 0.0  ;;  %v511_v33 = vmul.f32 %v7283_v9, %v7282_v41  ;;  %vm771_vm5 = vcmp.eq.f32.partialorder %v5703_v15, inf  ;;  %4035 = vrsqrt.f32 %v5734_v59 }
  0xfa   : > { %v508_v23 = vand.u32 2147483648, %v7280_v4  ;;  %vm512_vm6 = vcmp.eq.f32.partialorder %v7282_v41, inf  ;;  %v751_v6 = vsel %vm750_vm12, %v5637_v27, %v749_v54  ;;  %v756_v35 = vmul.f32 %v4026_v48, %v5668_v51 }
  0xfb   : > { %v506_v52 = vsel %vm505_vm4, %v7280_v4, %v504_v30  ;;  %vm507_vm7 = vcmp.eq.f32.partialorder %v7280_v4, 0.0  ;;  %v744_v32 = vsel %vm743_vm11, %v5644_v50, %v742_v5  ;;  %v1000_v0 = vadd.f32 %v999_v39, %v998_v53  ;;  %v7285_v39 = vld [vmem:[#allocation13_spill] sm:$0xff] }
  0xfc   : > { %v4028_v9 = vpop.eup %4027  ;;  %v515_v21 = vand.u32 2147483648, %v7282_v41  ;;  %v513_v48 = vsel %vm512_vm6, %v7282_v41, %v511_v33  ;;  %vm514_vm8 = vcmp.eq.f32.partialorder %v7282_v41, 0.0  ;;  %v5772_v4 = vsel %vm752_vm14, %v753_v2, %v751_v6  ;;  %v7288_v6 = vld [vmem:[#allocation16_spill] sm:$0xff] }
  0xfd   : > { %7284 = vst [vmem:[#allocation12_spill] sm:$0xff] %v5772_v4  ;;  %v5776_v5 = vsel %vm500_vm10, %v501_v57, %v499_v3  ;;  %v5778_v53 = vsel %vm507_vm7, %v508_v23, %v506_v52  ;;  %v518_v38 = vmul.f32 %v7286_v49, %v7285_v39  ;;  %v5784_v33 = vsel %vm745_vm13, %v746_v44, %v744_v32  ;;  %v7292_v23 = vld [vmem:[#allocation22_spill] sm:$0xff] }
  0xfe   : > { %v4030_v30 = vpop.eup %4029  ;;  %7287 = vst [vmem:[#allocation18_spill] sm:$0xff] %v5784_v33  ;;  %v758_v27 = vsel %vm757_vm15, %v5668_v51, %v756_v35  ;;  %v763_v2 = vmul.f32 %v4028_v9, %v5691_v16  ;;  %v5792_v57 = vsel %vm514_vm8, %v515_v21, %v513_v48  ;;  %vm519_vm9 = vcmp.eq.f32.partialorder %v7285_v39, inf }
  0xff   : > { %v978_v19 = vpop.permute.xlu0 %977  ;;  %v980_v55 = vpop.permute.xlu1 %979  ;;  %4037 = vrsqrt.f32 %v7288_v6  ;;  %v770_v50 = vmul.f32 %v4030_v30, %v5703_v15  ;;  %v522_v41 = vand.u32 2147483648, %v7285_v39  ;;  %vm521_vm10 = vcmp.eq.f32.partialorder %v7285_v39, 0.0 }
 0x100   : > { %v1001_v54 = vsel %vm997_vm0, %v978_v19, 0.0  ;;  %v5796_v49 = vpop.eup %4031  ;;  %4039 = vrsqrt.f32 %v5772_v4  ;;  %v1003_v44 = vsel %vm997_vm0, %v980_v55, 0.0  ;;  %v7291_v19 = vld [vmem:[#allocation15_spill] sm:$0xff]  ;;  %v520_v55 = vsel %vm519_vm9, %v7285_v39, %v518_v38 }
 0x101   : > { %v1002_v3 = vadd.f32 %v1001_v54, %v1000_v0  ;;  %7289 = vst [vmem:[#allocation14_spill] sm:$0xff] %v5796_v49  ;;  %4041 = vrsqrt.f32 %v5784_v33  ;;  %v5806_v0 = vsel %vm759_vm1, %v760_v36, %v758_v27  ;;  %v525_v35 = vmul.f32 %v7292_v23, %v7291_v19  ;;  %v7294_v23 = vld [vmem:[#allocation19_spill] sm:$0xff] }
 0x102   : > { %7290 = vst [vmem:[#allocation21_spill] sm:$0xff] %v5806_v0  ;;  %v4034_v52 = vpop.eup %4033  ;;  %v5814_v54 = vsel %vm764_vm3, %v5691_v16, %v763_v2  ;;  %vm526_vm11 = vcmp.eq.f32.partialorder %v7291_v19, inf  ;;  %4043 = vrsqrt.f32 %v7294_v23  ;;  %v5827_v38 = vsel %vm771_vm5, %v5703_v15, %v770_v50 }
 0x103   : > { %v982_v21 = vpop.permute.xlu0 %981  ;;  %7293 = vst [vmem:[#allocation13_spill] sm:$0xff] %v5814_v54  ;;  %v4036_v51 = vpop.eup %4035  ;;  %v1004_v27 = vadd.f32 %v1003_v44, %v1002_v3  ;;  %7295 = vst [vmem:[#allocation20_spill] sm:$0xff] %v5827_v38  ;;  %v5835_v30 = vsel %vm521_vm10, %v522_v41, %v520_v55  ;;  %v527_v3 = vsel %vm526_vm11, %v7291_v19, %v525_v35  ;;  %v529_v44 = vand.u32 2147483648, %v7291_v19  ;;  %v7301_v54 = vld [vmem:[#allocation24_spill] sm:$0xff] }
 0x104   : > { %v1005_v2 = vsel %vm997_vm0, %v982_v21, 0.0  ;;  %v5840_v50 = vmul.f32 %v4036_v51, %v5734_v59  ;;  %vm528_vm12 = vcmp.eq.f32.partialorder %v7291_v19, 0.0  ;;  %vm533_vm13 = vcmp.eq.f32.partialorder %v7288_v6, inf  ;;  %v7298_v21 = vld [vmem:[#allocation17_spill] sm:$0xff] }
 0x105   : > { %v1006_v4 = vadd.f32 %v1005_v2, %v1004_v27  ;;  %vm547_vm14 = vcmp.eq.f32.partialorder %v7298_v21, inf  ;;  %vm535_vm15 = vcmp.eq.f32.partialorder %v7288_v6, 0.0  ;;  %vm540_vm1 = vcmp.eq.f32.partialorder %v7294_v23, inf }
 0x106   : > { %7297 = vst [vmem:[#allocation15_spill] sm:$0xff] %v5840_v50  ;;  %v550_v27 = vand.u32 2147483648, %v7298_v21  ;;  %vm549_vm3 = vcmp.eq.f32.partialorder %v7298_v21, 0.0  ;;  %4045 = vrsqrt.f32 %v5776_v5  ;;  %vm542_vm4 = vcmp.eq.f32.partialorder %v7294_v23, 0.0 }
 0x107   : > { %v984_v61 = vpop.permute.xlu1 %983  ;;  %4047 = vrsqrt.f32 %v5778_v53  ;;  %vm554_vm5 = vcmp.eq.f32.partialorder %v5776_v5, inf  ;;  %vm561_vm6 = vcmp.eq.f32.partialorder %v5778_v53, inf  ;;  %vm568_vm7 = vcmp.eq.f32.partialorder %v5792_v57, inf }
 0x108   : > { %v1007_v50 = vsel %vm997_vm0, %v984_v61, 0.0  ;;  %4049 = vrsqrt.f32 %v5792_v57  ;;  %vm575_vm8 = vcmp.eq.f32.partialorder %v5835_v30, inf  ;;  %vm563_vm10 = vcmp.eq.f32.partialorder %v5778_v53, 0.0 }
 0x109   : > { %4051 = vrsqrt.f32 %v5835_v30  ;;  %vm570_vm11 = vcmp.eq.f32.partialorder %v5792_v57, 0.0 }
 0x119   : > { %v2056_v9 = vpop.f32.mrb[0].mxu0 }
 0x11a   : > { %v2542_v36 = vmul.f32 %v2056_v9, %v5307_v45  ;;  %v2058_v48 = vpop.f32.mrb[1].mxu0  ;;  %v5833_v9 = vmul.f32 %v4034_v52, %v5719_v18  ;;  %v546_v52 = vmul.f32 %v5300_v8, %v7298_v21  ;;  %v4038_v8 = vpop.eup %4037 }
 0x11b   : > { %v2543_v32 = vmul.f32 %v2058_v48, %v5309_v42  ;;  %v5860_v2 = vpop.eup %4039 }
 0x11c   : > { %7296 = vst [vmem:[#allocation16_spill] sm:$0xff] %v5833_v9  ;;  %7299 = vst [vmem:[#allocation22_spill] sm:$0xff] %v5860_v2  ;;  %v548_v49 = vsel %vm547_vm14, %v7298_v21, %v546_v52  ;;  %v5867_v19 = vpop.eup %4041  ;;  %v1008_v2 = vadd.f32 %v1007_v50, %v1006_v4  ;;  %v532_v9 = vmul.f32 %v4038_v8, %v7288_v6  ;;  %v7302_v8 = vld [vmem:[#allocation23_spill] sm:$0xff]  ;;  %v7304_v21 = vld [vmem:[#allocation25_spill] sm:$0xff] }
 0x11d   : > { %v2062_v0 = vpop.f32.mrb[2].mxu0  ;;  %7300 = vst [vmem:[#allocation19_spill] sm:$0xff] %v5867_v19  ;;  %v4044_v19 = vpop.eup %4043  ;;  %v5881_v4 = vsel %vm549_vm3, %v550_v27, %v548_v49  ;;  %v7305_v27 = vld [vmem:[#allocation26_spill] sm:$0xff] }
 0x11e   : > { %v2193_v48 = vpop.f32.mrb[0].mxu1  ;;  %v2550_v55 = vmul.f32 %v2062_v0, %v5313_v62  ;;  %v2064_v35 = vpop.f32.mrb[3].mxu0  ;;  %v5856_v0 = vsel %vm528_vm12, %v529_v44, %v527_v3  ;;  %vm577_vm12 = vcmp.eq.f32.partialorder %v5835_v30, 0.0  ;;  %vm603_vm3 = vcmp.eq.f32.partialorder %v5881_v4, inf }
 0x11f   : > { %v2544_v39 = vmul.f32 %v2193_v48, %v5311_v11  ;;  %v2195_v41 = vpop.f32.mrb[1].mxu1  ;;  %v2551_v51 = vmul.f32 %v2064_v35, %v5327_v58  ;;  %v986_v48 = vpop.permute.xlu0 %985  ;;  %4053 = vrsqrt.f32 %v5856_v0  ;;  %vm582_vm9 = vcmp.eq.f32.partialorder %v5856_v0, inf }
 0x120   : > { %v2545_v33 = vmul.f32 %v2195_v41, %v5315_v25  ;;  %v2574_v38 = vadd.f32 %v2550_v55, %v2542_v36  ;;  %v1009_v52 = vsel %vm997_vm0, %v986_v48, 0.0 }
 0x121   : > { %v2583_v35 = vadd.f32 %v2551_v51, %v2543_v32  ;;  %v2068_v61 = vpop.f32.mrb[4].mxu0 }
 0x122   : > { %v2199_v41 = vpop.f32.mrb[2].mxu1  ;;  %v2558_v44 = vmul.f32 %v2068_v61, %v5382_v56  ;;  %v2070_v55 = vpop.f32.mrb[5].mxu0 }
 0x123   : > { %v2552_v36 = vmul.f32 %v2199_v41, %v5321_v28  ;;  %v2201_v3 = vpop.f32.mrb[3].mxu1  ;;  %v2559_v59 = vmul.f32 %v2070_v55, %v7301_v54 }
 0x124   : > { %v2553_v51 = vmul.f32 %v2201_v3, %v5342_v31  ;;  %v2575_v41 = vadd.f32 %v2574_v38, %v2558_v44  ;;  %v539_v44 = vmul.f32 %v4044_v19, %v7294_v23 }
 0x125   : > { %v2592_v15 = vadd.f32 %v2552_v36, %v2544_v39  ;;  %v2584_v32 = vadd.f32 %v2583_v35, %v2559_v59  ;;  %v2074_v18 = vpop.f32.mrb[6].mxu0  ;;  %v5886_v39 = vadd.f32 %v1009_v52, %v1008_v2  ;;  %v988_v59 = vpop.permute.xlu1 %987  ;;  %v534_v35 = vsel %vm533_vm13, %v7288_v6, %v532_v9  ;;  %v7307_v9 = vld [vmem:[#allocation27_spill] sm:$0xff] }
 0x126   : > { %v2601_v50 = vadd.f32 %v2553_v51, %v2545_v33  ;;  %v2205_v3 = vpop.f32.mrb[4].mxu1  ;;  %v2566_v33 = vmul.f32 %v2074_v18, %v7305_v27  ;;  %v2076_v36 = vpop.f32.mrb[7].mxu0  ;;  %v7306_v51 = vld [vmem:[#allocation28_spill] sm:$0xff]  ;;  %vm584_vm13 = vcmp.eq.f32.partialorder %v5856_v0, 0.0 }
 0x127   : > { %v2560_v48 = vmul.f32 %v2205_v3, %v7302_v8  ;;  %v2207_v16 = vpop.f32.mrb[5].mxu1  ;;  %7303 = vst [vmem:[#allocation17_spill] sm:$0xff] %v5886_v39  ;;  %v2567_v52 = vmul.f32 %v2076_v36, %v7306_v51 }
 0x128   : > { %v2561_v49 = vmul.f32 %v2207_v16, %v7304_v21  ;;  %v2576_v61 = vadd.f32 %v2575_v41, %v2566_v33  ;;  %v4046_v41 = vpop.eup %4045  ;;  %v7310_v33 = vld [vmem:[#allocation29_spill] sm:$0xff] }
 0x129   : > { %v2593_v2 = vadd.f32 %v2592_v15, %v2560_v48  ;;  %v2585_v19 = vadd.f32 %v2584_v32, %v2567_v52  ;;  %v5905_v15 = vsel %vm997_vm0, %v988_v59, 0.0  ;;  %v7309_v48 = vand.u32 2147483648, %v7288_v6 }
 0x12a   : > { %v2602_v16 = vadd.f32 %v2601_v50, %v2561_v49  ;;  %v2211_v18 = vpop.f32.mrb[6].mxu1  ;;  %v2080_v63 = vpop.f32.mrb[8].mxu0  ;;  %7308 = vst [vmem:[#allocation24_spill] sm:$0xff] %v5905_v15  ;;  %v2577_v49 = vrot.slane %v2576_v61, 4  ;;  %v541_v32 = vsel %vm540_vm1, %v7294_v23, %v539_v44  ;;  %vm556_vm0 = vcmp.eq.f32.partialorder %v5776_v5, 0.0 }
 0x12b   : > { %v2568_v55 = vmul.f32 %v2211_v18, %v7307_v9  ;;  %v2213_v39 = vpop.f32.mrb[7].mxu1  ;;  %v5911_v50 = vsel %vm535_vm15, %v7309_v48, %v534_v35  ;;  %v2901_v38 = vmul.f32 %v2080_v63, %v5307_v45  ;;  %v2082_v3 = vpop.f32.mrb[9].mxu0  ;;  %v2586_v59 = vrot.slane %v2585_v19, 4 }
 0x12c   : > { %v2569_v36 = vmul.f32 %v2213_v39, %v7310_v33  ;;  %v2902_v18 = vmul.f32 %v2082_v3, %v5309_v42  ;;  %4055 = vrsqrt.f32 %v5911_v50  ;;  %v2578_v39 = vadd.f32 %v2577_v49, %v2576_v61  ;;  %v4048_v48 = vpop.eup %4047 }
 0x12d   : > { %v2594_v52 = vadd.f32 %v2593_v2, %v2568_v55  ;;  %v7311_v3 = vand.u32 2147483648, %v7294_v23  ;;  %v2587_v6 = vadd.f32 %v2586_v59, %v2585_v19  ;;  %v4050_v17 = vpop.eup %4049  ;;  %4057 = vrsqrt.f32 %v5881_v4 }
 0x12e   : > { %v2603_v35 = vadd.f32 %v2602_v16, %v2569_v36  ;;  %v2217_v44 = vpop.f32.mrb[8].mxu1  ;;  %v2086_v2 = vpop.f32.mrb[10].mxu0  ;;  %v553_v36 = vmul.f32 %v4046_v41, %v5776_v5  ;;  %v560_v41 = vmul.f32 %v4048_v48, %v5778_v53  ;;  %v567_v13 = vmul.f32 %v4050_v17, %v5792_v57 }
 0x12f   : > { %v2595_v55 = vrot.slane %v2594_v52, 4  ;;  %v5931_v16 = vsel %vm542_vm4, %v7311_v3, %v541_v32  ;;  %v2903_v63 = vmul.f32 %v2217_v44, %v5311_v11  ;;  %v2219_v1 = vpop.f32.mrb[9].mxu1  ;;  %v2909_v61 = vmul.f32 %v2086_v2, %v5313_v62  ;;  %v2088_v49 = vpop.f32.mrb[11].mxu0 }
 0x130   : > { %v2604_v15 = vrot.slane %v2603_v35, 4  ;;  %v2904_v23 = vmul.f32 %v2219_v1, %v5315_v25  ;;  %v2910_v32 = vmul.f32 %v2088_v49, %v5327_v58  ;;  %v4052_v44 = vpop.eup %4051  ;;  %v2579_v2 = vrot.slane %v2578_v39, 2 }
 0x131   : > { %v2596_v3 = vadd.f32 %v2595_v55, %v2594_v52  ;;  %v2933_v19 = vadd.f32 %v2909_v61, %v2901_v38  ;;  %v555_v1 = vsel %vm554_vm5, %v5776_v5, %v553_v36  ;;  %4059 = vrsqrt.f32 %v5931_v16  ;;  %v4054_v38 = vpop.eup %4053 }
 0x132   : > { %v2223_v22 = vpop.f32.mrb[10].mxu1  ;;  %v2942_v24 = vadd.f32 %v2910_v32, %v2902_v18  ;;  %v2092_v60 = vpop.f32.mrb[12].mxu0  ;;  %v2588_v52 = vrot.slane %v2587_v6, 2  ;;  %v2605_v55 = vadd.f32 %v2604_v15, %v2603_v35  ;;  %vm589_vm14 = vcmp.eq.f32.partialorder %v5911_v50, inf }
 0x133   : > { %v2911_v61 = vmul.f32 %v2223_v22, %v5321_v28  ;;  %v2225_v49 = vpop.f32.mrb[11].mxu1  ;;  %v2917_v59 = vmul.f32 %v2092_v60, %v5382_v56  ;;  %v2094_v18 = vpop.f32.mrb[13].mxu0  ;;  %v2597_v37 = vrot.slane %v2596_v3, 2  ;;  %v574_v22 = vmul.f32 %v4052_v44, %v5835_v30 }
 0x134   : > { %v2912_v36 = vmul.f32 %v2225_v49, %v5342_v31  ;;  %v2918_v32 = vmul.f32 %v2094_v18, %v7301_v54  ;;  %v2580_v60 = vadd.f32 %v2579_v2, %v2578_v39  ;;  %v581_v49 = vmul.f32 %v4054_v38, %v5856_v0 }
 0x135   : > { %v2951_v15 = vadd.f32 %v2911_v61, %v2903_v63  ;;  %v2934_v35 = vadd.f32 %v2933_v19, %v2917_v59  ;;  %v2589_v18 = vadd.f32 %v2588_v52, %v2587_v6  ;;  %v2606_v43 = vrot.slane %v2605_v55, 2 }
 0x136   : > { %v2960_v29 = vadd.f32 %v2912_v36, %v2904_v23  ;;  %v2229_v47 = vpop.f32.mrb[12].mxu1  ;;  %v2943_v46 = vadd.f32 %v2942_v24, %v2918_v32  ;;  %v2098_v14 = vpop.f32.mrb[14].mxu0  ;;  %v7312_v39 = vand.u32 2147483648, %v5776_v5  ;;  %v562_v6 = vsel %vm561_vm6, %v5778_v53, %v560_v41 }
 0x137   : > { %v4056_v34 = vpop.eup %4055  ;;  %v2919_v48 = vmul.f32 %v2229_v47, %v7302_v8  ;;  %v2231_v17 = vpop.f32.mrb[13].mxu1  ;;  %v2925_v63 = vmul.f32 %v2098_v14, %v7305_v27  ;;  %v2598_v23 = vadd.f32 %v2597_v37, %v2596_v3  ;;  %v569_v14 = vsel %vm568_vm7, %v5792_v57, %v567_v13 }
 0x138   : > { %v2100_v19 = vpop.f32.mrb[15].mxu0  ;;  %v2920_v59 = vmul.f32 %v2231_v17, %v7304_v21  ;;  %v558_v24 = vsel %vm556_vm0, %v7312_v39, %v555_v1  ;;  %v2581_v38 = vrot.slane %v2580_v60, 1  ;;  %v576_v5 = vsel %vm575_vm8, %v5835_v30, %v574_v22  ;;  %v4058_v1 = vpop.eup %4057 }
 0x139   : > { %v2926_v44 = vmul.f32 %v2100_v19, %v7306_v51  ;;  %v2952_v2 = vadd.f32 %v2951_v15, %v2919_v48  ;;  %v2935_v47 = vadd.f32 %v2934_v35, %v2925_v63  ;;  %vm591_vm15 = vcmp.eq.f32.partialorder %v5911_v50, 0.0 }
 0x13a   : > { %v2961_v52 = vadd.f32 %v2960_v29, %v2920_v59  ;;  %v2235_v61 = vpop.f32.mrb[14].mxu1  ;;  %v2104_v32 = vpop.f32.mrb[16].mxu0  ;;  %v2590_v41 = vrot.slane %v2589_v18, 1  ;;  %v2607_v37 = vadd.f32 %v2606_v43, %v2605_v55  ;;  %v583_v13 = vsel %vm582_vm9, %v5856_v0, %v581_v49 }
 0x13b   : > { %v2944_v36 = vadd.f32 %v2943_v46, %v2926_v44  ;;  %v2927_v3 = vmul.f32 %v2235_v61, %v7307_v9  ;;  %v2237_v15 = vpop.f32.mrb[15].mxu1  ;;  %v2106_v35 = vpop.f32.mrb[17].mxu0  ;;  %v2936_v46 = vrot.slane %v2935_v47, 4  ;;  %v588_v17 = vmul.f32 %v4056_v34, %v5911_v50 }
 0x13c   : > { %v4060_v29 = vpop.eup %4059  ;;  %v2928_v48 = vmul.f32 %v2237_v15, %v7310_v33  ;;  %v2599_v63 = vrot.slane %v2598_v23, 1  ;;  %v7313_v19 = vand.u32 2147483648, %v5778_v53  ;;  %v7314_v55 = vand.u32 2147483648, %v5792_v57 }
 0x13d   : > { %v2582_v44 = vadd.f32 %v2581_v38, %v2580_v60  ;;  %v7315_v34 = vand.u32 2147483648, %v5835_v30  ;;  %v7317_v53 = vand.u32 2147483648, %v5856_v0  ;;  %vm596_vm1 = vcmp.eq.f32.partialorder %v5931_v16, inf }
 0x13e   : > { %v565_v43 = vsel %vm563_vm10, %v7313_v19, %v562_v6  ;;  %v5994_v59 = vsel %vm570_vm11, %v7314_v55, %v569_v14  ;;  %v2241_v39 = vpop.f32.mrb[16].mxu1  ;;  %v2110_v61 = vpop.f32.mrb[18].mxu0  ;;  %v609_v57 = vsel %vm608_vm2, %v558_v24, 0.0  ;;  %v2591_v60 = vadd.f32 %v2590_v41, %v2589_v18 }
 0x13f   : > { %v6001_v15 = vsel %vm577_vm12, %v7315_v34, %v576_v5  ;;  %v6007_v6 = vsel %vm584_vm13, %v7317_v53, %v583_v13  ;;  %v2608_v14 = vrot.slane %v2607_v37, 1  ;;  %v2953_v38 = vadd.f32 %v2952_v2, %v2927_v3  ;;  %v2243_v55 = vpop.f32.mrb[17].mxu1  ;;  %v2112_v30 = vpop.f32.mrb[19].mxu0 }
 0x140   : > { %7316 = vst [vmem:[#allocation23_spill] sm:$0xff] %v6001_v15  ;;  %7318 = vst [vmem:[#allocation25_spill] sm:$0xff] %v6007_v6  ;;  %v2945_v19 = vrot.slane %v2944_v36, 4  ;;  %v2937_v5 = vadd.f32 %v2936_v46, %v2935_v47  ;;  %v590_v34 = vsel %vm589_vm14, %v5911_v50, %v588_v17  ;;  %v602_v0 = vmul.f32 %v4058_v1, %v5881_v4 }
 0x141   : > { %v610_v13 = vsel %vm608_vm2, %v565_v43, 0.0  ;;  %v2600_v53 = vadd.f32 %v2599_v63, %v2598_v23  ;;  %v2954_v49 = vrot.slane %v2953_v38, 4  ;;  %v2962_v22 = vadd.f32 %v2961_v52, %v2928_v48 }
 0x142   : > { %v595_v24 = vmul.f32 %v4060_v29, %v5931_v16  ;;  %v7319_v18 = vrot.slane %v5385_v40, %v4278_v12  ;;  %v3214_v41 = vmul.f32 %v2104_v32, %v5307_v45  ;;  %v3215_v47 = vmul.f32 %v2106_v35, %v5309_v42  ;;  %v2247_v46 = vpop.f32.mrb[18].mxu1  ;;  %v2116_v17 = vpop.f32.mrb[20].mxu0 }
 0x143   : > { %v3216_v3 = vmul.f32 %v2241_v39, %v5311_v11  ;;  %v7320_v1 = vrot.slane %v5385_v40, %v4298_v20  ;;  %v2609_v63 = vadd.f32 %v2608_v14, %v2607_v37  ;;  %v2946_v52 = vadd.f32 %v2945_v19, %v2944_v36  ;;  %v2249_v29 = vpop.f32.mrb[19].mxu1  ;;  %v2118_v43 = vpop.f32.mrb[21].mxu0 }
 0x144   : > { %v2690_v2 = vsub.f32 %v2582_v44, %v7319_v18  ;;  %v2963_v48 = vrot.slane %v2962_v22, 4  ;;  %vm598_vm4 = vcmp.eq.f32.partialorder %v5931_v16, 0.0  ;;  %vm605_vm5 = vcmp.eq.f32.partialorder %v5881_v4, 0.0 }
 0x145   : > { %v2691_v23 = vsub.f32 %v2591_v60, %v7320_v1  ;;  %v2938_v45 = vrot.slane %v2937_v5, 2  ;;  %v3217_v42 = vmul.f32 %v2243_v55, %v5315_v25  ;;  %v3222_v11 = vmul.f32 %v2110_v61, %v5313_v62 }
 0x146   : > { %v3224_v32 = vmul.f32 %v2247_v46, %v5321_v28  ;;  %v7321_v35 = vrot.slane %v5421_v26, %v4278_v12  ;;  %v2955_v37 = vadd.f32 %v2954_v49, %v2953_v38  ;;  %v3223_v36 = vmul.f32 %v2112_v30, %v5327_v58  ;;  %v2253_v61 = vpop.f32.mrb[20].mxu1  ;;  %v2122_v28 = vpop.f32.mrb[22].mxu0 }
 0x147   : > { %v7322_v39 = vand.u32 2147483648, %v5911_v50  ;;  %v2698_v14 = vmul.f32 %v2690_v2, %v2690_v2  ;;  %v3246_v19 = vadd.f32 %v3222_v11, %v3214_v41  ;;  %v3225_v62 = vmul.f32 %v2249_v29, %v5342_v31  ;;  %v2255_v30 = vpop.f32.mrb[21].mxu1  ;;  %v2124_v18 = vpop.f32.mrb[23].mxu0 }
 0x148   : > { %v2692_v44 = vsub.f32 %v2600_v53, %v7321_v35  ;;  %v3264_v25 = vadd.f32 %v3224_v32, %v3216_v3  ;;  %v2699_v55 = vmul.f32 %v2691_v23, %v2691_v23  ;;  %v7324_v53 = vrot.slane %v5421_v26, %v4298_v20  ;;  %v7348_v20 = vld [vmem:[#allocation39_spill] sm:$0xff] }
 0x149   : > { %v6040_v60 = vsel %vm591_vm15, %v7322_v39, %v590_v34  ;;  %v2964_v38 = vadd.f32 %v2963_v48, %v2962_v22  ;;  %v3255_v58 = vadd.f32 %v3223_v36, %v3215_v47  ;;  %v2939_v46 = vadd.f32 %v2938_v45, %v2937_v5 }
 0x14a   : > { %7323 = vst [vmem:[#allocation26_spill] sm:$0xff] %v6040_v60  ;;  %v2693_v49 = vsub.f32 %v2609_v63, %v7324_v53  ;;  %v2947_v50 = vrot.slane %v2946_v52, 2  ;;  %v3273_v34 = vadd.f32 %v3225_v62, %v3217_v42  ;;  %v3230_v2 = vmul.f32 %v2116_v17, %v5382_v56  ;;  %v2259_v5 = vpop.f32.mrb[22].mxu1  ;;  %v2330_v63 = vpop.f32.mrb[24].mxu0 }
 0x14b   : > { %v2700_v41 = vmul.f32 %v2692_v44, %v2692_v44  ;;  %v2956_v3 = vrot.slane %v2955_v37, 2  ;;  %v597_v31 = vsel %vm596_vm1, %v5931_v16, %v595_v24  ;;  %v604_v1 = vsel %vm603_vm3, %v5881_v4, %v602_v0  ;;  %v2261_v45 = vpop.f32.mrb[23].mxu1  ;;  %v2332_v42 = vpop.f32.mrb[25].mxu0 }
 0x14c   : > { %v6053_v23 = vadd.f32 1e-18, %v2698_v14  ;;  %v3247_v22 = vadd.f32 %v3246_v19, %v3230_v2  ;;  %v3232_v47 = vmul.f32 %v2253_v61, %v7302_v8  ;;  %v611_v48 = vadd.f32 %v610_v13, %v609_v57 }
 0x14d   : > { %v6056_v29 = vadd.f32 1e-18, %v2699_v55  ;;  %v2701_v56 = vmul.f32 %v2693_v49, %v2693_v49  ;;  %v2965_v17 = vrot.slane %v2964_v38, 2  ;;  %v612_v24 = vsel %vm608_vm2, %v5994_v59, 0.0 }
 0x14e   : > { %7325 = vst [vmem:[#allocation28_spill] sm:$0xff] %v6053_v23  ;;  %v2940_v11 = vrot.slane %v2939_v46, 1  ;;  %v2948_v32 = vadd.f32 %v2947_v50, %v2946_v52  ;;  %v3265_v0 = vadd.f32 %v3264_v25, %v3232_v47  ;;  %v3231_v35 = vmul.f32 %v2118_v43, %v7301_v54  ;;  %v2467_v39 = vpop.f32.mrb[24].mxu1  ;;  %v2336_v14 = vpop.f32.mrb[26].mxu0 }
 0x14f   : > { %7326 = vst [vmem:[#allocation27_spill] sm:$0xff] %v6056_v29  ;;  %v6061_v44 = vadd.f32 1e-18, %v2700_v41  ;;  %v2957_v8 = vadd.f32 %v2956_v3, %v2955_v37  ;;  %v3233_v36 = vmul.f32 %v2255_v30, %v7304_v21  ;;  %v3238_v57 = vmul.f32 %v2122_v28, %v7305_v27  ;;  %v2469_v43 = vpop.f32.mrb[25].mxu1  ;;  %v2338_v37 = vpop.f32.mrb[27].mxu0 }
 0x150   : > { %4061 = vrsqrt.f32 %v6053_v23  ;;  %v3256_v13 = vadd.f32 %v3255_v58, %v3231_v35  ;;  %v7328_v19 = vand.u32 2147483648, %v5931_v16  ;;  %v7330_v54 = vand.u32 2147483648, %v5881_v4 }
 0x151   : > { %7327 = vst [vmem:[#allocation29_spill] sm:$0xff] %v6061_v44  ;;  %4063 = vrsqrt.f32 %v6056_v29  ;;  %v2966_v27 = vadd.f32 %v2965_v17, %v2964_v38  ;;  %v6080_v25 = vadd.f32 %v612_v24, %v611_v48  ;;  %v6083_v16 = vadd.f32 1e-18, %v2701_v56  ;;  %v7337_v24 = vld [vmem:[#allocation32_spill] sm:$0xff] }
 0x152   : > { %v6070_v59 = vsel %vm598_vm4, %v7328_v19, %v597_v31  ;;  %v6076_v52 = vsel %vm605_vm5, %v7330_v54, %v604_v1  ;;  %v2941_v61 = vadd.f32 %v2940_v11, %v2939_v46  ;;  %v2949_v28 = vrot.slane %v2948_v32, 1  ;;  %v2473_v50 = vpop.f32.mrb[26].mxu1  ;;  %v2342_v2 = vpop.f32.mrb[28].mxu0  ;;  %v7334_v31 = vld [vmem:[#allocation30_spill] sm:$0xff]  ;;  %v7335_v1 = vld [vmem:[#allocation31_spill] sm:$0xff] }
 0x153   : > { %7329 = vst [vmem:[#allocation52_spill] sm:$0xff] %v6070_v59  ;;  %7331 = vst [vmem:[#allocation53_spill] sm:$0xff] %v6076_v52  ;;  %4065 = vrsqrt.f32 %v6061_v44  ;;  %v2958_v4 = vrot.slane %v2957_v8, 1  ;;  %v3274_v55 = vadd.f32 %v3273_v34, %v3233_v36  ;;  %v3248_v53 = vadd.f32 %v3247_v22, %v3238_v57  ;;  %v2475_v48 = vpop.f32.mrb[27].mxu1  ;;  %v2344_v56 = vpop.f32.mrb[29].mxu0 }
 0x154   : > { %7332 = vst [vmem:[#allocation54_spill] sm:$0xff] %v6080_v25  ;;  %7333 = vst [vmem:[#allocation55_spill] sm:$0xff] %v6083_v16  ;;  %v3240_v58 = vmul.f32 %v2259_v5, %v7307_v9  ;;  %v3239_v38 = vmul.f32 %v2124_v18, %v7306_v51  ;;  %v3241_v30 = vmul.f32 %v2261_v45, %v7310_v33  ;;  %v2967_v41 = vrot.slane %v2966_v27, 1  ;;  %v7347_v25 = vld [vmem:[#allocation38_spill] sm:$0xff] }
 0x155   : > { %v3249_v3 = vrot.slane %v3248_v53, 4  ;;  %v2546_v46 = vmul.f32 %v2330_v63, %v7334_v31  ;;  %v2547_v47 = vmul.f32 %v2332_v42, %v7335_v1  ;;  %4067 = vrsqrt.f32 %v6083_v16  ;;  %v7338_v63 = vld [vmem:[#allocation33_spill] sm:$0xff]  ;;  %v7339_v42 = vld [vmem:[#allocation34_spill] sm:$0xff] }
 0x156   : > { %v7336_v34 = vrot.slane %v5385_v40, %v4272_v10  ;;  %v2950_v22 = vadd.f32 %v2949_v28, %v2948_v32  ;;  %v3266_v51 = vadd.f32 %v3265_v0, %v3240_v58  ;;  %v2959_v18 = vadd.f32 %v2958_v4, %v2957_v8  ;;  %v2479_v57 = vpop.f32.mrb[28].mxu1  ;;  %v2348_v19 = vpop.f32.mrb[30].mxu0  ;;  %v7340_v4 = vld [vmem:[#allocation35_spill] sm:$0xff]  ;;  %v7341_v58 = vld [vmem:[#allocation36_spill] sm:$0xff] }
 0x157   : > { %v3250_v33 = vadd.f32 %v3249_v3, %v3248_v53  ;;  %v3257_v5 = vadd.f32 %v3256_v13, %v3239_v38  ;;  %v3275_v17 = vadd.f32 %v3274_v55, %v3241_v30  ;;  %v2548_v11 = vmul.f32 %v2467_v39, %v7337_v24  ;;  %v6099_v32 = vpop.f32.mrb[31].mxu0 }
 0x158   : > { %v3045_v9 = vsub.f32 %v2941_v61, %v7336_v34  ;;  %v3267_v45 = vrot.slane %v3266_v51, 4  ;;  %v2549_v35 = vmul.f32 %v2469_v43, %v7338_v63  ;;  %v2554_v36 = vmul.f32 %v2336_v14, %v7339_v42  ;;  %v2481_v61 = vpop.f32.mrb[29].mxu1 }
 0x159   : > { %v2968_v54 = vadd.f32 %v2967_v41, %v2966_v27  ;;  %v3251_v49 = vrot.slane %v3250_v33, 2  ;;  %v3258_v62 = vrot.slane %v3257_v5, 4  ;;  %v3276_v21 = vrot.slane %v3275_v17, 4  ;;  %v7342_v27 = vld [vmem:[#allocation6_spill] sm:$0xff] }
 0x15a   : > { %v4062_v0 = vpop.eup %4061  ;;  %v3268_v8 = vadd.f32 %v3267_v45, %v3266_v51  ;;  %v2610_v13 = vadd.f32 %v2554_v36, %v2546_v46  ;;  %v2556_v28 = vmul.f32 %v2473_v50, %v5591_v7  ;;  %v2555_v39 = vmul.f32 %v2338_v37, %v7340_v4  ;;  %v2485_v46 = vpop.f32.mrb[30].mxu1 }
 0x15b   : > { %v4064_v55 = vpop.eup %4063  ;;  %v3252_v43 = vadd.f32 %v3251_v49, %v3250_v33  ;;  %v3259_v53 = vadd.f32 %v3258_v62, %v3257_v5  ;;  %v3277_v14 = vadd.f32 %v3276_v21, %v3275_v17  ;;  %v2557_v38 = vmul.f32 %v2475_v48, %v7341_v58  ;;  %v6108_v45 = vpop.f32.mrb[32].mxu0 }
 0x15c   : > { %vm2716_vm0 = vcmp.eq.f32.partialorder %v6053_v23, inf  ;;  %v7343_v30 = vrot.slane %v5385_v40, %v7342_v27  ;;  %v3269_v3 = vrot.slane %v3268_v8, 2  ;;  %v2628_v34 = vadd.f32 %v2556_v28, %v2548_v11  ;;  %v2487_v21 = vpop.f32.mrb[31].mxu1  ;;  %v6110_v33 = vpop.f32.mrb[33].mxu0 }
 0x15d   : > { %v2619_v51 = vadd.f32 %v2555_v39, %v2547_v47  ;;  %v4066_v50 = vpop.eup %4065  ;;  %v3053_v37 = vmul.f32 %v3045_v9, %v3045_v9  ;;  %v3253_v36 = vrot.slane %v3252_v43, 1  ;;  %v3260_v49 = vrot.slane %v3259_v53, 2 }
 0x15e   : > { %v3046_v41 = vsub.f32 %v2950_v22, %v7343_v30  ;;  %v3278_v62 = vrot.slane %v3277_v14, 2  ;;  %v7344_v48 = vrot.slane %v5421_v26, %v4272_v10  ;;  %v3270_v17 = vadd.f32 %v3269_v3, %v3268_v8  ;;  %v7345_v30 = vld [vmem:[#allocation37_spill] sm:$0xff]  ;;  %v6121_v10 = vpop.f32.mrb[32].mxu1 }
 0x15f   : > { %v2637_v22 = vadd.f32 %v2557_v38, %v2549_v35  ;;  %v2562_v11 = vmul.f32 %v2342_v2, %v7345_v30  ;;  %v7346_v47 = vrot.slane %v5421_v26, %v7342_v27  ;;  %v3254_v39 = vadd.f32 %v3253_v36, %v3252_v43  ;;  %v4068_v59 = vpop.eup %4067  ;;  %v6129_v43 = vpop.f32.mrb[33].mxu1  ;;  %v7351_v36 = vld [vmem:[#allocation5_spill] sm:$0xff] }
 0x160   : > { %v3047_v5 = vsub.f32 %v2959_v18, %v7344_v48  ;;  %v3261_v9 = vadd.f32 %v3260_v49, %v3259_v53  ;;  %v3279_v52 = vadd.f32 %v3278_v62, %v3277_v14  ;;  %v3271_v60 = vrot.slane %v3270_v17, 1  ;;  %v6123_v18 = vpop.f32.mrb[34].mxu0  ;;  %v7353_v48 = vld [vmem:[#allocation44_spill] sm:$0xff]  ;;  %v7354_v27 = vld [vmem:[#allocation45_spill] sm:$0xff] }
 0x161   : > { %v3048_v28 = vsub.f32 %v2968_v54, %v7346_v47  ;;  %v2611_v6 = vadd.f32 %v2610_v13, %v2562_v11  ;;  %v2564_v15 = vmul.f32 %v2479_v57, %v7347_v25  ;;  %v2563_v12 = vmul.f32 %v2344_v56, %v7348_v20  ;;  %v6131_v53 = vpop.f32.mrb[35].mxu0  ;;  %v7350_v56 = vld [vmem:[#allocation40_spill] sm:$0xff] }
 0x162   : > { %v2715_v2 = vmul.f32 %v4062_v0, %v6053_v23  ;;  %vm2723_vm6 = vcmp.eq.f32.partialorder %v6056_v29, inf  ;;  %v6127_v35 = vadd.f32 1e-18, %v3053_v37  ;;  %v3054_v54 = vmul.f32 %v3046_v41, %v3046_v41  ;;  %v2497_v25 = vpop.f32.mrb[34].mxu1  ;;  %v6139_v30 = vpop.f32.mrb[36].mxu0 }
 0x163   : > { %v3262_v8 = vrot.slane %v3261_v9, 1  ;;  %v3055_v13 = vmul.f32 %v3047_v5, %v3047_v5  ;;  %v2629_v57 = vadd.f32 %v2628_v34, %v2564_v15  ;;  %v2620_v14 = vadd.f32 %v2619_v51, %v2563_v12  ;;  %v2499_v34 = vpop.f32.mrb[35].mxu1 }
 0x164   : > { %7349 = vst [vmem:[#allocation30_spill] sm:$0xff] %v6127_v35  ;;  %v2565_v38 = vmul.f32 %v2481_v61, %v7350_v56  ;;  %v3056_v3 = vmul.f32 %v3048_v28, %v3048_v28  ;;  %v7352_v49 = vrot.slane %v5385_v40, %v7351_v36  ;;  %v3280_v62 = vrot.slane %v3279_v52, 1 }
 0x165   : > { %v2570_v37 = vmul.f32 %v2348_v19, %v7353_v48  ;;  %v3272_v11 = vadd.f32 %v3271_v60, %v3270_v17  ;;  %v3263_v41 = vadd.f32 %v3262_v8, %v3261_v9  ;;  %v2572_v20 = vmul.f32 %v2485_v46, %v7354_v27  ;;  %v6148_v19 = vpop.f32.mrb[37].mxu0  ;;  %v7357_v46 = vld [vmem:[#allocation47_spill] sm:$0xff]  ;;  %v7358_v17 = vld [vmem:[#allocation48_spill] sm:$0xff] }
 0x166   : > { %v3358_v0 = vsub.f32 %v3254_v39, %v7352_v49  ;;  %v2638_v47 = vadd.f32 %v2637_v22, %v2565_v38  ;;  %v6144_v12 = vsel %vm2716_vm0, %v6053_v23, %v2715_v2  ;;  %v2722_v15 = vmul.f32 %v4064_v55, %v6056_v29  ;;  %v6168_v38 = vpop.f32.mrb[36].mxu1 }
 0x167   : > { %7355 = vst [vmem:[#allocation31_spill] sm:$0xff] %v6144_v12  ;;  %4069 = vrsqrt.f32 %v6127_v35  ;;  %v2612_v61 = vadd.f32 %v2611_v6, %v2570_v37  ;;  %v6150_v60 = vadd.f32 1e-18, %v3054_v54  ;;  %v2630_v51 = vadd.f32 %v2629_v57, %v2572_v20  ;;  %v7362_v54 = vld [vmem:[#allocation9_spill] sm:$0xff] }
 0x168   : > { %v2571_v5 = vmul.f32 %v6099_v32, %v7357_v46  ;;  %v2573_v22 = vmul.f32 %v2487_v21, %v7358_v17  ;;  %v6156_v28 = vmul.f32 %v4066_v50, %v6061_v44  ;;  %v6158_v39 = vadd.f32 1e-18, %v3055_v13  ;;  %v6170_v21 = vpop.f32.mrb[38].mxu0 }
 0x169   : > { %7356 = vst [vmem:[#allocation32_spill] sm:$0xff] %v6150_v60  ;;  %v6160_v55 = vadd.f32 1e-18, %v3056_v3  ;;  %v3366_v9 = vmul.f32 %v3358_v0, %v3358_v0  ;;  %v7361_v6 = vrot.slane %v5421_v26, %v7351_v36  ;;  %v7363_v20 = vrot.slane %v5385_v40, %v7362_v54  ;;  %v6174_v0 = vpop.f32.mrb[37].mxu1  ;;  %v6176_v37 = vpop.f32.mrb[39].mxu0 }
 0x16a   : > { %7359 = vst [vmem:[#allocation33_spill] sm:$0xff] %v6156_v28  ;;  %v3281_v57 = vadd.f32 %v3280_v62, %v3279_v52  ;;  %v2613_v32 = vrot.slane %v2612_v61, 4  ;;  %v2631_v50 = vrot.slane %v2630_v51, 4  ;;  %v2621_v13 = vadd.f32 %v2620_v14, %v2571_v5 }
 0x16b   : > { %7360 = vst [vmem:[#allocation34_spill] sm:$0xff] %v6160_v55  ;;  %v3360_v2 = vsub.f32 %v3272_v11, %v7361_v6  ;;  %v3359_v8 = vsub.f32 %v3263_v41, %v7363_v20  ;;  %v2639_v49 = vadd.f32 %v2638_v47, %v2573_v22  ;;  %v2905_v3 = vmul.f32 %v6108_v45, %v7334_v31  ;;  %v6197_v22 = vpop.f32.mrb[40].mxu0 }
 0x16c   : > { %v6181_v40 = vsel %vm2723_vm6, %v6056_v29, %v2722_v15  ;;  %v6184_v52 = vmul.f32 %v4068_v59, %v6083_v16  ;;  %4071 = vrsqrt.f32 %v6150_v60  ;;  %v2614_v14 = vadd.f32 %v2613_v32, %v2612_v61  ;;  %v6195_v59 = vpop.f32.mrb[38].mxu1 }
 0x16d   : > { %7364 = vst [vmem:[#allocation35_spill] sm:$0xff] %v6181_v40  ;;  %4073 = vrsqrt.f32 %v6158_v39  ;;  %v2632_v45 = vadd.f32 %v2631_v50, %v2630_v51  ;;  %v2622_v11 = vrot.slane %v2621_v13, 4  ;;  %v6190_v41 = vadd.f32 1e-18, %v3366_v9  ;;  %v6199_v61 = vpop.f32.mrb[39].mxu1  ;;  %v6201_v51 = vpop.f32.mrb[41].mxu0 }
 0x16e   : > { %7365 = vst [vmem:[#allocation36_spill] sm:$0xff] %v6184_v52  ;;  %4075 = vrsqrt.f32 %v6160_v55  ;;  %v3368_v47 = vmul.f32 %v3360_v2, %v3360_v2  ;;  %v7367_v15 = vrot.slane %v5421_v26, %v7362_v54  ;;  %v3367_v6 = vmul.f32 %v3359_v8, %v3359_v8  ;;  %v6216_v40 = vpop.f32.mrb[40].mxu1 }
 0x16f   : > { %7366 = vst [vmem:[#allocation40_spill] sm:$0xff] %v6190_v41  ;;  %v2615_v20 = vrot.slane %v2614_v14, 2  ;;  %v2633_v62 = vrot.slane %v2632_v45, 2  ;;  %v2623_v52 = vadd.f32 %v2622_v11, %v2621_v13  ;;  %v2640_v32 = vrot.slane %v2639_v49, 4  ;;  %v6220_v12 = vpop.f32.mrb[41].mxu1 }
 0x170   : > { %v3361_v5 = vsub.f32 %v3281_v57, %v7367_v15  ;;  %v2906_v9 = vmul.f32 %v6110_v33, %v7335_v1  ;;  %v2907_v26 = vmul.f32 %v6121_v10, %v7337_v24  ;;  %v2908_v2 = vmul.f32 %v6129_v43, %v7338_v63  ;;  %v6218_v43 = vpop.f32.mrb[42].mxu0 }
 0x171   : > { %v4070_v57 = vpop.eup %4069  ;;  %v2616_v50 = vadd.f32 %v2615_v20, %v2614_v14  ;;  %v2634_v8 = vadd.f32 %v2633_v62, %v2632_v45  ;;  %v2624_v15 = vrot.slane %v2623_v52, 2  ;;  %v2913_v13 = vmul.f32 %v6123_v18, %v7339_v42  ;;  %v6222_v18 = vpop.f32.mrb[43].mxu0 }
 0x172   : > { %vm3071_vm7 = vcmp.eq.f32.partialorder %v6127_v35, inf  ;;  %v2641_v11 = vadd.f32 %v2640_v32, %v2639_v49  ;;  %v2915_v16 = vmul.f32 %v2497_v25, %v5591_v7  ;;  %v2914_v33 = vmul.f32 %v6131_v53, %v7340_v4  ;;  %v6234_v36 = vpop.f32.mrb[44].mxu0 }
 0x173   : > { %v2916_v10 = vmul.f32 %v2499_v34, %v7341_v58  ;;  %v2617_v14 = vrot.slane %v2616_v50, 1  ;;  %v2635_v62 = vrot.slane %v2634_v8, 1  ;;  %v2625_v45 = vadd.f32 %v2624_v15, %v2623_v52 }
 0x174   : > { %v2969_v20 = vadd.f32 %v2913_v13, %v2905_v3  ;;  %v3070_v49 = vmul.f32 %v4070_v57, %v6127_v35  ;;  %vm3078_vm8 = vcmp.eq.f32.partialorder %v6150_v60, inf  ;;  %v2642_v25 = vrot.slane %v2641_v11, 2  ;;  %v7368_v3 = vld [vmem:[#allocation37_spill] sm:$0xff]  ;;  %v7369_v13 = vld [vmem:[#allocation38_spill] sm:$0xff]  ;;  %v6232_v57 = vpop.f32.mrb[42].mxu1 }
 0x175   : > { %v2987_v53 = vadd.f32 %v2915_v16, %v2907_v26  ;;  %v2978_v32 = vadd.f32 %v2914_v33, %v2906_v9  ;;  %v6226_v34 = vadd.f32 1e-18, %v3368_v47  ;;  %v3369_v28 = vmul.f32 %v3361_v5, %v3361_v5  ;;  %v2523_v26 = vpop.f32.mrb[43].mxu1  ;;  %v7371_v33 = vld [vmem:[#allocation39_spill] sm:$0xff] }
 0x176   : > { %v2626_v29 = vrot.slane %v2625_v45, 1  ;;  %v2996_v23 = vadd.f32 %v2916_v10, %v2908_v2  ;;  %v4072_v44 = vpop.eup %4071  ;;  %v2618_v55 = vadd.f32 %v2617_v14, %v2616_v50  ;;  %v2643_v52 = vadd.f32 %v2642_v25, %v2641_v11  ;;  %v6241_v2 = vpop.f32.mrb[45].mxu0 }
 0x177   : > { %v2921_v15 = vmul.f32 %v6139_v30, %v7368_v3  ;;  %v2923_v54 = vmul.f32 %v6168_v38, %v7369_v13  ;;  %v6236_v16 = vpop.eup %4073  ;;  %4077 = vrsqrt.f32 %v6190_v41  ;;  %v6239_v47 = vadd.f32 1e-18, %v3367_v6 }
 0x178   : > { %v2636_v5 = vadd.f32 %v2635_v62, %v2634_v8  ;;  %v2627_v9 = vadd.f32 %v2626_v29, %v2625_v45  ;;  %v6243_v50 = vpop.eup %4075  ;;  %v2644_v30 = vrot.slane %v2643_v52, 1  ;;  %v2922_v10 = vmul.f32 %v6148_v19, %v7371_v33  ;;  %v7373_v29 = vld [vmem:[#allocation41_spill] sm:$0xff]  ;;  %v7374_v8 = vld [vmem:[#allocation4_spill] sm:$0xff] }
 0x179   : > { %7370 = vst [vmem:[#allocation44_spill] sm:$0xff] %v6243_v50  ;;  %v2970_v11 = vadd.f32 %v2969_v20, %v2921_v15  ;;  %v2988_v38 = vadd.f32 %v2987_v53, %v2923_v54  ;;  %v3077_v14 = vmul.f32 %v4072_v44, %v6150_v60  ;;  %4079 = vrsqrt.f32 %v6226_v34  ;;  %v2527_v20 = vpop.f32.mrb[44].mxu1  ;;  %v6257_v53 = vpop.f32.mrb[46].mxu0 }
 0x17a   : > { %v6250_v6 = vadd.f32 1e-18, %v3369_v28  ;;  %v7375_v62 = vrot.slane %v7373_v29, %v7374_v8  ;;  %v2645_v41 = vadd.f32 %v2644_v30, %v2643_v52  ;;  %v2979_v50 = vadd.f32 %v2978_v32, %v2922_v10  ;;  %v7377_v28 = vld [vmem:[#allocation42_spill] sm:$0xff]  ;;  %v2529_v32 = vpop.f32.mrb[45].mxu1  ;;  %v6269_v15 = vpop.f32.mrb[47].mxu0 }
 0x17b   : > { %v2924_v54 = vmul.f32 %v6174_v0, %v7350_v56  ;;  %v6262_v44 = vsel %vm3071_vm7, %v6127_v35, %v3070_v49  ;;  %4081 = vrsqrt.f32 %v6239_v47  ;;  %v7379_v0 = vld [vmem:[#allocation7_spill] sm:$0xff]  ;;  %v2929_v49 = vmul.f32 %v6170_v21, %v7353_v48 }
 0x17c   : > { %7372 = vst [vmem:[#allocation45_spill] sm:$0xff] %v6250_v6  ;;  %v2694_v45 = vsub.f32 %v2618_v55, %v7375_v62  ;;  %7376 = vst [vmem:[#allocation47_spill] sm:$0xff] %v6262_v44  ;;  %v7378_v55 = vrot.slane %v7377_v28, %v7374_v8  ;;  %v7380_v30 = vrot.slane %v7373_v29, %v7379_v0  ;;  %4083 = vrsqrt.f32 %v6250_v6 }
 0x17d   : > { %v2997_v62 = vadd.f32 %v2996_v23, %v2924_v54  ;;  %v2931_v19 = vmul.f32 %v6195_v59, %v7354_v27  ;;  %v6281_v25 = vsel %vm3078_vm8, %v6150_v60, %v3077_v14  ;;  %v7382_v21 = vrot.slane %v7377_v28, %v7379_v0 }
 0x17e   : > { %v2696_v52 = vsub.f32 %v2636_v5, %v7378_v55  ;;  %v2695_v10 = vsub.f32 %v2627_v9, %v7380_v30  ;;  %7381 = vst [vmem:[#allocation48_spill] sm:$0xff] %v6281_v25  ;;  %v2930_v5 = vmul.f32 %v6176_v37, %v7357_v46  ;;  %v2932_v9 = vmul.f32 %v6199_v61, %v7358_v17  ;;  %v2533_v30 = vpop.f32.mrb[46].mxu1 }
 0x17f   : > { %v2702_v23 = vmul.f32 %v2694_v45, %v2694_v45  ;;  %v2697_v54 = vsub.f32 %v2645_v41, %v7382_v21  ;;  %v2971_v55 = vadd.f32 %v2970_v11, %v2929_v49  ;;  %v2989_v59 = vadd.f32 %v2988_v38, %v2931_v19  ;;  %v2535_v25 = vpop.f32.mrb[47].mxu1 }
 0x180   : > { %v2704_v44 = vmul.f32 %v2696_v52, %v2696_v52  ;;  %v2980_v35 = vadd.f32 %v2979_v50, %v2930_v5  ;;  %v2998_v14 = vadd.f32 %v2997_v62, %v2932_v9  ;;  %v3218_v6 = vmul.f32 %v6197_v22, %v7334_v31 }
 0x181   : > { %v2703_v60 = vmul.f32 %v2695_v10, %v2695_v10  ;;  %v2972_v37 = vrot.slane %v2971_v55, 4  ;;  %v2990_v8 = vrot.slane %v2989_v59, 4  ;;  %v3219_v61 = vmul.f32 %v6201_v51, %v7335_v1  ;;  %v6295_v45 = vpop.eup %4077 }
 0x182   : > { %v2981_v0 = vrot.slane %v2980_v35, 4  ;;  %v2999_v41 = vrot.slane %v2998_v14, 4  ;;  %v3220_v11 = vmul.f32 %v6216_v40, %v7337_v24  ;;  %v3221_v50 = vmul.f32 %v6220_v12, %v7338_v63 }
 0x183   : > { %v2705_v38 = vmul.f32 %v2697_v54, %v2697_v54  ;;  %v2973_v19 = vadd.f32 %v2972_v37, %v2971_v55  ;;  %v2991_v31 = vadd.f32 %v2990_v8, %v2989_v59  ;;  %v3226_v22 = vmul.f32 %v6218_v43, %v7339_v42  ;;  %v6303_v52 = vpop.eup %4079 }
 0x184   : > { %v2982_v10 = vadd.f32 %v2981_v0, %v2980_v35  ;;  %v3000_v1 = vadd.f32 %v2999_v41, %v2998_v14  ;;  %v3228_v51 = vmul.f32 %v6232_v57, %v5591_v7  ;;  %v3227_v62 = vmul.f32 %v6222_v18, %v7340_v4 }
 0x185   : > { %v2974_v24 = vrot.slane %v2973_v19, 2  ;;  %v2992_v40 = vrot.slane %v2991_v31, 2  ;;  %v3282_v49 = vadd.f32 %v3226_v22, %v3218_v6  ;;  %v3229_v63 = vmul.f32 %v2523_v26, %v7341_v58  ;;  %v6310_v12 = vpop.eup %4081 }
 0x186   : > { %v2983_v8 = vrot.slane %v2982_v10, 2  ;;  %v3001_v5 = vrot.slane %v3000_v1, 2  ;;  %v3300_v42 = vadd.f32 %v3228_v51, %v3220_v11  ;;  %v3291_v43 = vadd.f32 %v3227_v62, %v3219_v61  ;;  %v6314_v57 = vpop.eup %4083 }
 0x187   : > { %v2975_v9 = vadd.f32 %v2974_v24, %v2973_v19  ;;  %v2993_v35 = vadd.f32 %v2992_v40, %v2991_v31  ;;  %v3309_v0 = vadd.f32 %v3229_v63, %v3221_v50  ;;  %v3234_v7 = vmul.f32 %v6234_v36, %v7368_v3 }
 0x188   : > { %v2984_v4 = vadd.f32 %v2983_v8, %v2982_v10  ;;  %v3002_v18 = vadd.f32 %v3001_v5, %v3000_v1  ;;  %v3236_v6 = vmul.f32 %v2527_v20, %v7369_v13  ;;  %v3235_v58 = vmul.f32 %v6241_v2, %v7371_v33 }
 0x189   : > { %v2976_v26 = vrot.slane %v2975_v9, 1  ;;  %v2994_v21 = vrot.slane %v2993_v35, 1  ;;  %v3283_v54 = vadd.f32 %v3282_v49, %v3234_v7  ;;  %v3237_v55 = vmul.f32 %v2529_v32, %v7350_v56  ;;  %v7390_v7 = vld [vmem:[#allocation23_spill] sm:$0xff] }
 0x18a   : > { %v2985_v59 = vrot.slane %v2984_v4, 1  ;;  %v3003_v14 = vrot.slane %v3002_v18, 1  ;;  %v3301_v37 = vadd.f32 %v3300_v42, %v3236_v6  ;;  %v3292_v61 = vadd.f32 %v3291_v43, %v3235_v58  ;;  %v7389_v43 = vld [vmem:[#allocation49_spill] sm:$0xff] }
 0x18b   : > { %v6320_v41 = vadd.f32 1e-18, %v2702_v23  ;;  %v2977_v36 = vadd.f32 %v2976_v26, %v2975_v9  ;;  %v3310_v3 = vadd.f32 %v3309_v0, %v3237_v55  ;;  %v3242_v11 = vmul.f32 %v6257_v53, %v7353_v48  ;;  %v7383_v48 = vld [vmem:[#allocation2_spill] sm:$0xff] }
 0x18c   : > { %v6324_v13 = vadd.f32 1e-18, %v2704_v44  ;;  %v2995_v20 = vadd.f32 %v2994_v21, %v2993_v35  ;;  %v3244_v2 = vmul.f32 %v2533_v30, %v7354_v27  ;;  %v3243_v33 = vmul.f32 %v6269_v15, %v7357_v46  ;;  %v7386_v15 = vld [vmem:[#allocation6_spill] sm:$0xff] }
 0x18d   : > { %v6329_v56 = vadd.f32 1e-18, %v2703_v60  ;;  %v2986_v32 = vadd.f32 %v2985_v59, %v2984_v4  ;;  %v3284_v50 = vadd.f32 %v3283_v54, %v3242_v11  ;;  %v3245_v23 = vmul.f32 %v2535_v25, %v7358_v17  ;;  %v7391_v26 = vld [vmem:[#allocation54_spill] sm:$0xff]  ;;  %v7392_v54 = vld [vmem:[#allocation43_spill] sm:$0xff] }
 0x18e   : > { %v6332_v19 = vadd.f32 1e-18, %v2705_v38  ;;  %v3004_v31 = vadd.f32 %v3003_v14, %v3002_v18  ;;  %v3302_v22 = vadd.f32 %v3301_v37, %v3244_v2  ;;  %v3293_v10 = vadd.f32 %v3292_v61, %v3243_v33  ;;  %v7393_v37 = vld [vmem:[#allocation25_spill] sm:$0xff]  ;;  %v7395_v2 = vld [vmem:[#allocation26_spill] sm:$0xff] }
 0x18f   : > { %4085 = vrsqrt.f32 %v6320_v41  ;;  %v7384_v53 = vrot.slane %v7373_v29, %v7383_v48  ;;  %v3285_v44 = vrot.slane %v3284_v50, 4  ;;  %v3311_v30 = vadd.f32 %v3310_v3, %v3245_v23 }
 0x190   : > { %4087 = vrsqrt.f32 %v6324_v13  ;;  %v7385_v60 = vrot.slane %v7377_v28, %v7383_v48  ;;  %v3303_v17 = vrot.slane %v3302_v22, 4  ;;  %v3294_v25 = vrot.slane %v3293_v10, 4 }
 0x191   : > { %v3049_v27 = vsub.f32 %v2977_v36, %v7384_v53  ;;  %4089 = vrsqrt.f32 %v6329_v56  ;;  %v7387_v38 = vrot.slane %v7373_v29, %v7386_v15  ;;  %v3286_v51 = vadd.f32 %v3285_v44, %v3284_v50  ;;  %v7394_v36 = vld [vmem:[#allocation46_spill] sm:$0xff] }
 0x192   : > { %v3051_v46 = vsub.f32 %v2995_v20, %v7385_v60  ;;  %v3312_v62 = vrot.slane %v3311_v30, 4  ;;  %4091 = vrsqrt.f32 %v6332_v19  ;;  %v7388_v24 = vrot.slane %v7377_v28, %v7386_v15 }
 0x193   : > { %v3050_v1 = vsub.f32 %v2986_v32, %v7387_v38  ;;  %v3304_v49 = vadd.f32 %v3303_v17, %v3302_v22  ;;  %v3295_v63 = vadd.f32 %v3294_v25, %v3293_v10  ;;  %v3057_v8 = vmul.f32 %v3049_v27, %v3049_v27 }
 0x194   : > { %v3052_v40 = vsub.f32 %v3004_v31, %v7388_v24  ;;  %v3287_v5 = vrot.slane %v3286_v51, 2  ;;  %v3313_v42 = vadd.f32 %v3312_v62, %v3311_v30  ;;  %vm614_vm9 = vcmask 260096   ;;  %v7396_v31 = vld [vmem:[#allocation52_spill] sm:$0xff]  ;;  %v7397_v30 = vld [vmem:[#allocation53_spill] sm:$0xff] }
 0x195   : > { %vm778_vm10 = vcmp.eq.f32.partialorder %v7389_v43, inf  ;;  %v3059_v9 = vmul.f32 %v3051_v46, %v3051_v46  ;;  %v3305_v35 = vrot.slane %v3304_v49, 2  ;;  %v3296_v0 = vrot.slane %v3295_v63, 2  ;;  %v7398_v62 = vld [vmem:[#allocation5_spill] sm:$0xff] }
 0x196   : > { %v615_v4 = vsel %vm614_vm9, %v7390_v7, 0.0  ;;  %v3058_v18 = vmul.f32 %v3050_v1, %v3050_v1  ;;  %v3288_v6 = vadd.f32 %v3287_v5, %v3286_v51  ;;  %v3314_v58 = vrot.slane %v3313_v42, 2  ;;  %v7403_v7 = vld [vmem:[#allocation9_spill] sm:$0xff] }
 0x197   : > { %v616_v21 = vadd.f32 %v615_v4, %v7391_v26  ;;  %vm766_vm11 = vcmp.eq.f32.partialorder %v7392_v54, 0.0  ;;  %v3060_v55 = vmul.f32 %v3052_v40, %v3052_v40  ;;  %v3306_v59 = vadd.f32 %v3305_v35, %v3304_v49 }
 0x198   : > { %v3297_v14 = vadd.f32 %v3296_v0, %v3295_v63  ;;  %v617_v61 = vsel %vm608_vm2, %v7393_v37, 0.0  ;;  %vm773_vm12 = vcmp.eq.f32.partialorder %v7394_v36, 0.0  ;;  %v3289_v3 = vrot.slane %v3288_v6, 1  ;;  %v7400_v63 = vld [vmem:[#allocation10_spill] sm:$0xff] }
 0x199   : > { %v3315_v11 = vadd.f32 %v3314_v58, %v3313_v42  ;;  %v618_v20 = vadd.f32 %v617_v61, %v616_v21  ;;  %v619_v33 = vsel %vm608_vm2, %v7395_v2, 0.0  ;;  %v6360_v32 = vadd.f32 1e-18, %v3057_v8  ;;  %v6364_v10 = vpop.eup %4085 }
 0x19a   : > { %v3307_v50 = vrot.slane %v3306_v59, 1  ;;  %v3298_v23 = vrot.slane %v3297_v14, 1  ;;  %v621_v22 = vsel %vm608_vm2, %v7396_v31, 0.0  ;;  %v6366_v53 = vadd.f32 1e-18, %v3059_v9  ;;  %v6370_v46 = vpop.eup %4087 }
 0x19b   : > { %v3290_v27 = vadd.f32 %v3289_v3, %v3288_v6  ;;  %v620_v44 = vadd.f32 %v619_v33, %v618_v20  ;;  %v623_v60 = vsel %vm614_vm9, %v7397_v30, 0.0  ;;  %v3316_v38 = vrot.slane %v3315_v11, 1  ;;  %v6372_v1 = vpop.eup %4089  ;;  %v7405_v6 = vld [vmem:[#allocation11_spill] sm:$0xff]  ;;  %v7408_v20 = vld [vmem:[#allocation24_spill] sm:$0xff] }
 0x19c   : > { %v3308_v17 = vadd.f32 %v3307_v50, %v3306_v59  ;;  %v3299_v25 = vadd.f32 %v3298_v23, %v3297_v14  ;;  %vm672_vm13 = vcmask 253952   ;;  %v6374_v51 = vadd.f32 1e-18, %v3058_v18  ;;  %v6381_v42 = vpop.eup %4091  ;;  %v7409_v33 = vld [vmem:[#allocation16_spill] sm:$0xff]  ;;  %v7410_v23 = vld [vmem:[#allocation34_spill] sm:$0xff] }
 0x19d   : > { %v7399_v24 = vrot.slane %v7373_v29, %v7398_v62  ;;  %v622_v49 = vadd.f32 %v621_v22, %v620_v44  ;;  %v7401_v8 = vrot.slane %v7400_v63, 7  ;;  %v6383_v9 = vadd.f32 1e-18, %v3060_v55  ;;  %v7412_v22 = vld [vmem:[#allocation51_spill] sm:$0xff] }
 0x19e   : > { %v7402_v35 = vrot.slane %v7377_v28, %v7398_v62  ;;  %v7404_v4 = vrot.slane %v7373_v29, %v7403_v7  ;;  %v7406_v58 = vrot.slane %v7405_v6, 7  ;;  %4093 = vrsqrt.f32 %v6360_v32  ;;  %v7407_v29 = vld [vmem:[#allocation17_spill] sm:$0xff]  ;;  %v7425_v6 = vld [vmem:[#allocation18_spill] sm:$0xff]  ;;  %v7440_v44 = vld [vmem:[#allocation55_spill] sm:$0xff] }
 0x19f   : > { %v3362_v40 = vsub.f32 %v3290_v27, %v7399_v24  ;;  %v673_v5 = vsel %vm672_vm13, %v7401_v8, 0.0  ;;  %v624_v59 = vadd.f32 %v623_v60, %v622_v49  ;;  %v6396_v55 = vmul.f32 %v6236_v16, %v6158_v39  ;;  %v7411_v16 = vld [vmem:[#allocation44_spill] sm:$0xff]  ;;  %v7415_v60 = vld [vmem:[#allocation13_spill] sm:$0xff] }
 0x1a0   : > { %v3364_v0 = vsub.f32 %v3308_v17, %v7402_v35  ;;  %v3363_v18 = vsub.f32 %v3299_v25, %v7404_v4  ;;  %v674_v26 = vsel %vm672_vm13, %v7406_v58, 0.0  ;;  %4095 = vrsqrt.f32 %v6366_v53  ;;  %v7413_v27 = vld [vmem:[#allocation40_spill] sm:$0xff]  ;;  %v7421_v35 = vld [vmem:[#allocation50_spill] sm:$0xff]  ;;  %v7426_v58 = vld [vmem:[#allocation19_spill] sm:$0xff] }
 0x1a1   : > { %v3370_v21 = vmul.f32 %v3362_v40, %v3362_v40  ;;  %v675_v14 = vadd.f32 %v674_v26, %v673_v5  ;;  %v3317_v61 = vadd.f32 %v3316_v38, %v3315_v11  ;;  %625 = vadd.xlane.f32.xlu0 %v624_v59  ;;  %v1012_v2 = vadd.f32 %v7408_v20, %v7407_v29  ;;  %v7418_v40 = vld [vmem:[#allocation20_spill] sm:$0xff]  ;;  %v7428_v59 = vld [vmem:[#allocation22_spill] sm:$0xff]  ;;  %v7430_v29 = vld [vmem:[#allocation21_spill] sm:$0xff] }
 0x1a2   : > { %v3372_v37 = vmul.f32 %v3364_v0, %v3364_v0  ;;  %v3371_v3 = vmul.f32 %v3363_v18, %v3363_v18  ;;  %v779_v50 = vsel %vm778_vm10, %v7389_v43, %v7409_v33  ;;  %vm780_vm2 = vcmp.eq.f32.partialorder %v7389_v43, 0.0  ;;  %v7422_v0 = vld [vmem:[#allocation14_spill] sm:$0xff]  ;;  %v7424_v18 = vld [vmem:[#allocation15_spill] sm:$0xff] }
 0x1a3   : > { %676 = vadd.xlane.f32.xlu1 %v675_v14  ;;  %v6408_v31 = vmul.f32 %v7411_v16, %v7410_v23  ;;  %4097 = vrsqrt.f32 %v6374_v51  ;;  %v6411_v11 = vadd.f32 1e-18, %v3370_v21  ;;  %vm785_vm14 = vcmp.eq.f32.partialorder %v7412_v22, inf  ;;  %v7427_v21 = vld [vmem:[#allocation12_spill] sm:$0xff]  ;;  %v7432_v33 = vld [vmem:[#allocation27_spill] sm:$0xff] }
 0x1a4   : > { %4099 = vrsqrt.f32 %v6383_v9  ;;  %v6416_v30 = vadd.f32 1e-18, %v3372_v37  ;;  %v7416_v17 = vand.u32 2147483648, %v7392_v54  ;;  %v7417_v38 = vrot.slane %v7377_v28, %v7403_v7  ;;  %v7429_v37 = vld [vmem:[#allocation29_spill] sm:$0xff] }
 0x1a5   : > { %v7419_v49 = vand.u32 2147483648, %v7394_v36  ;;  %v7420_v8 = vand.u32 2147483648, %v7389_v43  ;;  %v791_v54 = vmul.f32 %v7422_v0, %v7421_v35  ;;  %v6441_v4 = vadd.f32 1e-18, %v3371_v3  ;;  %1013 = vadd.xlane.f32.xlu0 %v1012_v2  ;;  %v7431_v2 = vld [vmem:[#allocation28_spill] sm:$0xff] }
 0x1a6   : > { %7414 = vst [vmem:[#allocation37_spill] sm:$0xff] %v6416_v30  ;;  %v6423_v25 = vsel %vm766_vm11, %v7416_v17, %v7415_v60  ;;  %v3365_v24 = vsub.f32 %v3317_v61, %v7417_v38  ;;  %v786_v28 = vsel %vm785_vm14, %v7412_v22, %v7424_v18  ;;  %vm792_vm15 = vcmp.eq.f32.partialorder %v7421_v35, inf }
 0x1a7   : > { %v6433_v63 = vsel %vm773_vm12, %v7419_v49, %v7418_v40  ;;  %v6437_v5 = vsel %vm780_vm2, %v7420_v8, %v779_v50  ;;  %7423 = vst [vmem:[#allocation38_spill] sm:$0xff] %v6441_v4  ;;  %v798_v36 = vmul.f32 %v7426_v58, %v7425_v6  ;;  %4101 = vrsqrt.f32 %v6411_v11 }
 0x1a8   : > { %vm787_vm1 = vcmp.eq.f32.partialorder %v7412_v22, 0.0  ;;  %v788_v43 = vand.u32 2147483648, %v7412_v22  ;;  %vm799_vm3 = vcmp.eq.f32.partialorder %v7425_v6, inf  ;;  %4103 = vrsqrt.f32 %v6416_v30  ;;  %v6462_v20 = vpop.eup %4093 }
 0x1a9   : > { %v795_v26 = vand.u32 2147483648, %v7421_v35  ;;  %v805_v14 = vmul.f32 %v7428_v59, %v7427_v21  ;;  %vm806_vm4 = vcmp.eq.f32.partialorder %v7427_v21, inf  ;;  %vm2730_vm5 = vcmp.eq.f32.partialorder %v7429_v37, inf }
 0x1aa   : > { %v793_v61 = vsel %vm792_vm15, %v7421_v35, %v791_v54  ;;  %vm794_vm0 = vcmp.eq.f32.partialorder %v7421_v35, 0.0  ;;  %v802_v3 = vand.u32 2147483648, %v7425_v6  ;;  %4105 = vrsqrt.f32 %v7430_v29  ;;  %v6470_v60 = vpop.eup %4095 }
 0x1ab   : > { %vm2718_vm6 = vcmp.eq.f32.partialorder %v7431_v2, 0.0  ;;  %vm2725_vm7 = vcmp.eq.f32.partialorder %v7432_v33, 0.0  ;;  %4107 = vrsqrt.f32 %v6441_v4  ;;  %v800_v50 = vsel %vm799_vm3, %v7425_v6, %v798_v36 }
 0x1ac   : > { %vm801_vm8 = vcmp.eq.f32.partialorder %v7425_v6, 0.0  ;;  %v809_v16 = vand.u32 2147483648, %v7427_v21  ;;  %v6474_v17 = vsel %vm787_vm1, %v788_v43, %v786_v28  ;;  %v807_v38 = vsel %vm806_vm4, %v7427_v21, %v805_v14  ;;  %v7434_v14 = vld [vmem:[#allocation33_spill] sm:$0xff] }
 0x1ad   : > { %vm808_vm9 = vcmp.eq.f32.partialorder %v7427_v21, 0.0  ;;  %4109 = vrsqrt.f32 %v6423_v25  ;;  %v6480_v49 = vmul.f32 %v3365_v24, %v3365_v24  ;;  %v796_v8 = vsel %vm794_vm0, %v795_v26, %v793_v61  ;;  %v6485_v0 = vpop.eup %4097 }
 0x1ae   : > { %4111 = vrsqrt.f32 %v6433_v63  ;;  %v803_v22 = vsel %vm801_vm8, %v802_v3, %v800_v50  ;;  %vm813_vm10 = vcmp.eq.f32.partialorder %v7430_v29, inf  ;;  %vm815_vm11 = vcmp.eq.f32.partialorder %v7430_v29, 0.0  ;;  %v6490_v54 = vpop.eup %4099 }
 0x1af   : > { %4113 = vrsqrt.f32 %v6437_v5  ;;  %v810_v18 = vsel %vm808_vm9, %v809_v16, %v807_v38  ;;  %v816_v24 = vand.u32 2147483648, %v7430_v29  ;;  %vm820_vm12 = vcmp.eq.f32.partialorder %v6423_v25, inf  ;;  %v7435_v16 = vld [vmem:[#allocation31_spill] sm:$0xff] }
 0x1b0   : > { %4115 = vrsqrt.f32 %v6474_v17  ;;  %vm822_vm13 = vcmp.eq.f32.partialorder %v6423_v25, 0.0  ;;  %v823_v35 = vand.u32 2147483648, %v6423_v25  ;;  %vm827_vm2 = vcmp.eq.f32.partialorder %v6433_v63, inf }
 0x1b1   : > { %vm846_vm14 = vcmask 252928   ;;  %vm829_vm15 = vcmp.eq.f32.partialorder %v6433_v63, 0.0  ;;  %v830_v28 = vand.u32 2147483648, %v6433_v63  ;;  %v6502_v36 = vpop.eup %4101  ;;  %vm834_vm1 = vcmp.eq.f32.partialorder %v6437_v5, inf }
 0x1b2   : > { %v847_v6 = vsel %vm846_vm14, %v796_v8, 0.0  ;;  %v848_v58 = vsel %vm846_vm14, %v803_v22, 0.0  ;;  %vm836_vm3 = vcmp.eq.f32.partialorder %v6437_v5, 0.0  ;;  %v837_v43 = vand.u32 2147483648, %v6437_v5  ;;  %v6507_v21 = vpop.eup %4103  ;;  %v7437_v22 = vld [vmem:[#allocation35_spill] sm:$0xff] }
 0x1b3   : > { %v849_v26 = vadd.f32 %v848_v58, %v847_v6  ;;  %7433 = vst [vmem:[#allocation39_spill] sm:$0xff] %v6507_v21  ;;  %vm841_vm4 = vcmp.eq.f32.partialorder %v6474_v17, inf  ;;  %vm843_vm0 = vcmp.eq.f32.partialorder %v6474_v17, 0.0  ;;  %v850_v59 = vsel %vm846_vm14, %v810_v18, 0.0 }
 0x1b4   : > { %v2731_v61 = vsel %vm2730_vm5, %v7429_v37, %v7434_v14  ;;  %v4106_v3 = vpop.eup %4105  ;;  %v844_v50 = vand.u32 2147483648, %v6474_v17  ;;  %v7436_v38 = vand.u32 2147483648, %v7431_v2  ;;  %v7438_v6 = vand.u32 2147483648, %v7432_v33 }
 0x1b5   : > { %v2743_v58 = vmul.f32 %v6364_v10, %v6320_v41  ;;  %v6533_v14 = vpop.eup %4107  ;;  %v812_v40 = vmul.f32 %v4106_v3, %v7430_v29  ;;  %vm2732_vm5 = vcmp.eq.f32.partialorder %v7429_v37, 0.0  ;;  %vm2737_vm8 = vcmp.eq.f32.partialorder %v7440_v44, inf }
 0x1b6   : > { %v6522_v8 = vsel %vm2718_vm6, %v7436_v38, %v7435_v16  ;;  %v6529_v18 = vsel %vm2725_vm7, %v7438_v6, %v7437_v22  ;;  %7439 = vst [vmem:[#allocation41_spill] sm:$0xff] %v6533_v14  ;;  %vm2739_vm6 = vcmp.eq.f32.partialorder %v7440_v44, 0.0  ;;  %v851_v16 = vadd.f32 %v850_v59, %v849_v26  ;;  %v7442_v22 = vld [vmem:[#allocation36_spill] sm:$0xff] }
 0x1b7   : > { %v4110_v2 = vpop.eup %4109  ;;  %v7441_v38 = vand.u32 2147483648, %v7429_v37  ;;  %v2738_v6 = vsel %vm2737_vm8, %v7440_v44, %v7442_v22  ;;  %v2740_v10 = vand.u32 2147483648, %v7440_v44  ;;  %v814_v3 = vsel %vm813_vm10, %v7430_v29, %v812_v40 }
 0x1b8   : > { %v4112_v21 = vpop.eup %4111  ;;  %v819_v30 = vmul.f32 %v4110_v2, %v6423_v25  ;;  %vm2744_vm7 = vcmp.eq.f32.partialorder %v6320_v41, inf  ;;  %vm2746_vm9 = vcmp.eq.f32.partialorder %v6320_v41, 0.0  ;;  %v817_v37 = vsel %vm815_vm11, %v816_v24, %v814_v3 }
 0x1b9   : > { %v6541_v33 = vsel %vm2732_vm5, %v7441_v38, %v2731_v61  ;;  %v4114_v26 = vpop.eup %4113  ;;  %v826_v59 = vmul.f32 %v4112_v21, %v6433_v63  ;;  %v2745_v61 = vsel %vm2744_vm7, %v6320_v41, %v2743_v58  ;;  %v2747_v38 = vand.u32 2147483648, %v6320_v41 }
 0x1ba   : > { %v4116_v22 = vpop.eup %4115  ;;  %v821_v40 = vsel %vm820_vm12, %v6423_v25, %v819_v30  ;;  %v833_v2 = vmul.f32 %v4114_v26, %v6437_v5  ;;  %v852_v14 = vsel %vm846_vm14, %v817_v37, 0.0  ;;  %v2750_v4 = vmul.f32 %v6372_v1, %v6329_v56 }
 0x1bb   : > { %v824_v29 = vsel %vm822_vm13, %v823_v35, %v821_v40  ;;  %v828_v24 = vsel %vm827_vm2, %v6433_v63, %v826_v59  ;;  %v840_v21 = vmul.f32 %v4116_v22, %v6474_v17  ;;  %v853_v58 = vadd.f32 %v852_v14, %v851_v16 }
 0x1bc   : > { %v831_v30 = vsel %vm829_vm15, %v830_v28, %v828_v24  ;;  %v835_v3 = vsel %vm834_vm1, %v6437_v5, %v833_v2  ;;  %v854_v26 = vsel %vm846_vm14, %v824_v29, 0.0  ;;  %v2757_v1 = vmul.f32 %v6370_v46, %v6324_v13 }
 0x1bd   : > { %v838_v25 = vsel %vm836_vm3, %v837_v43, %v835_v3  ;;  %v842_v35 = vsel %vm841_vm4, %v6474_v17, %v840_v21  ;;  %v855_v14 = vadd.f32 %v854_v26, %v853_v58  ;;  %v856_v63 = vsel %vm846_vm14, %v831_v30, 0.0 }
 0x1be   : > { %v845_v28 = vsel %vm843_vm0, %v844_v50, %v842_v35  ;;  %v858_v16 = vsel %vm846_vm14, %v838_v25, 0.0  ;;  %vm2751_vm10 = vcmp.eq.f32.partialorder %v6329_v56, inf  ;;  %v2764_v46 = vmul.f32 %v6381_v42, %v6332_v19  ;;  %v7443_v25 = vld [vmem:[#allocation4_spill] sm:$0xff] }
 0x1bf   : > { %v857_v37 = vadd.f32 %v856_v63, %v855_v14  ;;  %v6592_v5 = vsel %vm2739_vm6, %v2740_v10, %v2738_v6  ;;  %v6596_v43 = vsel %vm2746_vm9, %v2747_v38, %v2745_v61  ;;  %v2752_v59 = vsel %vm2751_vm10, %v6329_v56, %v2750_v4 }
 0x1c0   : > { %v860_v17 = vsel %vm846_vm14, %v845_v28, 0.0  ;;  %v2754_v50 = vand.u32 2147483648, %v6329_v56  ;;  %vm2758_vm11 = vcmp.eq.f32.partialorder %v6324_v13, inf  ;;  %4117 = vrsqrt.f32 %v6522_v8 }
 0x1c1   : > { %v859_v42 = vadd.f32 %v858_v16, %v857_v37  ;;  %vm2753_vm12 = vcmp.eq.f32.partialorder %v6329_v56, 0.0  ;;  %v2759_v44 = vsel %vm2758_vm11, %v6324_v13, %v2757_v1  ;;  %vm2765_vm13 = vcmp.eq.f32.partialorder %v6332_v19, inf  ;;  %v7444_v37 = vld [vmem:[#allocation3_spill] sm:$0xff] }
 0x1c2   : > { %v6606_v41 = vsel %vm2753_vm12, %v2754_v50, %v2752_v59  ;;  %v2761_v6 = vand.u32 2147483648, %v6324_v13  ;;  %v2766_v4 = vsel %vm2765_vm13, %v6332_v19, %v2764_v46  ;;  %4119 = vrsqrt.f32 %v6529_v18 }
 0x1c3   : > { %v861_v10 = vadd.f32 %v860_v17, %v859_v42  ;;  %vm2760_vm2 = vcmp.eq.f32.partialorder %v6324_v13, 0.0  ;;  %v2768_v61 = vand.u32 2147483648, %v6332_v19  ;;  %4121 = vrsqrt.f32 %v6541_v33  ;;  %v7445_v42 = vld [vmem:[#allocation7_spill] sm:$0xff] }
 0x1c4   : > { %v3394_v56 = vand.u32 2147483648, %v6239_v47  ;;  %v6615_v38 = vsel %vm2760_vm2, %v2761_v6, %v2759_v44  ;;  %vm2767_vm14 = vcmp.eq.f32.partialorder %v6332_v19, 0.0  ;;  %4123 = vrsqrt.f32 %v6592_v5  ;;  %v3714_v19 = vld [vmem:[%s7125_s2 + $0x2] ss:$4 sm:$0xff] }
 0x1c5   : > { %v6621_v22 = vmul.f32 %v6295_v45, %v7413_v27  ;;  %v6625_v40 = vmul.f32 %v6310_v12, %v6239_v47  ;;  %862 = vadd.xlane.f32.xlu0 %v861_v10  ;;  %v6627_v13 = vsel %vm2767_vm14, %v2768_v61, %v2766_v4  ;;  %4125 = vrsqrt.f32 %v6596_v43  ;;  %v7446_v10 = vld [vmem:[#allocation30_spill] sm:$0xff] }
 0x1c6   : > { %v6631_v2 = vadd.f32 1e-18, %v6480_v49  ;;  %vm2772_vm15 = vcmp.eq.f32.partialorder %v6522_v8, inf  ;;  %vm2774_vm1 = vcmp.eq.f32.partialorder %v6522_v8, 0.0  ;;  %4127 = vrsqrt.f32 %v6606_v41 }
 0x1c7   : > { %v2775_v45 = vand.u32 2147483648, %v6522_v8  ;;  %vm2779_vm3 = vcmp.eq.f32.partialorder %v6529_v18, inf  ;;  %vm2781_vm4 = vcmp.eq.f32.partialorder %v6529_v18, 0.0  ;;  %4129 = vrsqrt.f32 %v6615_v38 }
 0x1c8   : > { %v2782_v12 = vand.u32 2147483648, %v6529_v18  ;;  %vm2786_vm0 = vcmp.eq.f32.partialorder %v6541_v33, inf  ;;  %vm2788_vm5 = vcmp.eq.f32.partialorder %v6541_v33, 0.0  ;;  %4131 = vrsqrt.f32 %v6627_v13 }
 0x1c9   : > { %v2789_v49 = vand.u32 2147483648, %v6541_v33  ;;  %vm2793_vm8 = vcmp.eq.f32.partialorder %v6592_v5, inf  ;;  %vm2795_vm6 = vcmp.eq.f32.partialorder %v6592_v5, 0.0  ;;  %v2796_v29 = vand.u32 2147483648, %v6592_v5 }
 0x1ca   : > { %v4118_v24 = vpop.eup %4117  ;;  %vm2800_vm7 = vcmp.eq.f32.partialorder %v6596_v43, inf  ;;  %vm2802_vm9 = vcmp.eq.f32.partialorder %v6596_v43, 0.0  ;;  %v2803_v21 = vand.u32 2147483648, %v6596_v43  ;;  %vm2807_vm10 = vcmp.eq.f32.partialorder %v6606_v41, inf }
 0x1cb   : > { %v2771_v58 = vmul.f32 %v4118_v24, %v6522_v8  ;;  %vm2809_vm11 = vcmp.eq.f32.partialorder %v6606_v41, 0.0  ;;  %v2810_v30 = vand.u32 2147483648, %v6606_v41  ;;  %vm2814_vm12 = vcmp.eq.f32.partialorder %v6615_v38, inf }
 0x1cc   : > { %v2817_v3 = vand.u32 2147483648, %v6615_v38  ;;  %v4120_v26 = vpop.eup %4119  ;;  %vm2821_vm2 = vcmp.eq.f32.partialorder %v6627_v13, inf  ;;  %v2824_v1 = vand.u32 2147483648, %v6627_v13  ;;  %v6664_v35 = vrot.slane %v3714_v19, %v7443_v25 }
 0x1cd   : > { %v6667_v14 = vrot.slane %v3714_v19, %v7383_v48  ;;  %v4122_v63 = vpop.eup %4121  ;;  %vm3085_vm14 = vcmp.eq.f32.partialorder %v6158_v39, inf  ;;  %v2773_v28 = vsel %vm2772_vm15, %v6522_v8, %v2771_v58  ;;  %v2778_v16 = vmul.f32 %v4120_v26, %v6529_v18 }
 0x1ce   : > { %vm2823_vm13 = vcmp.eq.f32.partialorder %v6627_v13, 0.0  ;;  %v6676_v46 = vrot.slane %v3714_v19, %v7398_v62  ;;  %v6679_v59 = vrot.slane %v3714_v19, %v7444_v37  ;;  %v4124_v17 = vpop.eup %4123  ;;  %v2776_v48 = vsel %vm2774_vm1, %v2775_v45, %v2773_v28 }
 0x1cf   : > { %v2785_v50 = vmul.f32 %v4122_v63, %v6541_v33  ;;  %v6685_v44 = vrot.slane %v3714_v19, %v7445_v42  ;;  %v6688_v6 = vrot.slane %v3714_v19, %v7386_v15  ;;  %v4126_v4 = vpop.eup %4125  ;;  %vm3073_vm15 = vcmp.eq.f32.partialorder %v7446_v10, 0.0  ;;  %v7447_v63 = vld [vmem:[#allocation32_spill] sm:$0xff] }
 0x1d0   : > { %v2780_v62 = vsel %vm2779_vm3, %v6529_v18, %v2778_v16  ;;  %v2792_v61 = vmul.f32 %v4124_v17, %v6592_v5  ;;  %v6696_v8 = vrot.slane %v3714_v19, %v7403_v7  ;;  %vm2875_vm1 = vcmask 1040384   ;;  %v4128_v45 = vpop.eup %4127 }
 0x1d1   : > { %v2783_v24 = vsel %vm2781_vm4, %v2782_v12, %v2780_v62  ;;  %v2787_v15 = vsel %vm2786_vm0, %v6541_v33, %v2785_v50  ;;  %v2799_v58 = vmul.f32 %v4126_v4, %v6596_v43  ;;  %v2867_v26 = vmul.f32 %v6664_v35, %v2776_v48  ;;  %v4130_v25 = vpop.eup %4129  ;;  %v7448_v33 = vld [vmem:[#allocation8_spill] sm:$0xff] }
 0x1d2   : > { %vm3080_vm3 = vcmp.eq.f32.partialorder %v7447_v63, 0.0  ;;  %v2790_v7 = vsel %vm2788_vm5, %v2789_v49, %v2787_v15  ;;  %v2794_v28 = vsel %vm2793_vm8, %v6592_v5, %v2792_v61  ;;  %v2806_v18 = vmul.f32 %v4128_v45, %v6606_v41  ;;  %v4132_v16 = vpop.eup %4131 }
 0x1d3   : > { %v2868_v12 = vmul.f32 %v6667_v14, %v2783_v24  ;;  %v2797_v37 = vsel %vm2795_vm6, %v2796_v29, %v2794_v28  ;;  %v2801_v17 = vsel %vm2800_vm7, %v6596_v43, %v2799_v58  ;;  %v2813_v48 = vmul.f32 %v4130_v25, %v6615_v38  ;;  %v7450_v25 = vld [vmem:[#allocation47_spill] sm:$0xff] }
 0x1d4   : > { %v6720_v49 = vrot.slane %v3714_v19, %v7448_v33  ;;  %v2804_v50 = vsel %vm2802_vm9, %v2803_v21, %v2801_v17  ;;  %v2808_v42 = vsel %vm2807_vm10, %v6606_v41, %v2806_v18  ;;  %v2820_v4 = vmul.f32 %v4132_v16, %v6627_v13 }
 0x1d5   : > { %v2869_v5 = vmul.f32 %v6676_v46, %v2790_v7  ;;  %v2811_v29 = vsel %vm2809_vm11, %v2810_v30, %v2808_v42  ;;  %v2815_v62 = vsel %vm2814_vm12, %v6615_v38, %v2813_v48  ;;  %v2870_v19 = vmul.f32 %v6679_v59, %v2797_v37 }
 0x1d6   : > { %v2876_v43 = vsel %vm2875_vm1, %v2867_v26, 0.0  ;;  %vm7449_vm4 = vcmp.eq.f32.partialorder %v6615_v38, 0.0  ;;  %v2822_v61 = vsel %vm2821_vm2, %v6627_v13, %v2820_v4  ;;  %v2871_v45 = vmul.f32 %v6685_v44, %v2804_v50 }
 0x1d7   : > { %v2818_v21 = vsel %vm7449_vm4, %v2817_v3, %v2815_v62  ;;  %v2877_v41 = vsel %vm2875_vm1, %v2868_v12, 0.0  ;;  %4133 = vrsqrt.f32 %v6631_v2  ;;  %v2825_v30 = vsel %vm2823_vm13, %v2824_v1, %v2822_v61 }
 0x1d8   : > { %v2878_v24 = vadd.f32 %v2877_v41, %v2876_v43  ;;  %v3086_v38 = vsel %vm3085_vm14, %v6158_v39, %v6396_v55  ;;  %v2872_v3 = vmul.f32 %v6688_v6, %v2811_v29  ;;  %v2873_v15 = vmul.f32 %v6696_v8, %v2818_v21 }
 0x1d9   : > { %v2879_v58 = vsel %vm2875_vm1, %v2869_v5, 0.0  ;;  %vm3092_vm0 = vcmp.eq.f32.partialorder %v7410_v23, inf  ;;  %v7451_v7 = vand.u32 2147483648, %v7446_v10  ;;  %vm3087_vm5 = vcmp.eq.f32.partialorder %v6158_v39, 0.0  ;;  %v7452_v10 = vld [vmem:[#allocation48_spill] sm:$0xff] }
 0x1da   : > { %v2880_v26 = vadd.f32 %v2879_v58, %v2878_v24  ;;  %v3093_v55 = vsel %vm3092_vm0, %v7410_v23, %v6408_v31  ;;  %v2874_v1 = vmul.f32 %v6720_v49, %v2825_v30  ;;  %v2881_v28 = vsel %vm2875_vm1, %v2870_v19, 0.0 }
 0x1db   : > { %v6759_v13 = vsel %vm3073_vm15, %v7451_v7, %v7450_v25  ;;  %v2883_v18 = vsel %vm2875_vm1, %v2871_v45, 0.0  ;;  %v3098_v12 = vmul.f32 %v6462_v20, %v6360_v32  ;;  %vm3384_vm8 = vcmp.eq.f32.partialorder %v7413_v27, inf }
 0x1dc   : > { %v2882_v16 = vadd.f32 %v2881_v28, %v2880_v26  ;;  %v7453_v37 = vand.u32 2147483648, %v7447_v63  ;;  %v7454_v31 = vand.u32 2147483648, %v6158_v39  ;;  %v3095_v33 = vand.u32 2147483648, %v7410_v23 }
 0x1dd   : > { %v2885_v50 = vsel %vm2875_vm1, %v2872_v3, 0.0  ;;  %v2887_v20 = vsel %vm2875_vm1, %v2873_v15, 0.0  ;;  %vm3094_vm6 = vcmp.eq.f32.partialorder %v7410_v23, 0.0  ;;  %v3105_v42 = vmul.f32 %v6485_v0, %v6374_v51 }
 0x1de   : > { %v6775_v17 = vsel %vm3080_vm3, %v7453_v37, %v7452_v10  ;;  %v6779_v48 = vsel %vm3087_vm5, %v7454_v31, %v3086_v38  ;;  %vm3391_vm7 = vcmp.eq.f32.partialorder %v6239_v47, inf  ;;  %v2884_v63 = vadd.f32 %v2883_v18, %v2882_v16 }
 0x1df   : > { %v6788_v4 = vsel %vm3094_vm6, %v3095_v33, %v3093_v55  ;;  %vm3099_vm9 = vcmp.eq.f32.partialorder %v6360_v32, inf  ;;  %v3112_v39 = vmul.f32 %v6470_v60, %v6366_v53  ;;  %v2889_v5 = vsel %vm2875_vm1, %v2874_v1, 0.0 }
 0x1e0   : > { %v3100_v29 = vsel %vm3099_vm9, %v6360_v32, %v3098_v12  ;;  %vm3101_vm10 = vcmp.eq.f32.partialorder %v6360_v32, 0.0  ;;  %v3119_v23 = vmul.f32 %v6490_v54, %v6383_v9  ;;  %v2886_v0 = vadd.f32 %v2885_v50, %v2884_v63 }
 0x1e1   : > { %v3102_v62 = vand.u32 2147483648, %v6360_v32  ;;  %vm3106_vm11 = vcmp.eq.f32.partialorder %v6374_v51, inf  ;;  %vm3108_vm12 = vcmp.eq.f32.partialorder %v6374_v51, 0.0  ;;  %v3109_v60 = vand.u32 2147483648, %v6374_v51  ;;  %v6805_v43 = vpop.eup %4133 }
 0x1e2   : > { %v3107_v19 = vsel %vm3106_vm11, %v6374_v51, %v3105_v42  ;;  %vm3113_vm13 = vcmp.eq.f32.partialorder %v6366_v53, inf  ;;  %4135 = vrsqrt.f32 %v6759_v13  ;;  %v2888_v21 = vadd.f32 %v2887_v20, %v2886_v0 }
 0x1e3   : > { %v3114_v54 = vsel %vm3113_vm13, %v6366_v53, %v3112_v39  ;;  %vm3120_vm2 = vcmp.eq.f32.partialorder %v6383_v9, inf  ;;  %4137 = vrsqrt.f32 %v6775_v17  ;;  %vm3398_vm14 = vcmp.eq.f32.partialorder %v6226_v34, inf }
 0x1e4   : > { %v6813_v61 = vsel %vm3101_vm10, %v3102_v62, %v3100_v29  ;;  %v3116_v45 = vand.u32 2147483648, %v6366_v53  ;;  %v3121_v41 = vsel %vm3120_vm2, %v6383_v9, %v3119_v23  ;;  %4139 = vrsqrt.f32 %v6779_v48 }
 0x1e5   : > { %v2890_v30 = vadd.f32 %v2889_v5, %v2888_v21  ;;  %v6820_v24 = vsel %vm3108_vm12, %v3109_v60, %v3107_v19  ;;  %vm3115_vm15 = vcmp.eq.f32.partialorder %v6366_v53, 0.0  ;;  %v3123_v38 = vand.u32 2147483648, %v6383_v9  ;;  %v7455_v53 = vld [vmem:[#allocation45_spill] sm:$0xff] }
 0x1e6   : > { %v3385_v32 = vsel %vm3384_vm8, %v7413_v27, %v6621_v22  ;;  %vm3386_vm3 = vcmp.eq.f32.partialorder %v7413_v27, 0.0  ;;  %v6829_v3 = vsel %vm3115_vm15, %v3116_v45, %v3114_v54  ;;  %vm3122_vm4 = vcmp.eq.f32.partialorder %v6383_v9, 0.0 }
 0x1e7   : > { %4141 = vrsqrt.f32 %v6788_v4  ;;  %v3397_v51 = vmul.f32 %v6303_v52, %v6226_v34  ;;  %vm3393_vm0 = vcmp.eq.f32.partialorder %v6239_v47, 0.0  ;;  %v6838_v15 = vmul.f32 %v6314_v57, %v7455_v53  ;;  %2891 = vadd.xlane.f32.xlu1 %v2890_v30 }
 0x1e8   : > { %v6840_v58 = vsel %vm3122_vm4, %v3123_v38, %v3121_v41  ;;  %4143 = vrsqrt.f32 %v6813_v61  ;;  %v3392_v9 = vsel %vm3391_vm7, %v6239_v47, %v6625_v40  ;;  %vm3127_vm5 = vcmp.eq.f32.partialorder %v6759_v13, inf }
 0x1e9   : > { %vm3129_vm8 = vcmp.eq.f32.partialorder %v6759_v13, 0.0  ;;  %4145 = vrsqrt.f32 %v6820_v24  ;;  %v3130_v52 = vand.u32 2147483648, %v6759_v13  ;;  %vm3134_vm6 = vcmp.eq.f32.partialorder %v6775_v17, inf }
 0x1ea   : > { %vm3136_vm9 = vcmp.eq.f32.partialorder %v6775_v17, 0.0  ;;  %4147 = vrsqrt.f32 %v6829_v3  ;;  %v3137_v57 = vand.u32 2147483648, %v6775_v17  ;;  %vm3141_vm10 = vcmp.eq.f32.partialorder %v6779_v48, inf }
 0x1eb   : > { %vm3143_vm7 = vcmp.eq.f32.partialorder %v6779_v48, 0.0  ;;  %4149 = vrsqrt.f32 %v6840_v58  ;;  %v3144_v22 = vand.u32 2147483648, %v6779_v48  ;;  %vm3148_vm11 = vcmp.eq.f32.partialorder %v6788_v4, inf }
 0x1ec   : > { %v3151_v40 = vand.u32 2147483648, %v6788_v4  ;;  %v4136_v26 = vpop.eup %4135  ;;  %vm3155_vm13 = vcmp.eq.f32.partialorder %v6813_v61, inf  ;;  %v3158_v25 = vand.u32 2147483648, %v6813_v61  ;;  %vm3164_vm4 = vcmp.eq.f32.partialorder %v6820_v24, 0.0 }
 0x1ed   : > { %v4138_v7 = vpop.eup %4137  ;;  %v3126_v55 = vmul.f32 %v4136_v26, %v6759_v13  ;;  %v3165_v1 = vand.u32 2147483648, %v6820_v24  ;;  %vm3169_vm12 = vcmp.eq.f32.partialorder %v6829_v3, inf  ;;  %v3399_v28 = vsel %vm3398_vm14, %v6226_v34, %v3397_v51 }
 0x1ee   : > { %v4140_v18 = vpop.eup %4139  ;;  %v3133_v12 = vmul.f32 %v4138_v7, %v6775_v17  ;;  %vm3171_vm2 = vcmp.eq.f32.partialorder %v6829_v3, 0.0  ;;  %v3172_v16 = vand.u32 2147483648, %v6829_v3  ;;  %vm3176_vm15 = vcmp.eq.f32.partialorder %v6840_v58, inf }
 0x1ef   : > { %v3179_v10 = vand.u32 2147483648, %v6840_v58  ;;  %v3128_v37 = vsel %vm3127_vm5, %v6759_v13, %v3126_v55  ;;  %v3140_v31 = vmul.f32 %v4140_v18, %v6779_v48  ;;  %v7456_v33 = vand.u32 2147483648, %v7413_v27 }
 0x1f0   : > { %vm3400_vm14 = vcmp.eq.f32.partialorder %v6226_v34, 0.0  ;;  %v3131_v42 = vsel %vm3129_vm8, %v3130_v52, %v3128_v37  ;;  %v3135_v63 = vsel %vm3134_vm6, %v6775_v17, %v3133_v12  ;;  %vm3178_vm5 = vcmp.eq.f32.partialorder %v6840_v58, 0.0  ;;  %v7461_v12 = vld [vmem:[#allocation38_spill] sm:$0xff] }
 0x1f1   : > { %v6886_v50 = vsel %vm3386_vm3, %v7456_v33, %v3385_v32  ;;  %v4142_v20 = vpop.eup %4141  ;;  %v6899_v39 = vsel %vm3393_vm0, %v3394_v56, %v3392_v9  ;;  %v7457_v27 = vand.u32 2147483648, %v6226_v34  ;;  %v3138_v13 = vsel %vm3136_vm9, %v3137_v57, %v3135_v63  ;;  %v7463_v63 = vld [vmem:[#allocation37_spill] sm:$0xff] }
 0x1f2   : > { %v4144_v29 = vpop.eup %4143  ;;  %v3142_v23 = vsel %vm3141_vm10, %v6779_v48, %v3140_v31  ;;  %v3147_v0 = vmul.f32 %v4142_v20, %v6788_v4  ;;  %v3181_v62 = vmul.f32 %v3131_v42, %v6664_v35  ;;  %vm3405_vm3 = vcmp.eq.f32.partialorder %v7455_v53, inf }
 0x1f3   : > { %v6903_v5 = vsel %vm3400_vm14, %v7457_v27, %v3399_v28  ;;  %v4146_v47 = vpop.eup %4145  ;;  %v3145_v34 = vsel %vm3143_vm7, %v3144_v22, %v3142_v23  ;;  %v3154_v56 = vmul.f32 %v4144_v29, %v6813_v61  ;;  %v3182_v19 = vmul.f32 %v3138_v13, %v6667_v14  ;;  %v7464_v27 = vld [vmem:[#allocation39_spill] sm:$0xff] }
 0x1f4   : > { %v3411_v17 = vmul.f32 %v6502_v36, %v6411_v11  ;;  %v4148_v60 = vpop.eup %4147  ;;  %v3149_v21 = vsel %vm3148_vm11, %v6788_v4, %v3147_v0  ;;  %v3161_v54 = vmul.f32 %v4146_v47, %v6820_v24  ;;  %v3183_v45 = vmul.f32 %v3145_v34, %v6676_v46 }
 0x1f5   : > { %v3189_v41 = vsel %vm2875_vm1, %v3181_v62, 0.0  ;;  %v4150_v48 = vpop.eup %4149  ;;  %vm7458_vm0 = vcmp.eq.f32.partialorder %v6788_v4, 0.0  ;;  %v3156_v38 = vsel %vm3155_vm13, %v6813_v61, %v3154_v56  ;;  %v3168_v36 = vmul.f32 %v4148_v60, %v6829_v3 }
 0x1f6   : > { %v3152_v30 = vsel %vm7458_vm0, %v3151_v40, %v3149_v21  ;;  %v3190_v32 = vsel %vm2875_vm1, %v3182_v19, 0.0  ;;  %vm7459_vm8 = vcmp.eq.f32.partialorder %v6813_v61, 0.0  ;;  %vm7460_vm6 = vcmp.eq.f32.partialorder %v6820_v24, inf }
 0x1f7   : > { %v3159_v51 = vsel %vm7459_vm8, %v3158_v25, %v3156_v38  ;;  %v3163_v9 = vsel %vm7460_vm6, %v6820_v24, %v3161_v54  ;;  %v3175_v52 = vmul.f32 %v4150_v48, %v6840_v58  ;;  %v3184_v4 = vmul.f32 %v3152_v30, %v6679_v59 }
 0x1f8   : > { %v3166_v57 = vsel %vm3164_vm4, %v3165_v1, %v3163_v9  ;;  %v3170_v22 = vsel %vm3169_vm12, %v6829_v3, %v3168_v36  ;;  %v3185_v40 = vmul.f32 %v3159_v51, %v6685_v44  ;;  %v3191_v26 = vadd.f32 %v3190_v32, %v3189_v41 }
 0x1f9   : > { %v3173_v61 = vsel %vm3171_vm2, %v3172_v16, %v3170_v22  ;;  %v3177_v25 = vsel %vm3176_vm15, %v6840_v58, %v3175_v52  ;;  %v3186_v7 = vmul.f32 %v3166_v57, %v6688_v6  ;;  %v3192_v55 = vsel %vm2875_vm1, %v3183_v45, 0.0  ;;  %v7462_v16 = vld [vmem:[#allocation41_spill] sm:$0xff] }
 0x1fa   : > { %v3193_v24 = vadd.f32 %v3192_v55, %v3191_v26  ;;  %vm3407_vm9 = vcmp.eq.f32.partialorder %v7455_v53, 0.0  ;;  %v3408_v1 = vand.u32 2147483648, %v7455_v53  ;;  %vm3412_vm10 = vcmp.eq.f32.partialorder %v6411_v11, inf }
 0x1fb   : > { %v3180_v28 = vsel %vm3178_vm5, %v3179_v10, %v3177_v25  ;;  %v3194_v3 = vsel %vm2875_vm1, %v3184_v4, 0.0  ;;  %v3196_v18 = vsel %vm2875_vm1, %v3185_v40, 0.0  ;;  %v3418_v37 = vmul.f32 %v7462_v16, %v7461_v12 }
 0x1fc   : > { %v3187_v31 = vmul.f32 %v3173_v61, %v6696_v8  ;;  %v3195_v33 = vadd.f32 %v3194_v3, %v3193_v24  ;;  %v3406_v20 = vsel %vm3405_vm3, %v7455_v53, %v6838_v15  ;;  %v3413_v42 = vsel %vm3412_vm10, %v6411_v11, %v3411_v17 }
 0x1fd   : > { %v3198_v58 = vsel %vm2875_vm1, %v3186_v7, 0.0  ;;  %vm3414_vm7 = vcmp.eq.f32.partialorder %v6411_v11, 0.0  ;;  %v3415_v10 = vand.u32 2147483648, %v6411_v11  ;;  %v3425_v29 = vmul.f32 %v7464_v27, %v7463_v63 }
 0x1fe   : > { %v3188_v13 = vmul.f32 %v3180_v28, %v6720_v49  ;;  %v3197_v23 = vadd.f32 %v3196_v18, %v3195_v33  ;;  %vm3419_vm11 = vcmp.eq.f32.partialorder %v7461_v12, inf  ;;  %v3432_v0 = vmul.f32 %v6805_v43, %v6631_v2 }
 0x1ff   : > { %v6978_v15 = vsel %vm3407_vm9, %v3408_v1, %v3406_v20  ;;  %v6980_v62 = vsel %vm3414_vm7, %v3415_v10, %v3413_v42  ;;  %v3420_v47 = vsel %vm3419_vm11, %v7461_v12, %v3418_v37  ;;  %vm3421_vm12 = vcmp.eq.f32.partialorder %v7461_v12, 0.0 }
 0x200   : > { %v3199_v11 = vadd.f32 %v3198_v58, %v3197_v23  ;;  %v3200_v34 = vsel %vm2875_vm1, %v3187_v31, 0.0  ;;  %vm3426_vm13 = vcmp.eq.f32.partialorder %v7463_v63, inf  ;;  %4151 = vrsqrt.f32 %v6886_v50 }
 0x201   : > { %v3422_v56 = vand.u32 2147483648, %v7461_v12  ;;  %v3427_v43 = vsel %vm3426_vm13, %v7463_v63, %v3425_v29  ;;  %vm3433_vm2 = vcmp.eq.f32.partialorder %v6631_v2, inf  ;;  %4153 = vrsqrt.f32 %v6899_v39 }
 0x202   : > { %v3201_v53 = vadd.f32 %v3200_v34, %v3199_v11  ;;  %v3202_v19 = vsel %vm2875_vm1, %v3188_v13, 0.0  ;;  %v3429_v17 = vand.u32 2147483648, %v7463_v63  ;;  %v3434_v60 = vsel %vm3433_vm2, %v6631_v2, %v3432_v0 }
 0x203   : > { %v6994_v21 = vsel %vm3421_vm12, %v3422_v56, %v3420_v47  ;;  %vm3428_vm15 = vcmp.eq.f32.partialorder %v7463_v63, 0.0  ;;  %v3436_v54 = vand.u32 2147483648, %v6631_v2  ;;  %4155 = vrsqrt.f32 %v6903_v5 }
 0x204   : > { %v3203_v45 = vadd.f32 %v3202_v19, %v3201_v53  ;;  %v6999_v41 = vsel %vm3428_vm15, %v3429_v17, %v3427_v43  ;;  %vm3435_vm4 = vcmp.eq.f32.partialorder %v6631_v2, 0.0  ;;  %4157 = vrsqrt.f32 %v6978_v15 }
 0x205   : > { %v7003_v48 = vsel %vm3435_vm4, %v3436_v54, %v3434_v60  ;;  %4159 = vrsqrt.f32 %v6980_v62  ;;  %vm3440_vm14 = vcmp.eq.f32.partialorder %v6886_v50, inf  ;;  %vm3442_vm5 = vcmp.eq.f32.partialorder %v6886_v50, 0.0 }
 0x206   : > { %3204 = vadd.xlane.f32.xlu0 %v3203_v45  ;;  %4161 = vrsqrt.f32 %v6994_v21  ;;  %v3443_v30 = vand.u32 2147483648, %v6886_v50  ;;  %vm3447_vm3 = vcmp.eq.f32.partialorder %v6899_v39, inf  ;;  %vm3449_vm0 = vcmp.eq.f32.partialorder %v6899_v39, 0.0 }
 0x207   : > { %4163 = vrsqrt.f32 %v6999_v41  ;;  %v3450_v2 = vand.u32 2147483648, %v6899_v39  ;;  %vm3454_vm8 = vcmp.eq.f32.partialorder %v6903_v5, inf  ;;  %vm3456_vm6 = vcmp.eq.f32.partialorder %v6903_v5, 0.0 }
 0x208   : > { %4165 = vrsqrt.f32 %v7003_v48  ;;  %v3457_v36 = vand.u32 2147483648, %v6903_v5  ;;  %vm3461_vm9 = vcmp.eq.f32.partialorder %v6978_v15, inf  ;;  %vm3463_vm10 = vcmp.eq.f32.partialorder %v6978_v15, 0.0 }
 0x209   : > { %v3464_v32 = vand.u32 2147483648, %v6978_v15  ;;  %vm3468_vm7 = vcmp.eq.f32.partialorder %v6980_v62, inf  ;;  %vm3470_vm11 = vcmp.eq.f32.partialorder %v6980_v62, 0.0  ;;  %v3471_v52 = vand.u32 2147483648, %v6980_v62 }
 0x20a   : > { %v4152_v38 = vpop.eup %4151  ;;  %vm3475_vm12 = vcmp.eq.f32.partialorder %v6994_v21, inf  ;;  %vm3477_vm13 = vcmp.eq.f32.partialorder %v6994_v21, 0.0  ;;  %v3478_v57 = vand.u32 2147483648, %v6994_v21  ;;  %vm3482_vm2 = vcmp.eq.f32.partialorder %v6999_v41, inf }
 0x20b   : > { %v4154_v51 = vpop.eup %4153  ;;  %v3439_v9 = vmul.f32 %v4152_v38, %v6886_v50  ;;  %vm3484_vm15 = vcmp.eq.f32.partialorder %v6999_v41, 0.0  ;;  %v3485_v26 = vand.u32 2147483648, %v6999_v41  ;;  %vm3489_vm4 = vcmp.eq.f32.partialorder %v7003_v48, inf }
 0x20c   : > { %v3446_v4 = vmul.f32 %v4154_v51, %v6899_v39  ;;  %v3492_v16 = vand.u32 2147483648, %v7003_v48 }
 0x20d   : > { %v4156_v22 = vpop.eup %4155  ;;  %v3441_v40 = vsel %vm3440_vm14, %v6886_v50, %v3439_v9  ;;  %vm3491_vm14 = vcmp.eq.f32.partialorder %v7003_v48, 0.0 }
 0x20e   : > { %v4158_v61 = vpop.eup %4157  ;;  %v3444_v25 = vsel %vm3442_vm5, %v3443_v30, %v3441_v40  ;;  %v3448_v7 = vsel %vm3447_vm3, %v6899_v39, %v3446_v4  ;;  %v3453_v55 = vmul.f32 %v4156_v22, %v6903_v5 }
 0x20f   : > { %v4160_v24 = vpop.eup %4159  ;;  %v3451_v1 = vsel %vm3449_vm0, %v3450_v2, %v3448_v7  ;;  %v3460_v28 = vmul.f32 %v4158_v61, %v6978_v15  ;;  %v3494_v3 = vmul.f32 %v3444_v25, %v6664_v35 }
 0x210   : > { %v4162_v50 = vpop.eup %4161  ;;  %v3455_v18 = vsel %vm3454_vm8, %v6903_v5, %v3453_v55  ;;  %v3467_v12 = vmul.f32 %v4160_v24, %v6980_v62  ;;  %v3495_v37 = vmul.f32 %v3451_v1, %v6667_v14  ;;  %v7465_v55 = vmov 0.0  }
 0x211   : > { %v4164_v31 = vpop.eup %4163  ;;  %v3458_v39 = vsel %vm3456_vm6, %v3457_v36, %v3455_v18  ;;  %v3462_v33 = vsel %vm3461_vm9, %v6978_v15, %v3460_v28  ;;  %v3474_v35 = vmul.f32 %v4162_v50, %v6994_v21  ;;  %v3502_v20 = vsel %vm2875_vm1, %v3494_v3, 0.0 }
 0x212   : > { %v4166_v42 = vpop.eup %4165  ;;  %v3465_v58 = vsel %vm3463_vm10, %v3464_v32, %v3462_v33  ;;  %v3469_v14 = vsel %vm3468_vm7, %v6980_v62, %v3467_v12  ;;  %v3481_v10 = vmul.f32 %v4164_v31, %v6999_v41  ;;  %v3496_v5 = vmul.f32 %v3458_v39, %v6676_v46 }
 0x213   : > { %v3472_v63 = vsel %vm3470_vm11, %v3471_v52, %v3469_v14  ;;  %v3476_v27 = vsel %vm3475_vm12, %v6994_v21, %v3474_v35  ;;  %v3488_v29 = vmul.f32 %v4166_v42, %v7003_v48  ;;  %v3497_v13 = vmul.f32 %v3465_v58, %v6679_v59 }
 0x214   : > { %v3479_v23 = vsel %vm3477_vm13, %v3478_v57, %v3476_v27  ;;  %v3483_v0 = vsel %vm3482_vm2, %v6999_v41, %v3481_v10  ;;  %v3498_v46 = vmul.f32 %v3472_v63, %v6685_v44  ;;  %v3503_v15 = vsel %vm2875_vm1, %v3495_v37, 0.0 }
 0x215   : > { %v3486_v62 = vsel %vm3484_vm15, %v3485_v26, %v3483_v0  ;;  %v3490_v47 = vsel %vm3489_vm4, %v7003_v48, %v3488_v29  ;;  %v3499_v59 = vmul.f32 %v3479_v23, %v6688_v6  ;;  %v3504_v11 = vadd.f32 %v3503_v15, %v3502_v20 }
 0x216   : > { %v3493_v34 = vsel %vm3491_vm14, %v3492_v16, %v3490_v47  ;;  %v3500_v56 = vmul.f32 %v3486_v62, %v6696_v8  ;;  %v3505_v43 = vsel %vm2875_vm1, %v3496_v5, 0.0  ;;  %v3509_v19 = vsel %vm2875_vm1, %v3498_v46, 0.0 }
 0x217   : > { %v3501_v44 = vmul.f32 %v3493_v34, %v6720_v49  ;;  %v3506_v53 = vadd.f32 %v3505_v43, %v3504_v11  ;;  %v3511_v17 = vsel %vm2875_vm1, %v3499_v59, 0.0  ;;  %v3507_v60 = vsel %vm2875_vm1, %v3497_v13, 0.0 }
 0x218   : > { %v3513_v21 = vsel %vm2875_vm1, %v3500_v56, 0.0 }
 0x219   : > { %v3508_v6 = vadd.f32 %v3507_v60, %v3506_v53  ;;  %v3515_v54 = vsel %vm2875_vm1, %v3501_v44, 0.0  ;;  %vm431_vm1 = vcmask 0  }
 0x21a   : > { %432 = vst.msk [vmem:[%s7101_s7] sm:$0x1] %vm431_vm1, %v7465_v55 }
 0x21b   : > { %v3510_v45 = vadd.f32 %v3509_v19, %v3508_v6 }
 0x21d   : > { %v3512_v41 = vadd.f32 %v3511_v17, %v3510_v45 }
 0x21f   : > { %v3514_v48 = vadd.f32 %v3513_v21, %v3512_v41 }
 0x221   : > { %v3516_v8 = vadd.f32 %v3515_v54, %v3514_v48  ;;  %v3527_v43 = vld [vmem:[%s7101_s7] sm:$0x1] }
 0x223   : > { %3517 = vadd.xlane.f32.xlu1 %v3516_v8 }
 0x22e   : > { %v626_v30 = vpop.xlane.xlu0 %625 }
 0x22f   : > { %v627_v49 = vrot.slane %v626_v30, 4 }
 0x230   : > { %v677_v2 = vpop.xlane.xlu1 %676 }
 0x231   : > { %v678_v38 = vrot.slane %v677_v2, 4  ;;  %v628_v36 = vadd.f32 %v627_v49, %v626_v30 }
 0x232   : > { %v1014_v61 = vpop.xlane.xlu0 %1013 }
 0x233   : > { %v679_v32 = vadd.f32 %v678_v38, %v677_v2  ;;  %v629_v51 = vrot.slane %v628_v36, 2  ;;  %v1015_v25 = vrot.slane %v1014_v61, 4 }
 0x235   : > { %v680_v9 = vrot.slane %v679_v32, 2  ;;  %v630_v52 = vadd.f32 %v629_v51, %v628_v36  ;;  %v1016_v7 = vadd.f32 %v1015_v25, %v1014_v61 }
 0x237   : > { %v681_v4 = vadd.f32 %v680_v9, %v679_v32  ;;  %v631_v57 = vrot.slane %v630_v52, 1  ;;  %v1017_v24 = vrot.slane %v1016_v7, 2 }
 0x239   : > { %v682_v22 = vrot.slane %v681_v4, 1  ;;  %v632_v40 = vadd.f32 %v631_v57, %v630_v52  ;;  %v1018_v3 = vadd.f32 %v1017_v24, %v1016_v7 }
 0x23b   : > { %v683_v26 = vadd.f32 %v682_v22, %v681_v4  ;;  %3930 = vpush %v632_v40  ;;  %v1019_v12 = vrot.slane %v1018_v3, 1 }
 0x23d   : > { %3932 = vpush %v683_v26  ;;  %v1020_v31 = vadd.f32 %v1019_v12, %v1018_v3 }
 0x252   : > { %v863_v1 = vpop.xlane.xlu0 %862 }
 0x253   : > { %v864_v28 = vrot.slane %v863_v1, 4 }
 0x255   : > { %v865_v50 = vadd.f32 %v864_v28, %v863_v1 }
 0x257   : > { %v866_v18 = vrot.slane %v865_v50, 2 }
 0x259   : > { %v867_v16 = vadd.f32 %v866_v18, %v865_v50 }
 0x25b   : > { %v868_v37 = vrot.slane %v867_v16, 1 }
 0x25d   : > { %v869_v39 = vadd.f32 %v868_v37, %v867_v16 }
 0x25f   : > { %3934 = vpush %v869_v39 }
 0x260   : > { %3936 = vpush %v1020_v31 }
 0x26c   : > { %s3931_s8 = spop %3930 }
 0x26e   : > { %s3933_s9 = spop %3932 }
 0x26f   : > { %s685_s10 = sadd.f32 %s3933_s9, %s3931_s8 }
 0x274   : > { %v2892_v33 = vpop.xlane.xlu1 %2891 }
 0x275   : > { %v2893_v35 = vrot.slane %v2892_v33, 4 }
 0x277   : > { %v2894_v20 = vadd.f32 %v2893_v35, %v2892_v33 }
 0x279   : > { %v2895_v42 = vrot.slane %v2894_v20, 2 }
 0x27b   : > { %v2896_v58 = vadd.f32 %v2895_v42, %v2894_v20 }
 0x27d   : > { %v2897_v14 = vrot.slane %v2896_v58, 1 }
 0x27f   : > { %v2898_v10 = vadd.f32 %v2897_v14, %v2896_v58 }
 0x281   : > { %3942 = vpush %v2898_v10 }
 0x290   : > { %s3935_s11 = spop %3934 }
 0x291   : > { %s3937_s12 = spop %3936 }
 0x292   : > { %s1022_s13 = sadd.f32 %s3937_s12, %s3935_s11 }
 0x293   : > { %v3205_v5 = vpop.xlane.xlu0 %3204 }
 0x294   : > { %v3206_v63 = vrot.slane %v3205_v5, 4  ;;  %s1024_s14 = sadd.f32 %s1022_s13, %s685_s10 }
 0x296   : > { %v3207_v27 = vadd.f32 %v3206_v63, %v3205_v5  ;;  %s1025_s18 = smul.f32 0.5, %s1024_s14 }
 0x298   : > { %v3208_v29 = vrot.slane %v3207_v27, 2  ;;  %v1027_v0 = vstv %s1025_s18 }
 0x299   : > { %1029 = vst.msk [vmem:[%s426_s17] sm:$0x1] %vm431_vm1, %v1027_v0 }
 0x29a   : > { %v3209_v13 = vadd.f32 %v3208_v29, %v3207_v27 }
 0x29c   : > { %v3210_v23 = vrot.slane %v3209_v13, 1 }
 0x29e   : > { %v3211_v46 = vadd.f32 %v3210_v23, %v3209_v13 }
 0x2a0   : > { %3944 = vpush %v3211_v46 }
 0x2b0   : > { %v3518_v15 = vpop.xlane.xlu1 %3517 }
 0x2b1   : > { %v3519_v62 = vrot.slane %v3518_v15, 4 }
 0x2b2   : > { %s3943_s19 = spop %3942 }
 0x2b3   : > { %v3520_v47 = vadd.f32 %v3519_v62, %v3518_v15 }
 0x2b5   : > { %v3521_v59 = vrot.slane %v3520_v47, 2 }
 0x2b7   : > { %v3522_v11 = vadd.f32 %v3521_v59, %v3520_v47 }
 0x2b9   : > { %v3523_v34 = vrot.slane %v3522_v11, 1 }
 0x2bb   : > { %v3524_v56 = vadd.f32 %v3523_v34, %v3522_v11 }
 0x2bd   : > { %3946 = vpush %v3524_v56 }
 0x2d1   : > { %s3945_s20 = spop %3944 }
 0x2d2   : > { %s3213_s21 = sadd.f32 %s3945_s20, %s3943_s19 }
 0x2ee   : > { %s3947_s25 = spop %3946 }
 0x2ef   : > { %s3526_s26 = sadd.f32 %s3947_s25, %s3213_s21 }
 0x2f1   : > { %s3528_s27 = smul.f32 0.33333334, %s3526_s26 }
 0x2f3   : > { %v3529_v44 = vstv %s3528_s27 }
 0x2f4   : > { %v3530_v53 = vadd.f32 %v3529_v44, %v3527_v43 }
 0x2f6   : > { %3532 = vst.msk [vmem:[%s7101_s7] sm:$0x1] %vm431_vm1, %v3530_v53 }
 0x2f7 PF: > { %s17_s23 = sadd.s32 1, %s4197_s23   ;;  %s7466_s21 = smov %s4193_s22 }
 0x2f8   : > { %p14_p5 = scmp.ge.s32.totalorder %s17_s23, 4   ;;  %s7467_s22 = smov %s7469_s24 }
 0x2fa   :  { %16 = sbr.rel (!%p14_p5) target bundleno = 2 (0x2), region = 101 }

</bundles_post_ra>
